<compile_context>
chip_gen: v7x
topology: tpu7x:2x2x1
jax: 0.10.0
libtpu: 0.0.40
codegen_flags: <defaults>
</compile_context>

<pallas_src>
import functools
import math

import jax
import jax.numpy as jnp
from jax.experimental import pallas as pl
from jax.experimental.pallas import tpu as pltpu

LANE = 128
NEG_MASK = -10000.0


def _round_up(x, m):
    return (x + m - 1) // m * m


def _pad2(a, rows, cols):
    r, c = a.shape
    return jnp.pad(a, ((0, rows - r), (0, cols - c)))


# ----------------------------------------------------------------------------
# Kernel A: fused MLP + QKV projection + LayerNorms + pos-emb + residual
# ----------------------------------------------------------------------------
def _prologue_kernel(x_ref, pos_ref,
                     w1_ref, b1_ref, w2_ref, b2_ref,
                     wqkv_ref, bqkv_ref, g_qkv_ref, beta_qkv_ref,
                     wpos_ref, bpos_ref, wres_ref, bres_ref,
                     qs_ref, kp_ref, v_ref, res_ref,
                     *, hidden_dim, h_pad, identity_residual, inv_scale):
    f32 = jnp.float32
    bf16 = jnp.bfloat16
    x = x_ref[...]

    # ---- MLP: Linear -> ReLU -> Dropout(eval) -> Linear (hidden stays in VMEM)
    h = jnp.dot(x.astype(bf16), w1_ref[...].astype(bf16),
                preferred_element_type=f32) + b1_ref[...]
    h = jnp.maximum(h, 0.0)
    h = jnp.dot(h.astype(bf16), w2_ref[...].astype(bf16),
                preferred_element_type=f32) + b2_ref[...]

    # ---- fused Q/K/V projection: one matmul with a 3H-wide RHS
    qkv = jnp.dot(h.astype(bf16), wqkv_ref[...].astype(bf16),
                  preferred_element_type=f32) + bqkv_ref[...]

    # column mask so LayerNorm statistics ignore the zero-padded channels
    col = jax.lax.broadcasted_iota(jnp.int32, (1, h_pad), 1)
    cmask = (col < hidden_dim).astype(f32)
    inv_d = 1.0 / hidden_dim

    def _ln(z, g, b):
        mu = jnp.sum(z * cmask, axis=-1, keepdims=True) * inv_d
        zc = (z - mu) * cmask
        var = jnp.sum(zc * zc, axis=-1, keepdims=True) * inv_d
        return zc * jax.lax.rsqrt(var + 1e-5) * g + b

    q = _ln(qkv[:, 0 * h_pad:1 * h_pad], g_qkv_ref[0:1, :], beta_qkv_ref[0:1, :])
    k = _ln(qkv[:, 1 * h_pad:2 * h_pad], g_qkv_ref[1:2, :], beta_qkv_ref[1:2, :])
    v = _ln(qkv[:, 2 * h_pad:3 * h_pad], g_qkv_ref[2:3, :], beta_qkv_ref[2:3, :])

    # ---- position embedding + F.normalize(p=2, dim=-1)
    p = jnp.dot(pos_ref[...].astype(bf16), wpos_ref[...].astype(bf16),
                preferred_element_type=f32) + bpos_ref[...]
    nrm = jnp.sqrt(jnp.sum(p * p, axis=-1, keepdims=True))
    p = p / jnp.maximum(nrm, 1e-12)

    # pre-scaled query so (Q K^T)/scale + P P^T folds into ONE downstream matmul
    qs_ref[...] = jnp.concatenate([q * inv_scale, p], axis=-1).astype(bf16)
    kp_ref[...] = jnp.concatenate([k, p], axis=-1).astype(bf16)
    v_ref[...] = v.astype(bf16)

    # ---- residual branch (Identity or Linear)
    if identity_residual:
        res_ref[...] = x
    else:
        res_ref[...] = jnp.dot(x.astype(bf16), wres_ref[...].astype(bf16),
                               preferred_element_type=f32) + bres_ref[...]


# ----------------------------------------------------------------------------
# Kernel B: row-tiled attention + residual add + final LayerNorm
# ----------------------------------------------------------------------------
def _attention_kernel(qs_ref, kp_ref, v_ref, bias_ref, res_ref, g_ref, bln_ref,
                      *out_refs, hidden_dim, h_pad):
    f32 = jnp.float32
    # one MXU pass: [Q/scale | P] @ [K | P]^T  ==  QK^T/scale + PP^T
    scores = jax.lax.dot_general(qs_ref[...], kp_ref[...],
                                 (((1,), (1,)), ((), ())),
                                 preferred_element_type=f32)
    # additive 0 / -10000 mask bias (numerically identical to masked_fill for
    # rows with >= 1 edge: the masked exps underflow to exactly 0 in f32).
    scores = scores + bias_ref[...]
    m = jnp.max(scores, axis=-1, keepdims=True)
    e = jnp.exp(scores - m)
    denom = jnp.sum(e, axis=-1, keepdims=True)
    p = e * pl.reciprocal(denom, approx=True)          # divide moved to EUP

    attn = jnp.dot(p.astype(jnp.bfloat16), v_ref[...],
                   preferred_element_type=f32)
    y = attn + res_ref[...]

    # fused final LayerNorm over the true hidden channels
    col = jax.lax.broadcasted_iota(jnp.int32, (1, h_pad), 1)
    cmask = (col < hidden_dim).astype(f32)
    inv_d = 1.0 / hidden_dim
    mu = jnp.sum(y * cmask, axis=-1, keepdims=True) * inv_d
    yc = (y - mu) * cmask
    var = jnp.sum(yc * yc, axis=-1, keepdims=True) * inv_d
    out_refs[0][...] = yc * jax.lax.rsqrt(var + 1e-5) * g_ref[...] + bln_ref[...]

    if len(out_refs) == 2:                              # optional debug output
        out_refs[1][...] = p


# ----------------------------------------------------------------------------
# Parameters
# ----------------------------------------------------------------------------
def init_params(key, input_dim, hidden_dim):
    ks = iter(jax.random.split(key, 16))

    def lin(din, dout):
        a = math.sqrt(6.0 / (din + dout))
        w = jax.random.uniform(next(ks), (din, dout), minval=-a, maxval=a,
                               dtype=jnp.float32)
        b = jax.random.uniform(next(ks), (dout,), minval=-0.1, maxval=0.1,
                               dtype=jnp.float32)
        return w, b

    p = {}
    p["mlp1_w"], p["mlp1_b"] = lin(input_dim, hidden_dim)
    p["mlp2_w"], p["mlp2_b"] = lin(hidden_dim, hidden_dim)
    p["q_w"], p["q_b"] = lin(hidden_dim, hidden_dim)
    p["k_w"], p["k_b"] = lin(hidden_dim, hidden_dim)
    p["v_w"], p["v_b"] = lin(hidden_dim, hidden_dim)
    p["pos_w"], p["pos_b"] = lin(3, hidden_dim)
    if input_dim == hidden_dim:
        p["res_w"], p["res_b"] = None, None
    else:
        p["res_w"], p["res_b"] = lin(input_dim, hidden_dim)
    for name in ("lnq", "lnk", "lnv", "ln"):
        p[name + "_g"] = jnp.ones((hidden_dim,), jnp.float32)
        p[name + "_b"] = jnp.zeros((hidden_dim,), jnp.float32)
    p["hidden_dim"] = hidden_dim
    p["input_dim"] = input_dim
    return p


def pack_params(p):
    """Kernel-facing layout: [in, out] weights zero-padded to 128-lane multiples,
    QKV weights / biases / LayerNorm params fused into single tensors."""
    h = p["hidden_dim"]
    din = p["input_dim"]
    h_pad = _round_up(h, LANE)
    din_pad = _round_up(din, LANE)
    pos_pad = LANE

    def pb(b):
        return _pad2(b.reshape(1, -1), 1, h_pad)

    pk = {
        "hidden_dim": h, "h_pad": h_pad, "din_pad": din_pad, "pos_pad": pos_pad,
        "identity_residual": p["res_w"] is None,
        "w1": _pad2(p["mlp1_w"], din_pad, h_pad), "b1": pb(p["mlp1_b"]),
        "w2": _pad2(p["mlp2_w"], h_pad, h_pad), "b2": pb(p["mlp2_b"]),
        "wqkv": jnp.concatenate([_pad2(p["q_w"], h_pad, h_pad),
                                 _pad2(p["k_w"], h_pad, h_pad),
                                 _pad2(p["v_w"], h_pad, h_pad)], axis=1),
        "bqkv": jnp.concatenate([pb(p["q_b"]), pb(p["k_b"]), pb(p["v_b"])], axis=1),
        "g_qkv": jnp.concatenate([pb(p["lnq_g"]), pb(p["lnk_g"]), pb(p["lnv_g"])], axis=0),
        "beta_qkv": jnp.concatenate([pb(p["lnq_b"]), pb(p["lnk_b"]), pb(p["lnv_b"])], axis=0),
        "wpos": _pad2(p["pos_w"], pos_pad, h_pad), "bpos": pb(p["pos_b"]),
        "ln_g": pb(p["ln_g"]), "ln_b": pb(p["ln_b"]),
    }
    if p["res_w"] is None:
        pk["wres"] = jnp.zeros((din_pad, h_pad), jnp.float32)
        pk["bres"] = jnp.zeros((1, h_pad), jnp.float32)
    else:
        pk["wres"] = _pad2(p["res_w"], din_pad, h_pad)
        pk["bres"] = pb(p["res_b"])
    return pk


# ----------------------------------------------------------------------------
# Forward pass
# ----------------------------------------------------------------------------
def agt_block_forward(pk, x, edge_index, pos, return_attention=False, tile_q=128):
    n, _ = x.shape
    h = pk["hidden_dim"]
    h_pad, din_pad, pos_pad = pk["h_pad"], pk["din_pad"], pk["pos_pad"]

    n_pad = _round_up(n, LANE)
    tq = min(tile_q, n_pad)
    assert n_pad % tq == 0
    grid = (n_pad // tq,)

    xp = _pad2(x, n_pad, din_pad)
    posp = _pad2(pos, n_pad, pos_pad)
    # Dense additive mask bias (glue; spec builds a dense [N,N] mask too).
    # TODO(synk): query rows with zero outgoing edges differ slightly from
    # masked_fill semantics (additive vs replace); identical when every row
    # has at least one edge.
    bias = jnp.full((n_pad, n_pad), NEG_MASK, jnp.float32)
    bias = bias.at[edge_index[0], edge_index[1]].set(0.0)

    def row(cols, dtype=None):
        return pl.BlockSpec((tq, cols), lambda i: (i, 0))

    def whole(shape):
        return pl.BlockSpec(shape, lambda i: (0, 0))

    # ---------------- Kernel A ----------------
    prologue = functools.partial(
        _prologue_kernel, hidden_dim=h, h_pad=h_pad,
        identity_residual=pk["identity_residual"], inv_scale=1.0 / math.sqrt(h))
    qs, kp, v, res = pl.pallas_call(
        prologue,
        grid=grid,
        in_specs=[row(din_pad), row(pos_pad),
                  whole((din_pad, h_pad)), whole((1, h_pad)),
                  whole((h_pad, h_pad)), whole((1, h_pad)),
                  whole((h_pad, 3 * h_pad)), whole((1, 3 * h_pad)),
                  whole((3, h_pad)), whole((3, h_pad)),
                  whole((pos_pad, h_pad)), whole((1, h_pad)),
                  whole((din_pad, h_pad)), whole((1, h_pad))],
        out_specs=(row(2 * h_pad), row(2 * h_pad), row(h_pad), row(h_pad)),
        out_shape=(jax.ShapeDtypeStruct((n_pad, 2 * h_pad), jnp.bfloat16),
                   jax.ShapeDtypeStruct((n_pad, 2 * h_pad), jnp.bfloat16),
                   jax.ShapeDtypeStruct((n_pad, h_pad), jnp.bfloat16),
                   jax.ShapeDtypeStruct((n_pad, h_pad), jnp.float32)),
        compiler_params=pltpu.CompilerParams(dimension_semantics=("parallel",)),
    )(xp, posp, pk["w1"], pk["b1"], pk["w2"], pk["b2"],
      pk["wqkv"], pk["bqkv"], pk["g_qkv"], pk["beta_qkv"],
      pk["wpos"], pk["bpos"], pk["wres"], pk["bres"])

    # ---------------- Kernel B ----------------
    attn_kernel = functools.partial(_attention_kernel, hidden_dim=h, h_pad=h_pad)
    out_shape = [jax.ShapeDtypeStruct((n_pad, h_pad), jnp.float32)]
    out_specs = [row(h_pad)]
    if return_attention:
        out_shape.append(jax.ShapeDtypeStruct((n_pad, n_pad), jnp.float32))
        out_specs.append(pl.BlockSpec((tq, n_pad), lambda i: (i, 0)))

    outs = pl.pallas_call(
        attn_kernel,
        grid=grid,
        in_specs=[row(2 * h_pad),
                  whole((n_pad, 2 * h_pad)),
                  whole((n_pad, h_pad)),
                  pl.BlockSpec((tq, n_pad), lambda i: (i, 0)),
                  row(h_pad),
                  whole((1, h_pad)), whole((1, h_pad))],
        out_specs=tuple(out_specs),
        out_shape=tuple(out_shape),
        compiler_params=pltpu.CompilerParams(dimension_semantics=("parallel",)),
    )(qs, kp, v, bias, res, pk["ln_g"], pk["ln_b"])

    out = outs[0][:n, :h]
    if return_attention:
        return out, outs[1][:n, :n]
    return out


# ----------------------------------------------------------------------------
# Pure-JAX f32 reference (mirrors the PyTorch module in eval mode)
# ----------------------------------------------------------------------------
def agt_block_reference(p, x, edge_index, pos):
    def lin(w, b, z):
        return z @ w + b

    def ln(g, b, z):
        mu = z.mean(-1, keepdims=True)
        var = ((z - mu) ** 2).mean(-1, keepdims=True)
        return (z - mu) / jnp.sqrt(var + 1e-5) * g + b

    h = jnp.maximum(lin(p["mlp1_w"], p["mlp1_b"], x), 0.0)
    h = lin(p["mlp2_w"], p["mlp2_b"], h)
    pe = lin(p["pos_w"], p["pos_b"], pos)
    pe = pe / jnp.maximum(jnp.linalg.norm(pe, axis=-1, keepdims=True), 1e-12)
    Q = ln(p["lnq_g"], p["lnq_b"], lin(p["q_w"], p["q_b"], h))
    K = ln(p["lnk_g"], p["lnk_b"], lin(p["k_w"], p["k_b"], h))
    V = ln(p["lnv_g"], p["lnv_b"], lin(p["v_w"], p["v_b"], h))
    s = Q @ K.T / math.sqrt(p["hidden_dim"]) + pe @ pe.T
    mask = jnp.zeros_like(s).at[edge_index[0], edge_index[1]].set(1.0)
    s = jnp.where(mask == 0.0, NEG_MASK, s)
    w = jax.nn.softmax(s, axis=-1)
    attn_out = w @ V
    res = x if p["res_w"] is None else lin(p["res_w"], p["res_b"], x)
    return ln(p["ln_g"], p["ln_b"], attn_out + res), w


# ----------------------------------------------------------------------------
if __name__ == "__main__":
    N = 256
    input_dim = 16
    hidden_dim = 32
    k_nbrs = 8

    key = jax.random.PRNGKey(0)
    kx, kpos, kw = jax.random.split(key, 3)
    x = jax.random.normal(kx, (N, input_dim), dtype=jnp.float32)
    pos = jax.random.normal(kpos, (N, 3), dtype=jnp.float32)

    # demo edge_index (kNN): edge_index[0]=query row, edge_index[1]=neighbor
    d2 = jnp.sum((pos[:, None, :] - pos[None, :, :]) ** 2, axis=-1)
    d2 = d2 + jnp.eye(N, dtype=jnp.float32) * 1e10
    _, nbr = jax.lax.top_k(-d2, k_nbrs)
    edge_index = jnp.stack([jnp.repeat(jnp.arange(N), k_nbrs),
                            nbr.reshape(-1)]).astype(jnp.int32)

    logical = init_params(kw, input_dim, hidden_dim)
    packed = pack_params(logical)

    # fast path (no [N,N] attention-weights writeback) + full-semantics path
    out_fast = agt_block_forward(packed, x, edge_index, pos, return_attention=False)
    out_full, attn = agt_block_forward(packed, x, edge_index, pos, return_attention=True)
    jax.block_until_ready((out_fast, out_full, attn))

    ref_out, ref_attn = agt_block_reference(logical, x, edge_index, pos)

    assert out_full.shape == (N, hidden_dim)
    assert attn.shape == (N, N)
    assert bool(jnp.all(jnp.isfinite(out_full)))
    assert bool(jnp.all(jnp.isfinite(attn)))
    assert bool(jnp.allclose(out_fast, out_full, atol=1e-5))

    err_o = float(jnp.max(jnp.abs(out_full - ref_out)))
    err_a = float(jnp.max(jnp.abs(attn - ref_attn)))
    # loose tolerances: kernel uses bf16 MXU operands with f32 accumulation
    assert err_o < 0.3, f"output max-abs-diff too large: {err_o}"
    assert err_a < 0.1, f"attention max-abs-diff too large: {err_a}"

    print("KERNEL_OK")
</pallas_src>

<mosaic_0001>
module attributes {stable_mosaic.version = 11 : i64} {
  func.func @_prologue_kernel(%arg0: i32, %arg1: memref<128x128xf32, #tpu.memory_space<vmem>>, %arg2: memref<128x128xf32, #tpu.memory_space<vmem>>, %arg3: memref<128x128xf32, #tpu.memory_space<vmem>>, %arg4: memref<1x128xf32, #tpu.memory_space<vmem>>, %arg5: memref<128x128xf32, #tpu.memory_space<vmem>>, %arg6: memref<1x128xf32, #tpu.memory_space<vmem>>, %arg7: memref<128x384xf32, #tpu.memory_space<vmem>>, %arg8: memref<1x384xf32, #tpu.memory_space<vmem>>, %arg9: memref<3x128xf32, #tpu.memory_space<vmem>>, %arg10: memref<3x128xf32, #tpu.memory_space<vmem>>, %arg11: memref<128x128xf32, #tpu.memory_space<vmem>>, %arg12: memref<1x128xf32, #tpu.memory_space<vmem>>, %arg13: memref<128x128xf32, #tpu.memory_space<vmem>>, %arg14: memref<1x128xf32, #tpu.memory_space<vmem>>, %arg15: memref<128x256xbf16, #tpu.memory_space<vmem>>, %arg16: memref<128x256xbf16, #tpu.memory_space<vmem>>, %arg17: memref<128x128xbf16, #tpu.memory_space<vmem>>, %arg18: memref<128x128xf32, #tpu.memory_space<vmem>>) attributes {dimension_semantics = [#tpu.dimension_semantics<parallel>], iteration_bounds = array<i64: 2>, scalar_prefetch = 0 : i64, scratch_operands = 0 : i64, tpu.core_type = #tpu.core_type<tc>, window_params = [{transform_indices = @transform_0, window_bounds = array<i64: 128, 128>}, {transform_indices = @transform_1, window_bounds = array<i64: 128, 128>}, {pipeline_mode = #tpu.pipeline_mode<synchronous>, transform_indices = @transform_2, window_bounds = array<i64: 128, 128>}, {pipeline_mode = #tpu.pipeline_mode<synchronous>, transform_indices = @transform_3, window_bounds = array<i64: 1, 128>}, {pipeline_mode = #tpu.pipeline_mode<synchronous>, transform_indices = @transform_4, window_bounds = array<i64: 128, 128>}, {pipeline_mode = #tpu.pipeline_mode<synchronous>, transform_indices = @transform_5, window_bounds = array<i64: 1, 128>}, {pipeline_mode = #tpu.pipeline_mode<synchronous>, transform_indices = @transform_6, window_bounds = array<i64: 128, 384>}, {pipeline_mode = #tpu.pipeline_mode<synchronous>, transform_indices = @transform_7, window_bounds = array<i64: 1, 384>}, {pipeline_mode = #tpu.pipeline_mode<synchronous>, transform_indices = @transform_8, window_bounds = array<i64: 3, 128>}, {pipeline_mode = #tpu.pipeline_mode<synchronous>, transform_indices = @transform_9, window_bounds = array<i64: 3, 128>}, {pipeline_mode = #tpu.pipeline_mode<synchronous>, transform_indices = @transform_10, window_bounds = array<i64: 128, 128>}, {pipeline_mode = #tpu.pipeline_mode<synchronous>, transform_indices = @transform_11, window_bounds = array<i64: 1, 128>}, {pipeline_mode = #tpu.pipeline_mode<synchronous>, transform_indices = @transform_12, window_bounds = array<i64: 128, 128>}, {pipeline_mode = #tpu.pipeline_mode<synchronous>, transform_indices = @transform_13, window_bounds = array<i64: 1, 128>}, {transform_indices = @transform_14, window_bounds = array<i64: 128, 256>}, {transform_indices = @transform_15, window_bounds = array<i64: 128, 256>}, {transform_indices = @transform_16, window_bounds = array<i64: 128, 128>}, {transform_indices = @transform_17, window_bounds = array<i64: 128, 128>}]} {
    %c0 = arith.constant 0 : index
    %c0_0 = arith.constant 0 : index
    %0 = vector.load %arg1[%c0, %c0_0] : memref<128x128xf32, #tpu.memory_space<vmem>>, vector<128x128xf32>
    %1 = arith.truncf %0 : vector<128x128xf32> to vector<128x128xbf16>
    %c0_1 = arith.constant 0 : index
    %c0_2 = arith.constant 0 : index
    %2 = vector.load %arg3[%c0_1, %c0_2] : memref<128x128xf32, #tpu.memory_space<vmem>>, vector<128x128xf32>
    %3 = arith.truncf %2 : vector<128x128xf32> to vector<128x128xbf16>
    %cst = arith.constant dense<0.000000e+00> : vector<128x128xf32>
    %4 = tpu.matmul %1, %3, %cst {dimension_numbers = #tpu.dot_dimension_numbers<[1], [0], [0], [1], [0, 0, 1, 1], [], []>} : vector<128x128xbf16>, vector<128x128xbf16>, vector<128x128xf32> -> vector<128x128xf32>
    %c0_3 = arith.constant 0 : index
    %c0_4 = arith.constant 0 : index
    %5 = vector.load %arg4[%c0_3, %c0_4] : memref<1x128xf32, #tpu.memory_space<vmem>>, vector<1x128xf32>
    %6 = vector.broadcast %5 : vector<1x128xf32> to vector<128x128xf32>
    %7 = arith.addf %4, %6 : vector<128x128xf32>
    %cst_5 = arith.constant 0.000000e+00 : f32
    %8 = vector.broadcast %cst_5 : f32 to vector<128x128xf32>
    %9 = arith.maximumf %7, %8 : vector<128x128xf32>
    %10 = arith.truncf %9 : vector<128x128xf32> to vector<128x128xbf16>
    %c0_6 = arith.constant 0 : index
    %c0_7 = arith.constant 0 : index
    %11 = vector.load %arg5[%c0_6, %c0_7] : memref<128x128xf32, #tpu.memory_space<vmem>>, vector<128x128xf32>
    %12 = arith.truncf %11 : vector<128x128xf32> to vector<128x128xbf16>
    %cst_8 = arith.constant dense<0.000000e+00> : vector<128x128xf32>
    %13 = tpu.matmul %10, %12, %cst_8 {dimension_numbers = #tpu.dot_dimension_numbers<[1], [0], [0], [1], [0, 0, 1, 1], [], []>} : vector<128x128xbf16>, vector<128x128xbf16>, vector<128x128xf32> -> vector<128x128xf32>
    %c0_9 = arith.constant 0 : index
    %c0_10 = arith.constant 0 : index
    %14 = vector.load %arg6[%c0_9, %c0_10] : memref<1x128xf32, #tpu.memory_space<vmem>>, vector<1x128xf32>
    %15 = vector.broadcast %14 : vector<1x128xf32> to vector<128x128xf32>
    %16 = arith.addf %13, %15 : vector<128x128xf32>
    %17 = arith.truncf %16 : vector<128x128xf32> to vector<128x128xbf16>
    %c0_11 = arith.constant 0 : index
    %c0_12 = arith.constant 0 : index
    %18 = vector.load %arg7[%c0_11, %c0_12] : memref<128x384xf32, #tpu.memory_space<vmem>>, vector<128x384xf32>
    %19 = arith.truncf %18 : vector<128x384xf32> to vector<128x384xbf16>
    %cst_13 = arith.constant dense<0.000000e+00> : vector<128x384xf32>
    %20 = tpu.matmul %17, %19, %cst_13 {dimension_numbers = #tpu.dot_dimension_numbers<[1], [0], [0], [1], [0, 0, 1, 1], [], []>} : vector<128x128xbf16>, vector<128x384xbf16>, vector<128x384xf32> -> vector<128x384xf32>
    %c0_14 = arith.constant 0 : index
    %c0_15 = arith.constant 0 : index
    %21 = vector.load %arg8[%c0_14, %c0_15] : memref<1x384xf32, #tpu.memory_space<vmem>>, vector<1x384xf32>
    %22 = vector.broadcast %21 : vector<1x384xf32> to vector<128x384xf32>
    %23 = arith.addf %20, %22 : vector<128x384xf32>
    %24 = tpu.iota {dimensions = array<i32: 1>} : vector<1x128xi32>
    %c32_i32 = arith.constant 32 : i32
    %25 = vector.broadcast %c32_i32 : i32 to vector<1x128xi32>
    %26 = arith.cmpi slt, %24, %25 : vector<1x128xi32>
    %27 = arith.extui %26 : vector<1x128xi1> to vector<1x128xi32>
    %28 = arith.sitofp %27 : vector<1x128xi32> to vector<1x128xf32>
    %29 = vector.extract_strided_slice %23 {offsets = [0, 0], sizes = [128, 128], strides = [1, 1]} : vector<128x384xf32> to vector<128x128xf32>
    %c0_16 = arith.constant 0 : index
    %c0_17 = arith.constant 0 : index
    %30 = vector.load %arg9[%c0_16, %c0_17] : memref<3x128xf32, #tpu.memory_space<vmem>>, vector<1x128xf32>
    %c0_18 = arith.constant 0 : index
    %c0_19 = arith.constant 0 : index
    %31 = vector.load %arg10[%c0_18, %c0_19] : memref<3x128xf32, #tpu.memory_space<vmem>>, vector<1x128xf32>
    %32 = vector.broadcast %28 : vector<1x128xf32> to vector<128x128xf32>
    %33 = arith.mulf %29, %32 : vector<128x128xf32>
    %cst_20 = arith.constant dense<0.000000e+00> : vector<128xf32>
    %34 = vector.multi_reduction <add>, %33, %cst_20 [1] : vector<128x128xf32> to vector<128xf32>
    %35 = vector.shape_cast %34 : vector<128xf32> to vector<128x1xf32>
    %cst_21 = arith.constant 3.125000e-02 : f32
    %36 = vector.broadcast %cst_21 : f32 to vector<128x1xf32>
    %37 = arith.mulf %35, %36 : vector<128x1xf32>
    %38 = vector.broadcast %37 : vector<128x1xf32> to vector<128x128xf32>
    %39 = arith.subf %29, %38 : vector<128x128xf32>
    %40 = vector.broadcast %28 : vector<1x128xf32> to vector<128x128xf32>
    %41 = arith.mulf %39, %40 : vector<128x128xf32>
    %42 = arith.mulf %41, %41 : vector<128x128xf32>
    %cst_22 = arith.constant dense<0.000000e+00> : vector<128xf32>
    %43 = vector.multi_reduction <add>, %42, %cst_22 [1] : vector<128x128xf32> to vector<128xf32>
    %44 = vector.shape_cast %43 : vector<128xf32> to vector<128x1xf32>
    %cst_23 = arith.constant 3.125000e-02 : f32
    %45 = vector.broadcast %cst_23 : f32 to vector<128x1xf32>
    %46 = arith.mulf %44, %45 : vector<128x1xf32>
    %cst_24 = arith.constant 9.99999974E-6 : f32
    %47 = vector.broadcast %cst_24 : f32 to vector<128x1xf32>
    %48 = arith.addf %46, %47 : vector<128x1xf32>
    %49 = math.rsqrt %48 : vector<128x1xf32>
    %50 = vector.broadcast %49 : vector<128x1xf32> to vector<128x128xf32>
    %51 = arith.mulf %41, %50 : vector<128x128xf32>
    %52 = vector.broadcast %30 : vector<1x128xf32> to vector<128x128xf32>
    %53 = arith.mulf %51, %52 : vector<128x128xf32>
    %54 = vector.broadcast %31 : vector<1x128xf32> to vector<128x128xf32>
    %55 = arith.addf %53, %54 : vector<128x128xf32>
    %56 = vector.extract_strided_slice %23 {offsets = [0, 128], sizes = [128, 128], strides = [1, 1]} : vector<128x384xf32> to vector<128x128xf32>
    %c1 = arith.constant 1 : index
    %c0_25 = arith.constant 0 : index
    %57 = vector.load %arg9[%c1, %c0_25] : memref<3x128xf32, #tpu.memory_space<vmem>>, vector<1x128xf32>
    %c1_26 = arith.constant 1 : index
    %c0_27 = arith.constant 0 : index
    %58 = vector.load %arg10[%c1_26, %c0_27] : memref<3x128xf32, #tpu.memory_space<vmem>>, vector<1x128xf32>
    %59 = vector.broadcast %28 : vector<1x128xf32> to vector<128x128xf32>
    %60 = arith.mulf %56, %59 : vector<128x128xf32>
    %cst_28 = arith.constant dense<0.000000e+00> : vector<128xf32>
    %61 = vector.multi_reduction <add>, %60, %cst_28 [1] : vector<128x128xf32> to vector<128xf32>
    %62 = vector.shape_cast %61 : vector<128xf32> to vector<128x1xf32>
    %cst_29 = arith.constant 3.125000e-02 : f32
    %63 = vector.broadcast %cst_29 : f32 to vector<128x1xf32>
    %64 = arith.mulf %62, %63 : vector<128x1xf32>
    %65 = vector.broadcast %64 : vector<128x1xf32> to vector<128x128xf32>
    %66 = arith.subf %56, %65 : vector<128x128xf32>
    %67 = vector.broadcast %28 : vector<1x128xf32> to vector<128x128xf32>
    %68 = arith.mulf %66, %67 : vector<128x128xf32>
    %69 = arith.mulf %68, %68 : vector<128x128xf32>
    %cst_30 = arith.constant dense<0.000000e+00> : vector<128xf32>
    %70 = vector.multi_reduction <add>, %69, %cst_30 [1] : vector<128x128xf32> to vector<128xf32>
    %71 = vector.shape_cast %70 : vector<128xf32> to vector<128x1xf32>
    %cst_31 = arith.constant 3.125000e-02 : f32
    %72 = vector.broadcast %cst_31 : f32 to vector<128x1xf32>
    %73 = arith.mulf %71, %72 : vector<128x1xf32>
    %cst_32 = arith.constant 9.99999974E-6 : f32
    %74 = vector.broadcast %cst_32 : f32 to vector<128x1xf32>
    %75 = arith.addf %73, %74 : vector<128x1xf32>
    %76 = math.rsqrt %75 : vector<128x1xf32>
    %77 = vector.broadcast %76 : vector<128x1xf32> to vector<128x128xf32>
    %78 = arith.mulf %68, %77 : vector<128x128xf32>
    %79 = vector.broadcast %57 : vector<1x128xf32> to vector<128x128xf32>
    %80 = arith.mulf %78, %79 : vector<128x128xf32>
    %81 = vector.broadcast %58 : vector<1x128xf32> to vector<128x128xf32>
    %82 = arith.addf %80, %81 : vector<128x128xf32>
    %83 = vector.extract_strided_slice %23 {offsets = [0, 256], sizes = [128, 128], strides = [1, 1]} : vector<128x384xf32> to vector<128x128xf32>
    %c2 = arith.constant 2 : index
    %c0_33 = arith.constant 0 : index
    %84 = vector.load %arg9[%c2, %c0_33] : memref<3x128xf32, #tpu.memory_space<vmem>>, vector<1x128xf32>
    %c2_34 = arith.constant 2 : index
    %c0_35 = arith.constant 0 : index
    %85 = vector.load %arg10[%c2_34, %c0_35] : memref<3x128xf32, #tpu.memory_space<vmem>>, vector<1x128xf32>
    %86 = vector.broadcast %28 : vector<1x128xf32> to vector<128x128xf32>
    %87 = arith.mulf %83, %86 : vector<128x128xf32>
    %cst_36 = arith.constant dense<0.000000e+00> : vector<128xf32>
    %88 = vector.multi_reduction <add>, %87, %cst_36 [1] : vector<128x128xf32> to vector<128xf32>
    %89 = vector.shape_cast %88 : vector<128xf32> to vector<128x1xf32>
    %cst_37 = arith.constant 3.125000e-02 : f32
    %90 = vector.broadcast %cst_37 : f32 to vector<128x1xf32>
    %91 = arith.mulf %89, %90 : vector<128x1xf32>
    %92 = vector.broadcast %91 : vector<128x1xf32> to vector<128x128xf32>
    %93 = arith.subf %83, %92 : vector<128x128xf32>
    %94 = vector.broadcast %28 : vector<1x128xf32> to vector<128x128xf32>
    %95 = arith.mulf %93, %94 : vector<128x128xf32>
    %96 = arith.mulf %95, %95 : vector<128x128xf32>
    %cst_38 = arith.constant dense<0.000000e+00> : vector<128xf32>
    %97 = vector.multi_reduction <add>, %96, %cst_38 [1] : vector<128x128xf32> to vector<128xf32>
    %98 = vector.shape_cast %97 : vector<128xf32> to vector<128x1xf32>
    %cst_39 = arith.constant 3.125000e-02 : f32
    %99 = vector.broadcast %cst_39 : f32 to vector<128x1xf32>
    %100 = arith.mulf %98, %99 : vector<128x1xf32>
    %cst_40 = arith.constant 9.99999974E-6 : f32
    %101 = vector.broadcast %cst_40 : f32 to vector<128x1xf32>
    %102 = arith.addf %100, %101 : vector<128x1xf32>
    %103 = math.rsqrt %102 : vector<128x1xf32>
    %104 = vector.broadcast %103 : vector<128x1xf32> to vector<128x128xf32>
    %105 = arith.mulf %95, %104 : vector<128x128xf32>
    %106 = vector.broadcast %84 : vector<1x128xf32> to vector<128x128xf32>
    %107 = arith.mulf %105, %106 : vector<128x128xf32>
    %108 = vector.broadcast %85 : vector<1x128xf32> to vector<128x128xf32>
    %109 = arith.addf %107, %108 : vector<128x128xf32>
    %c0_41 = arith.constant 0 : index
    %c0_42 = arith.constant 0 : index
    %110 = vector.load %arg2[%c0_41, %c0_42] : memref<128x128xf32, #tpu.memory_space<vmem>>, vector<128x128xf32>
    %111 = arith.truncf %110 : vector<128x128xf32> to vector<128x128xbf16>
    %c0_43 = arith.constant 0 : index
    %c0_44 = arith.constant 0 : index
    %112 = vector.load %arg11[%c0_43, %c0_44] : memref<128x128xf32, #tpu.memory_space<vmem>>, vector<128x128xf32>
    %113 = arith.truncf %112 : vector<128x128xf32> to vector<128x128xbf16>
    %cst_45 = arith.constant dense<0.000000e+00> : vector<128x128xf32>
    %114 = tpu.matmul %111, %113, %cst_45 {dimension_numbers = #tpu.dot_dimension_numbers<[1], [0], [0], [1], [0, 0, 1, 1], [], []>} : vector<128x128xbf16>, vector<128x128xbf16>, vector<128x128xf32> -> vector<128x128xf32>
    %c0_46 = arith.constant 0 : index
    %c0_47 = arith.constant 0 : index
    %115 = vector.load %arg12[%c0_46, %c0_47] : memref<1x128xf32, #tpu.memory_space<vmem>>, vector<1x128xf32>
    %116 = vector.broadcast %115 : vector<1x128xf32> to vector<128x128xf32>
    %117 = arith.addf %114, %116 : vector<128x128xf32>
    %118 = arith.mulf %117, %117 : vector<128x128xf32>
    %cst_48 = arith.constant dense<0.000000e+00> : vector<128xf32>
    %119 = vector.multi_reduction <add>, %118, %cst_48 [1] : vector<128x128xf32> to vector<128xf32>
    %120 = vector.shape_cast %119 : vector<128xf32> to vector<128x1xf32>
    %121 = math.sqrt %120 : vector<128x1xf32>
    %cst_49 = arith.constant 9.99999996E-13 : f32
    %122 = vector.broadcast %cst_49 : f32 to vector<128x1xf32>
    %123 = arith.maximumf %121, %122 : vector<128x1xf32>
    %124 = vector.broadcast %123 : vector<128x1xf32> to vector<128x128xf32>
    %125 = arith.divf %117, %124 : vector<128x128xf32>
    %cst_50 = arith.constant 0.176776692 : f32
    %126 = vector.broadcast %cst_50 : f32 to vector<128x128xf32>
    %127 = arith.mulf %55, %126 : vector<128x128xf32>
    %128 = tpu.concatenate %127, %125 in 1 : vector<128x128xf32>, vector<128x128xf32> -> vector<128x256xf32>
    %129 = arith.truncf %128 : vector<128x256xf32> to vector<128x256xbf16>
    %c0_51 = arith.constant 0 : index
    %c0_52 = arith.constant 0 : index
    %130 = vector.load %arg15[%c0_51, %c0_52] : memref<128x256xbf16, #tpu.memory_space<vmem>>, vector<128x256xbf16>
    tpu.vector_store %arg15[%c0_51, %c0_52], %129 {strides = array<i32>} : memref<128x256xbf16, #tpu.memory_space<vmem>>, vector<128x256xbf16>,
    %131 = tpu.concatenate %82, %125 in 1 : vector<128x128xf32>, vector<128x128xf32> -> vector<128x256xf32>
    %132 = arith.truncf %131 : vector<128x256xf32> to vector<128x256xbf16>
    %c0_53 = arith.constant 0 : index
    %c0_54 = arith.constant 0 : index
    %133 = vector.load %arg16[%c0_53, %c0_54] : memref<128x256xbf16, #tpu.memory_space<vmem>>, vector<128x256xbf16>
    tpu.vector_store %arg16[%c0_53, %c0_54], %132 {strides = array<i32>} : memref<128x256xbf16, #tpu.memory_space<vmem>>, vector<128x256xbf16>,
    %134 = arith.truncf %109 : vector<128x128xf32> to vector<128x128xbf16>
    %c0_55 = arith.constant 0 : index
    %c0_56 = arith.constant 0 : index
    %135 = vector.load %arg17[%c0_55, %c0_56] : memref<128x128xbf16, #tpu.memory_space<vmem>>, vector<128x128xbf16>
    tpu.vector_store %arg17[%c0_55, %c0_56], %134 {strides = array<i32>} : memref<128x128xbf16, #tpu.memory_space<vmem>>, vector<128x128xbf16>,
    %136 = arith.truncf %0 : vector<128x128xf32> to vector<128x128xbf16>
    %c0_57 = arith.constant 0 : index
    %c0_58 = arith.constant 0 : index
    %137 = vector.load %arg13[%c0_57, %c0_58] : memref<128x128xf32, #tpu.memory_space<vmem>>, vector<128x128xf32>
    %138 = arith.truncf %137 : vector<128x128xf32> to vector<128x128xbf16>
    %cst_59 = arith.constant dense<0.000000e+00> : vector<128x128xf32>
    %139 = tpu.matmul %136, %138, %cst_59 {dimension_numbers = #tpu.dot_dimension_numbers<[1], [0], [0], [1], [0, 0, 1, 1], [], []>} : vector<128x128xbf16>, vector<128x128xbf16>, vector<128x128xf32> -> vector<128x128xf32>
    %c0_60 = arith.constant 0 : index
    %c0_61 = arith.constant 0 : index
    %140 = vector.load %arg14[%c0_60, %c0_61] : memref<1x128xf32, #tpu.memory_space<vmem>>, vector<1x128xf32>
    %141 = vector.broadcast %140 : vector<1x128xf32> to vector<128x128xf32>
    %142 = arith.addf %139, %141 : vector<128x128xf32>
    %c0_62 = arith.constant 0 : index
    %c0_63 = arith.constant 0 : index
    %143 = vector.load %arg18[%c0_62, %c0_63] : memref<128x128xf32, #tpu.memory_space<vmem>>, vector<128x128xf32>
    tpu.vector_store %arg18[%c0_62, %c0_63], %142 {strides = array<i32>} : memref<128x128xf32, #tpu.memory_space<vmem>>, vector<128x128xf32>,
    return
  }
  func.func @transform_0(%arg0: i32) -> (i32, i32) {
    %c0_i32 = arith.constant 0 : i32
    %c0_i32_0 = arith.constant 0 : i32
    return %arg0, %c0_i32 : i32, i32
  }
  func.func @transform_1(%arg0: i32) -> (i32, i32) {
    %c0_i32 = arith.constant 0 : i32
    %c0_i32_0 = arith.constant 0 : i32
    return %arg0, %c0_i32 : i32, i32
  }
  func.func @transform_2(%arg0: i32) -> (i32, i32) {
    %c0_i32 = arith.constant 0 : i32
    %c0_i32_0 = arith.constant 0 : i32
    %c0_i32_1 = arith.constant 0 : i32
    return %c0_i32, %c0_i32_0 : i32, i32
  }
  func.func @transform_3(%arg0: i32) -> (i32, i32) {
    %c0_i32 = arith.constant 0 : i32
    %c0_i32_0 = arith.constant 0 : i32
    %c0_i32_1 = arith.constant 0 : i32
    return %c0_i32, %c0_i32_0 : i32, i32
  }
  func.func @transform_4(%arg0: i32) -> (i32, i32) {
    %c0_i32 = arith.constant 0 : i32
    %c0_i32_0 = arith.constant 0 : i32
    %c0_i32_1 = arith.constant 0 : i32
    return %c0_i32, %c0_i32_0 : i32, i32
  }
  func.func @transform_5(%arg0: i32) -> (i32, i32) {
    %c0_i32 = arith.constant 0 : i32
    %c0_i32_0 = arith.constant 0 : i32
    %c0_i32_1 = arith.constant 0 : i32
    return %c0_i32, %c0_i32_0 : i32, i32
  }
  func.func @transform_6(%arg0: i32) -> (i32, i32) {
    %c0_i32 = arith.constant 0 : i32
    %c0_i32_0 = arith.constant 0 : i32
    %c0_i32_1 = arith.constant 0 : i32
    return %c0_i32, %c0_i32_0 : i32, i32
  }
  func.func @transform_7(%arg0: i32) -> (i32, i32) {
    %c0_i32 = arith.constant 0 : i32
    %c0_i32_0 = arith.constant 0 : i32
    %c0_i32_1 = arith.constant 0 : i32
    return %c0_i32, %c0_i32_0 : i32, i32
  }
  func.func @transform_8(%arg0: i32) -> (i32, i32) {
    %c0_i32 = arith.constant 0 : i32
    %c0_i32_0 = arith.constant 0 : i32
    %c0_i32_1 = arith.constant 0 : i32
    return %c0_i32, %c0_i32_0 : i32, i32
  }
  func.func @transform_9(%arg0: i32) -> (i32, i32) {
    %c0_i32 = arith.constant 0 : i32
    %c0_i32_0 = arith.constant 0 : i32
    %c0_i32_1 = arith.constant 0 : i32
    return %c0_i32, %c0_i32_0 : i32, i32
  }
  func.func @transform_10(%arg0: i32) -> (i32, i32) {
    %c0_i32 = arith.constant 0 : i32
    %c0_i32_0 = arith.constant 0 : i32
    %c0_i32_1 = arith.constant 0 : i32
    return %c0_i32, %c0_i32_0 : i32, i32
  }
  func.func @transform_11(%arg0: i32) -> (i32, i32) {
    %c0_i32 = arith.constant 0 : i32
    %c0_i32_0 = arith.constant 0 : i32
    %c0_i32_1 = arith.constant 0 : i32
    return %c0_i32, %c0_i32_0 : i32, i32
  }
  func.func @transform_12(%arg0: i32) -> (i32, i32) {
    %c0_i32 = arith.constant 0 : i32
    %c0_i32_0 = arith.constant 0 : i32
    %c0_i32_1 = arith.constant 0 : i32
    return %c0_i32, %c0_i32_0 : i32, i32
  }
  func.func @transform_13(%arg0: i32) -> (i32, i32) {
    %c0_i32 = arith.constant 0 : i32
    %c0_i32_0 = arith.constant 0 : i32
    %c0_i32_1 = arith.constant 0 : i32
    return %c0_i32, %c0_i32_0 : i32, i32
  }
  func.func @transform_14(%arg0: i32) -> (i32, i32) {
    %c0_i32 = arith.constant 0 : i32
    %c0_i32_0 = arith.constant 0 : i32
    return %arg0, %c0_i32 : i32, i32
  }
  func.func @transform_15(%arg0: i32) -> (i32, i32) {
    %c0_i32 = arith.constant 0 : i32
    %c0_i32_0 = arith.constant 0 : i32
    return %arg0, %c0_i32 : i32, i32
  }
  func.func @transform_16(%arg0: i32) -> (i32, i32) {
    %c0_i32 = arith.constant 0 : i32
    %c0_i32_0 = arith.constant 0 : i32
    return %arg0, %c0_i32 : i32, i32
  }
  func.func @transform_17(%arg0: i32) -> (i32, i32) {
    %c0_i32 = arith.constant 0 : i32
    %c0_i32_0 = arith.constant 0 : i32
    return %arg0, %c0_i32 : i32, i32
  }
}

</mosaic_0001>

<bundles_post_ra>
// kernel: tpu_custom_call.1
= control target key start
LH: loop header
LB: loop body
LE: loop exit
PB: predicated region body
PF: predicated region fallthrough
CT: control target
= control target key end

     0   :  { %s6362_s0 = inlined_call_operand.hbm [shape: f32[256,128], index: 0, kind: input, shape index: {}]   ;;  %s6363_s1 = inlined_call_operand.hbm [shape: f32[256,128], index: 1, kind: input, shape index: {}]   ;;  %s6364_s2 = inlined_call_operand.hbm [shape: f32[128,128], index: 2, kind: input, shape index: {}]   ;;  %s6365_s3 = inlined_call_operand.hbm [shape: f32[1,128], index: 3, kind: input, shape index: {}]   ;;  %s6366_s4 = inlined_call_operand.hbm [shape: f32[128,128], index: 4, kind: input, shape index: {}]   ;;  %s6367_s5 = inlined_call_operand.vmem [shape: f32[1,128], index: 5, kind: input, shape index: {}]   ;;  %s6368_s6 = inlined_call_operand.hbm [shape: f32[128,384], index: 6, kind: input, shape index: {}]   ;;  %s6369_s7 = inlined_call_operand.vmem [shape: f32[1,384], index: 7, kind: input, shape index: {}]   ;;  %s6370_s8 = inlined_call_operand.vmem [shape: f32[3,128], index: 8, kind: input, shape index: {}]   ;;  %s6371_s9 = inlined_call_operand.vmem [shape: f32[3,128], index: 9, kind: input, shape index: {}]   ;;  %s6372_s10 = inlined_call_operand.hbm [shape: f32[128,128], index: 10, kind: input, shape index: {}]   ;;  %s6373_s11 = inlined_call_operand.vmem [shape: f32[1,128], index: 11, kind: input, shape index: {}]   ;;  %s6374_s12 = inlined_call_operand.hbm [shape: f32[128,128], index: 12, kind: input, shape index: {}]   ;;  %s6375_s13 = inlined_call_operand.vmem [shape: f32[1,128], index: 13, kind: input, shape index: {}]   ;;  %s6376_s14 = inlined_call_operand.hbm [shape: bf16[256,256], index: 14, kind: output, shape index: {0}]   ;;  %s6377_s15 = inlined_call_operand.hbm [shape: bf16[256,256], index: 15, kind: output, shape index: {1}]   ;;  %s6378_s16 = inlined_call_operand.hbm [shape: bf16[256,128], index: 16, kind: output, shape index: {2}]   ;;  %s6379_s17 = inlined_call_operand.hbm [shape: f32[256,128], index: 17, kind: output, shape index: {3}]  }
   0x1   :  { %6461 = sst [smem:[#allocation73_spill]] %s6362_s0 }
   0x2   :  { %6462 = sst [smem:[#allocation74_spill]] %s6363_s1 }
   0x3   :  { %6463 = sst [smem:[#allocation75_spill]] %s6364_s2 }
   0x4   :  { %6464 = sst [smem:[#allocation76_spill]] %s6365_s3 }
   0x5   :  { %6465 = sst [smem:[#allocation77_spill]] %s6366_s4 }
   0x6   :  { %6466 = sst [smem:[#allocation78_spill]] %s6367_s5 }
   0x7   :  { %6467 = sst [smem:[#allocation79_spill]] %s6368_s6 }
   0x8   :  { %6468 = sst [smem:[#allocation80_spill]] %s6369_s7 }
   0x9   :  { %6469 = sst [smem:[#allocation81_spill]] %s6370_s8 }
   0xa   :  { %6470 = sst [smem:[#allocation82_spill]] %s6371_s9 }
   0xb   :  { %6471 = sst [smem:[#allocation83_spill]] %s6372_s10 }
   0xc   :  { %6472 = sst [smem:[#allocation84_spill]] %s6374_s12 }
   0xd   :  { %6473 = sst [smem:[#allocation85_spill]] %s6375_s13 }
   0xe   :  { %6474 = sst [smem:[#allocation86_spill]] %s6376_s14 }
   0xf   :  { %6475 = sst [smem:[#allocation87_spill]] %s6377_s15 }
  0x10   :  { %6476 = sst [smem:[#allocation88_spill]] %s6378_s16 }
  0x11   :  { %6477 = sst [smem:[#allocation89_spill]] %s6379_s17 }
  0x12   :  { %23 = vsyncpa [#allocation3], 0 }
  0x13   :  { %25 = vsyncpa [#allocation3 + $0x1], 0 }
  0x14   :  { %26 = vsyncpa [#allocation6], 0 }
  0x15   :  { %28 = vsyncpa [#allocation6 + $0x1], 0 }
  0x16   :  { %29 = vsyncpa [#allocation9], 0 }
  0x17   :  { %30 = vsyncpa [#allocation12], 0 }
  0x18   :  { %31 = vsyncpa [#allocation15], 0 }
  0x19   :  { %32 = vsyncpa [#allocation4], 0 }
  0x1a   :  { %34 = vsyncpa [#allocation4 + $0x1], 0 }
  0x1b   :  { %35 = vsyncpa [#allocation18], 0 }
  0x1c   :  { %37 = vsyncpa [#allocation18 + $0x1], 0 }
  0x1d   :  { %38 = vsyncpa [#allocation21], 0 }
  0x1e   :  { %40 = vsyncpa [#allocation21 + $0x1], 0  ;;  %s4495_s24 = smov 0   ;;  %s4497_s25 = smov 0  }
  0x1f   :  { %s4499_s26 = smov 0   ;;  %s4501_s27 = smov 0  }
  0x20 LB: > { %6478 = sst [smem:[#allocation31_spill]] %s4377_s26  ;;  %s4383_s28 = smov [#allocation7]   ;;  %s4381_s27 = sphi %s4501_s27, %s6651_s27   ;;  %s4377_s26 = sphi %s4499_s26, %s6648_s26   ;;  %s4373_s25 = sphi %s4497_s25, %s6650_s25   ;;  %s4369_s24 = sphi %s4495_s24, %s6649_s24  }
  0x21   : > { %s471_s29 = sshll.u32 %s4383_s28, 4  ;;  %s4516_s0 = sadd.s32 4294967295, %s4381_s27   ;;  %s4521_s29 = int_to_ptr.vmem [resolvable:$true] %s471_s29 }
  0x22   : > { %p3211_p0 = scmp.ge.s32.totalorder %s4381_s27, 1  ;;  %p6392_p1 = scmp.eq.s32.totalorder %s4516_s0, 0 }
  0x23   : > { %p459_p2 = scmp.lt.s32.totalorder %s4381_s27, 3  ;;  %s4384_s18 = smov [#allocation8]  }
  0x24   : > { %s485_s19 = sshll.u32 %s4384_s18, 4  ;;  %s4385_s20 = smov [#allocation11]   ;;  %s4536_s19 = int_to_ptr.vmem [resolvable:$true] %s485_s19 }
  0x25   : > { %p4523_p3 = pnand %p3211_p0, %p459_p2  ;;  %s511_s21 = sshll.u32 %s4385_s20, 4  ;;  %s4538_s21 = int_to_ptr.vmem [resolvable:$true] %s511_s21 }
  0x26   : > { %s6481_s2 = sld [smem:[#allocation75_spill]] }
  0x27   : > { %s6479_s30 = scalar_select %p4523_p3, 1, 0 }
  0x28   : > { %p3708_p5 = pneg %p4523_p3 }
  0x2a   : > { %p4532_p6 = pnand %p3708_p5, %p6392_p1 }
  0x2c   : > { %s3975_s28 = scalar_lea.hbm %s6481_s2, 2048  ;;  %p4548_p8 = pneg %p4532_p6 }
  0x2d   : > { %p3976_p7 = scmp.ne.s32.totalorder %s6481_s2, %s3975_s28  ;;  %p3982_p11 = scmp.lt.u32.totalorder %s3975_s28, %s6481_s2 }
  0x2f   : > { %p3978_p9 = pnand %p4548_p8, %p3976_p7 }
  0x31   : > { %p3979_p10 = pneg %p3978_p9 }
  0x33   : > { %p3984_p12 = pnand %p3982_p11, %p3979_p10 }
  0x35   : > { %3987 = shalt.err (!%p3984_p12)
}
  0x36   : > { %s3988_s15 = scalar_lea.vmem %s4521_s29, 2048  ;;  %p3996_p5 = scmp.lt.s32.totalorder %s4521_s29, %s4521_s29 }
  0x37   : > { %p3989_p13 = scmp.ne.s32.totalorder %s4521_s29, %s3988_s15  ;;  %p3997_p4 = scmp.lt.s32.totalorder %s3988_s15, %s3988_s15 }
  0x39   : > { %p3991_p0 = pnand %p3989_p13, %p4548_p8  ;;  %p3998_p7 = por %p3997_p4, %p3996_p5 }
  0x3b   : > { %p3992_p2 = pneg %p3991_p0 }
  0x3d   : > { %p3999_p9 = pnand %p3998_p7, %p3992_p2 }
  0x3f   : > { %4002 = shalt.err (!%p3999_p9)
}
  0x40   : > { %s6388_s16 = smov 128   ;;  %s6390_s14 = smov 8  }
  0x41   : > { %3711 = dma.hbm_to_vmem [thread:$0]  (!%p4532_p6), %s6481_s2, 2048, %s4521_s29, [#allocation6], %s6388_s16, %s6388_s16, %s6390_s14  }
  0x42   : > { %s6483_s3 = sld [smem:[#allocation76_spill]] }
  0x48   : > { %s4003_s15 = scalar_lea.hbm %s6483_s3, 16 }
  0x49   : > { %p4004_p4 = scmp.ne.s32.totalorder %s6483_s3, %s4003_s15  ;;  %p4010_p12 = scmp.lt.u32.totalorder %s4003_s15, %s6483_s3 }
  0x4b   : > { %p4006_p10 = pnand %p4004_p4, %p4548_p8 }
  0x4d   : > { %p4007_p11 = pneg %p4006_p10 }
  0x4f   : > { %p4012_p13 = pnand %p4010_p12, %p4007_p11 }
  0x51   : > { %4015 = shalt.err (!%p4012_p13)
}
  0x52   : > { %s4016_s29 = scalar_lea.vmem %s4536_s19, 16  ;;  %s4023_s13 = scalar_lea.vmem %s4536_s19, 32 }
  0x53   : > { %p4017_p0 = scmp.ne.s32.totalorder %s4536_s19, %s4016_s29  ;;  %p4024_p7 = scmp.lt.s32.totalorder %s4536_s19, %s4536_s19 }
  0x54   : > { %p4025_p9 = scmp.lt.s32.totalorder %s4023_s13, %s4016_s29 }
  0x55   : > { %p4019_p2 = pnand %p4017_p0, %p4548_p8 }
  0x56   : > { %p4026_p4 = por %p4025_p9, %p4024_p7 }
  0x57   : > { %p4020_p5 = pneg %p4019_p2 }
  0x59   : > { %p4027_p10 = pnand %p4026_p4, %p4020_p5 }
  0x5b   : > { %4030 = shalt.err (!%p4027_p10)
}
  0x5c   : > { %3714 = dma.hbm_to_vmem [thread:$0]  (!%p4532_p6), %s6483_s3, 16, %s4536_s19, [#allocation9]  }
  0x5d   : > { %s6484_s6 = sld [smem:[#allocation79_spill]] }
  0x63   : > { %s4031_s23 = scalar_lea.hbm %s6484_s6, 6144 }
  0x64   : > { %p4032_p11 = scmp.ne.s32.totalorder %s6484_s6, %s4031_s23  ;;  %p4038_p0 = scmp.lt.u32.totalorder %s4031_s23, %s6484_s6 }
  0x66   : > { %p4034_p12 = pnand %p4032_p11, %p4548_p8 }
  0x68   : > { %p4035_p13 = pneg %p4034_p12 }
  0x6a   : > { %p4040_p2 = pnand %p4038_p0, %p4035_p13 }
  0x6c   : > { %4043 = shalt.err (!%p4040_p2)
}
  0x6d   : > { %s4044_s19 = scalar_lea.vmem %s4538_s21, 6144  ;;  %p4052_p4 = scmp.lt.s32.totalorder %s4538_s21, %s4538_s21 }
  0x6e   : > { %p4045_p5 = scmp.ne.s32.totalorder %s4538_s21, %s4044_s19  ;;  %p4053_p10 = scmp.lt.s32.totalorder %s4044_s19, %s4044_s19 }
  0x70   : > { %p4047_p7 = pnand %p4045_p5, %p4548_p8  ;;  %p4054_p11 = por %p4053_p10, %p4052_p4 }
  0x72   : > { %p4048_p9 = pneg %p4047_p7 }
  0x74   : > { %p4055_p12 = pnand %p4054_p11, %p4048_p9 }
  0x76   : > { %4058 = shalt.err (!%p4055_p12)
}
  0x77   : > { %s4388_s13 = smov 384   ;;  %s4389_s8 = smov 24  }
  0x78   : > { %3720 = dma.hbm_to_vmem [thread:$0]  (!%p4532_p6), %s6484_s6, 6144, %s4538_s21, [#allocation12], %s4388_s13, %s4388_s13, %s4389_s8  }
  0x79   : > { %s4390_s22 = smov [#allocation10]   ;;  %s4391_s28 = smov [#allocation13]  }
  0x7a   : > { %s495_s23 = sshll.u32 %s4390_s22, 4  ;;  %s533_s20 = sshll.u32 %s4391_s28, 4  ;;  %s496_s23 = int_to_ptr.vmem [resolvable:$true] %s495_s23  ;;  %s534_s20 = int_to_ptr.vmem [resolvable:$true] %s533_s20 }
  0x7b   : > { %s6485_s4 = sld [smem:[#allocation77_spill]] }
  0x81   : > { %s4059_s19 = scalar_lea.hbm %s6485_s4, 2048 }
  0x82   : > { %p4060_p13 = scmp.ne.s32.totalorder %s6485_s4, %s4059_s19  ;;  %p4066_p5 = scmp.lt.u32.totalorder %s4059_s19, %s6485_s4 }
  0x84   : > { %p4062_p0 = pnand %p4060_p13, %p4548_p8 }
  0x86   : > { %p4063_p2 = pneg %p4062_p0 }
  0x88   : > { %p4068_p7 = pnand %p4066_p5, %p4063_p2 }
  0x8a   : > { %4071 = shalt.err (!%p4068_p7)
}
  0x8b   : > { %s4072_s21 = scalar_lea.vmem %s496_s23, 2048  ;;  %p4080_p11 = scmp.lt.s32.totalorder %s496_s23, %s496_s23 }
  0x8c   : > { %p4073_p9 = scmp.ne.s32.totalorder %s496_s23, %s4072_s21  ;;  %p4081_p12 = scmp.lt.s32.totalorder %s4072_s21, %s4072_s21 }
  0x8e   : > { %p4075_p4 = pnand %p4073_p9, %p4548_p8  ;;  %p4082_p1 = por %p4081_p12, %p4080_p11 }
  0x90   : > { %p4076_p10 = pneg %p4075_p4 }
  0x92   : > { %p4083_p3 = pnand %p4082_p1, %p4076_p10 }
  0x94   : > { %4086 = shalt.err (!%p4083_p3)
}
  0x95   : > { %s6486_s16 = smov 8   ;;  %s6487_s14 = smov 128  }
  0x96   : > { %3717 = dma.hbm_to_vmem [thread:$0]  (!%p4532_p6), %s6485_s4, 2048, %s496_s23, [#allocation9], %s6487_s14, %s6487_s14, %s6486_s16  }
  0x97   : > { %s6488_s10 = sld [smem:[#allocation83_spill]] }
  0x9d   : > { %s4087_s9 = scalar_lea.hbm %s6488_s10, 2048 }
  0x9e   : > { %p4088_p1 = scmp.ne.s32.totalorder %s6488_s10, %s4087_s9  ;;  %p4094_p0 = scmp.lt.u32.totalorder %s4087_s9, %s6488_s10 }
  0xa0   : > { %p4090_p3 = pnand %p4088_p1, %p4548_p8 }
  0xa2   : > { %p4091_p13 = pneg %p4090_p3 }
  0xa4   : > { %p4096_p2 = pnand %p4094_p0, %p4091_p13 }
  0xa6   : > { %4099 = shalt.err (!%p4096_p2)
}
  0xa7   : > { %s4100_s29 = scalar_lea.vmem %s534_s20, 2048  ;;  %p4108_p4 = scmp.lt.s32.totalorder %s534_s20, %s534_s20 }
  0xa8   : > { %p4101_p5 = scmp.ne.s32.totalorder %s534_s20, %s4100_s29  ;;  %p4109_p10 = scmp.lt.s32.totalorder %s4100_s29, %s4100_s29 }
  0xaa   : > { %p4103_p7 = pnand %p4101_p5, %p4548_p8  ;;  %p4110_p11 = por %p4109_p10, %p4108_p4 }
  0xac   : > { %p4104_p9 = pneg %p4103_p7 }
  0xae   : > { %p4111_p12 = pnand %p4110_p11, %p4104_p9 }
  0xb0   : > { %4114 = shalt.err (!%p4111_p12)
}
  0xb1   : > { %3723 = dma.hbm_to_vmem [thread:$0]  (!%p4532_p6), %s6488_s10, 2048, %s534_s20, [#allocation12], %s6487_s14, %s6487_s14, %s6486_s16  }
  0xb2   : > { %s4392_s21 = smov [#allocation14]   ;;  %s6489_s12 = sld [smem:[#allocation84_spill]] }
  0xb3   : > { %s549_s2 = sshll.u32 %s4392_s21, 4  ;;  %s550_s2 = int_to_ptr.vmem [resolvable:$true] %s549_s2 }
  0xb8   : > { %s4115_s8 = scalar_lea.hbm %s6489_s12, 2048 }
  0xb9   : > { %p4116_p1 = scmp.ne.s32.totalorder %s6489_s12, %s4115_s8  ;;  %p4122_p0 = scmp.lt.u32.totalorder %s4115_s8, %s6489_s12 }
  0xbb   : > { %p4118_p3 = pnand %p4116_p1, %p4548_p8 }
  0xbd   : > { %p4119_p13 = pneg %p4118_p3 }
  0xbf   : > { %p4124_p2 = pnand %p4122_p0, %p4119_p13 }
  0xc1   : > { %4127 = shalt.err (!%p4124_p2)
}
  0xc2   : > { %s4128_s20 = scalar_lea.vmem %s550_s2, 2048  ;;  %p4136_p4 = scmp.lt.s32.totalorder %s550_s2, %s550_s2 }
  0xc3   : > { %p4129_p5 = scmp.ne.s32.totalorder %s550_s2, %s4128_s20  ;;  %p4137_p10 = scmp.lt.s32.totalorder %s4128_s20, %s4128_s20 }
  0xc5   : > { %p4131_p7 = pnand %p4129_p5, %p4548_p8  ;;  %p4138_p11 = por %p4137_p10, %p4136_p4 }
  0xc7   : > { %p4132_p9 = pneg %p4131_p7 }
  0xc9   : > { %p4139_p12 = pnand %p4138_p11, %p4132_p9 }
  0xcb   : > { %4142 = shalt.err (!%p4139_p12)
}
  0xcc   : > { %3726 = dma.hbm_to_vmem [thread:$0]  (!%p4532_p6), %s6489_s12, 2048, %s550_s2, [#allocation15], %s6487_s14, %s6487_s14, %s6486_s16  }
  0xcd   : > { %s6394_s1 = sadd.s32 4294967294, %s4381_s27   ;;  %s4684_s18 = sadd.s32 1, %s4381_s27  }
  0xce   : > { %s50_s23 = ssub.s32 %s4381_s27, %s4684_s18  ;;  %s53_s19 = sadd.s32 1, %s4377_s26 }
  0xcf   : > { %p51_p8 = scmp.eq.s32.totalorder %s50_s23, 0  ;;  %p60_p1 = scmp.ne.s32.totalorder %s4377_s26, %s4373_s25 }
  0xd0   : > { %p61_p3 = scmp.eq.s32.totalorder %s4381_s27, 0  ;;  %p66_p13 = scmp.ne.s32.totalorder %s4373_s25, %s4369_s24 }
  0xd1   : > { %s4695_s21 = scalar_select %p51_p8, %s4377_s26, %s53_s19  }
  0xd2   : > { %p4697_p0 = por %p61_p3, %p60_p1  ;;  %p6492_p2 = scmp.eq.s32.totalorder %s4516_s0, 0 }
  0xd3   : > { %6490 = sst [smem:[#allocation32_spill]] %s4695_s21  ;;  %p368_p5 = scmp.eq.s32.totalorder %s4516_s0, 1 }
  0xd4   : > { %p4703_p6 = por %p6492_p2, %p66_p13  ;;  %p374_p7 = scmp.eq.s32.totalorder %s6394_s1, 1 }
  0xd5   : > { %p3753_p9 = scmp.lt.s32.totalorder %s4381_s27, 2  ;;  %s566_s13 = sand.u32 1, %s4377_s26  }
  0xd6   : > { %p4712_p4 = por %p368_p5, %p60_p1  ;;  %p4716_p10 = por %p374_p7, %p66_p13 }
  0xd7   : > { %s3219_s17 = sshll.u32 %s566_s13, 7  ;;  %s3313_s22 = sshll.u32 %s4381_s27, 11 }
  0xd8   : > { %s6494_s8 = scalar_select %p4712_p4, 1, 0 }
  0xd9   : > { %s6495_s9 = scalar_select %p4716_p10, 1, 0 }
  0xda   : > { %s6496_s15 = sld [smem:[#allocation73_spill]]  ;;  %s570_s23 = scalar_lea.vmem [#allocation2], %s3219_s17 }
  0xdb   : > { %s577_s19 = sshll.u32 %s570_s23, 4  ;;  %p4730_p11 = pnand %p3753_p9, %p4697_p0  ;;  %s4726_s19 = int_to_ptr.vmem [resolvable:$true] %s577_s19 }
  0xdc   : > { %s6498_s10 = sld [smem:[#allocation74_spill]]  ;;  %s591_s20 = scalar_lea.vmem [#allocation5], %s3219_s17 }
  0xdd   : > { %s4739_s12 = sshll.u32 %s591_s20, 4  ;;  %s4741_s21 = scalar_lea.sflag [#allocation3], %s566_s13  ;;  %s4773_s12 = int_to_ptr.vmem [resolvable:$true] %s4739_s12 }
  0xde   : > { %p4145_p8 = pneg %p4730_p11 }
  0xe0   : > { %s4724_s29 = scalar_lea.hbm %s6496_s15, %s3313_s22  ;;  %s4148_s4 = scalar_lea.hbm %s6496_s15, 4096 }
  0xe1   : > { %s4143_s23 = scalar_lea.hbm %s4724_s29, 2048  ;;  %p4149_p13 = scmp.lt.u32.totalorder %s4724_s29, %s6496_s15 }
  0xe2   : > { %s4737_s28 = scalar_lea.hbm %s6498_s10, %s3313_s22  ;;  %p4144_p12 = scmp.ne.s32.totalorder %s4724_s29, %s4143_s23 }
  0xe3   : > { %p4150_p0 = scmp.lt.u32.totalorder %s4148_s4, %s4143_s23  ;;  %p4152_p5 = scmp.lt.u32.totalorder %s4143_s23, %s4724_s29 }
  0xe4   : > { %p4146_p1 = pnand %p4145_p8, %p4144_p12 }
  0xe5   : > { %p4151_p2 = por %p4150_p0, %p4149_p13 }
  0xe6   : > { %p4147_p3 = pneg %p4146_p1 }
  0xe7   : > { %p4153_p7 = por %p4152_p5, %p4151_p2 }
  0xe9   : > { %p4154_p9 = pnand %p4153_p7, %p4147_p3 }
  0xeb   : > { %4157 = shalt.err (!%p4154_p9)
}
  0xec   : > { %s4158_s13 = scalar_lea.vmem %s4726_s19, 2048  ;;  %s4393_s26 = smov [#allocation2]  }
  0xed   : > { %p4159_p12 = scmp.ne.s32.totalorder %s4726_s19, %s4158_s13  ;;  %s4163_s17 = sshll.u32 %s4393_s26, 4  ;;  %s4164_s17 = int_to_ptr.vmem [resolvable:$false] %s4163_s17 }
  0xee   : > { %s4165_s20 = scalar_lea.vmem %s4164_s17, 4096  ;;  %p4166_p4 = scmp.lt.s32.totalorder %s4726_s19, %s4164_s17 }
  0xef   : > { %p4161_p1 = pnand %p4159_p12, %p4145_p8  ;;  %p4167_p13 = scmp.lt.s32.totalorder %s4165_s20, %s4158_s13 }
  0xf1   : > { %p4162_p10 = pneg %p4161_p1  ;;  %p4168_p0 = por %p4167_p13, %p4166_p4 }
  0xf3   : > { %p4169_p2 = pnand %p4168_p0, %p4162_p10 }
  0xf5   : > { %4172 = shalt.err (!%p4169_p2)
}
  0xf6   : > { %3730 = dma.hbm_to_vmem [thread:$0]  (!%p4730_p11), %s4724_s29, 2048, %s4726_s19, %s4741_s21, %s6487_s14, %s6487_s14, %s6486_s16  }
  0xf7   : > { %s587_s23 = sand.u32 1, %s4381_s27   ;;  %s4173_s4 = scalar_lea.hbm %s4737_s28, 2048 }
  0xf8   : > { %s4776_s3 = scalar_lea.sflag [#allocation6], %s587_s23  ;;  %p4174_p4 = scmp.ne.s32.totalorder %s4737_s28, %s4173_s4 }
  0xf9   : > { %s4178_s13 = scalar_lea.hbm %s6498_s10, 4096  ;;  %p4179_p5 = scmp.lt.u32.totalorder %s4737_s28, %s6498_s10 }
  0xfa   : > { %p4176_p10 = pnand %p4174_p4, %p4145_p8  ;;  %p4180_p7 = scmp.lt.u32.totalorder %s4178_s13, %s4173_s4 }
  0xfb   : > { %p4182_p12 = scmp.lt.u32.totalorder %s4173_s4, %s4737_s28 }
  0xfc   : > { %p4177_p3 = pneg %p4176_p10  ;;  %p4181_p9 = por %p4180_p7, %p4179_p5 }
  0xfe   : > { %p4183_p1 = por %p4182_p12, %p4181_p9 }
 0x100   : > { %p4184_p13 = pnand %p4183_p1, %p4177_p3 }
 0x102   : > { %4187 = shalt.err (!%p4184_p13)
}
 0x103   : > { %s4188_s21 = scalar_lea.vmem %s4773_s12, 2048  ;;  %s4394_s29 = smov [#allocation5]  }
 0x104   : > { %p4189_p0 = scmp.ne.s32.totalorder %s4773_s12, %s4188_s21  ;;  %s4193_s19 = sshll.u32 %s4394_s29, 4  ;;  %s4194_s19 = int_to_ptr.vmem [resolvable:$false] %s4193_s19 }
 0x105   : > { %s4195_s20 = scalar_lea.vmem %s4194_s19, 4096  ;;  %p4196_p10 = scmp.lt.s32.totalorder %s4773_s12, %s4194_s19 }
 0x106   : > { %p4191_p2 = pnand %p4189_p0, %p4145_p8  ;;  %p4197_p5 = scmp.lt.s32.totalorder %s4195_s20, %s4188_s21 }
 0x108   : > { %p4192_p4 = pneg %p4191_p2  ;;  %p4198_p7 = por %p4197_p5, %p4196_p10 }
 0x10a   : > { %p4199_p9 = pnand %p4198_p7, %p4192_p4 }
 0x10c   : > { %4202 = shalt.err (!%p4199_p9)
}
 0x10d   : > { %3733 = dma.hbm_to_vmem [thread:$0]  (!%p4730_p11), %s4737_s28, 2048, %s4773_s12, %s4776_s3, %s6487_s14, %s6487_s14, %s6486_s16  }
 0x10e   : > { %p6499_p8 = scmp.ne.s32.totalorder %s6479_s30, 0 }
 0x110   : > { %610 = sbr.rel (%p6499_p8) target bundleno = 1508 (0x5e4), region = 76 }
 0x117   : > { %s4808_s23 = sand.u32 1, %s4373_s25  }
 0x118   : > { %s4811_s4 = sshll.u32 %s4808_s23, 7  ;;  %s613_s1 = scalar_lea.sflag [#allocation3], %s4808_s23 }
 0x119   : > { %s4815_s6 = scalar_lea.vmem [#allocation2], %s4811_s4 }
 0x11a   : > { %4332 = dma.done.wait (%p4703_p6), %s613_s1, 2048  }
 0x11b   : > { %4334 = vsyncadd (%p4703_p6), %s613_s1, 4294965248  ;;  %s6455_s12 = sand.u32 1, %s4516_s0   ;;  %s4825_s16 = scalar_lea.vmem [#allocation5], %s4811_s4 }
 0x11c   : > { %s622_s30 = scalar_lea.sflag [#allocation6], %s6455_s12 }
 0x11d   : > { %4336 = dma.done.wait (%p4703_p6), %s622_s30, 2048  }
 0x11e   : > { %4338 = vsyncadd (%p4703_p6), %s622_s30, 4294965248  ;;  %p6500_p11 = scmp.eq.s32.totalorder %s4516_s0, 0 }
 0x120   : > { %4340 = dma.done.wait (%p6500_p11), [#allocation6], 2048   ;;  %p6501_p3 = pmov %p6500_p11 }
 0x122   : > { %4342 = vsyncadd (%p6501_p3), [#allocation6], 4294965248  ;;  %p6502_p12 = pmov %p6501_p3 }
 0x123   : > { %p6503_p1 = pmov %p6501_p3 }
 0x124   : > { %4344 = dma.done.wait (%p6502_p12), [#allocation9], 2064  }
 0x125   : > { %4346 = vsyncadd (%p6503_p1), [#allocation9], 4294965232  ;;  %p6504_p13 = pmov %p6503_p1 }
 0x126   : > { %p6505_p0 = pmov %p6503_p1 }
 0x127   : > { %4348 = dma.done.wait (%p6504_p13), [#allocation12], 8192  }
 0x128   : > { %4350 = vsyncadd (%p6505_p0), [#allocation12], 4294959104  ;;  %p6506_p6 = pmov %p6505_p0 }
 0x129   : > { %p6507_p2 = pmov %p6505_p0 }
 0x12a   : > { %4352 = dma.done.wait (%p6506_p6), [#allocation15], 2048  }
 0x12b   : > { %4354 = vsyncadd (%p6507_p2), [#allocation15], 4294965248  ;;  %v751_v0 = vld [vmem:[#allocation7] sm:$0xff]  ;;  %v752_v1 = vld [vmem:[#allocation7 + $0x8] sm:$0xff]  ;;  %s6508_s5 = sld [smem:[#allocation78_spill]]  ;;  %s6509_s7 = sld [smem:[#allocation80_spill]] }
 0x12c   : > { %v753_v2 = vld [vmem:[#allocation7 + $0x10] sm:$0xff]  ;;  %v767_v3 = vpack.c.bf16 %v752_v1, %v751_v0  ;;  %v754_v4 = vld [vmem:[#allocation7 + $0x18] sm:$0xff]  ;;  %v755_v6 = vld [vmem:[#allocation7 + $0x20] sm:$0xff]  ;;  %s6586_s21 = sld [smem:[#allocation81_spill]]  ;;  %s6587_s20 = sld [smem:[#allocation82_spill]] }
 0x12d   : > { %v768_v5 = vpack.c.bf16 %v754_v4, %v753_v2  ;;  %v756_v7 = vld [vmem:[#allocation7 + $0x28] sm:$0xff]  ;;  %v727_v9 = vld [vmem:[%s4815_s6] sm:$0xff]  ;;  %v757_v11 = vld [vmem:[#allocation7 + $0x30] sm:$0xff]  ;;  %s6588_s14 = sld [smem:[#allocation85_spill]]  ;;  %s5797_s3 = scalar_lea.vmem [#allocation20], %s4811_s4 }
 0x12e   : > { %3496 = vmatprep.subr.bf16.mxu0 %v767_v3  ;;  %v769_v8 = vpack.c.bf16 %v756_v7, %v755_v6  ;;  %v728_v10 = vld [vmem:[%s4815_s6 + $0x8] sm:$0xff]  ;;  %v758_v12 = vld [vmem:[#allocation7 + $0x38] sm:$0xff]  ;;  %v759_v15 = vld [vmem:[#allocation7 + $0x40] sm:$0xff]  ;;  %s5821_s22 = scalar_lea.vmem [#allocation16], %s4811_s4  ;;  %s5833_s13 = scalar_lea.vmem [#allocation17], %s4811_s4 }
 0x12f   : > { %3497 = vmatpush3.bf16.msra.mxu0 %v767_v3  ;;  %v4849_v13 = vpack.c.bf16 %v728_v10, %v727_v9  ;;  %v770_v14 = vpack.c.bf16 %v758_v12, %v757_v11  ;;  %v760_v16 = vld [vmem:[#allocation7 + $0x48] sm:$0xff]  ;;  %v905_v19 = vld [vmem:[#allocation10 + $0x10] sm:$0xff]  ;;  %v906_v20 = vld [vmem:[#allocation10 + $0x18] sm:$0xff]  ;;  %s5883_s17 = sshll.u32 %s4516_s0, 11  ;;  %s6590_s30 = sld [smem:[#allocation89_spill]] }
 0x130   : > { %3498 = vmatprep.subr.bf16.mxu0 %v768_v5  ;;  %v903_v17 = vld [vmem:[#allocation10] sm:$0xff]  ;;  %v904_v18 = vld [vmem:[#allocation10 + $0x8] sm:$0xff]  ;;  %v920_v22 = vpack.c.bf16 %v906_v20, %v905_v19  ;;  %v771_v23 = vpack.c.bf16 %v760_v16, %v759_v15  ;;  %v762_v27 = vld [vmem:[#allocation7 + $0x58] sm:$0xff]  ;;  %s3236_s2 = sshll.u32 %s4808_s23, 6  ;;  %s2901_s28 = scalar_lea.sflag [#allocation21], %s4808_s23 }
 0x131   : > { %3512 = vmatprep.mubr.bf16.mxu0 %v4849_v13  ;;  %v919_v21 = vpack.c.bf16 %v904_v18, %v903_v17  ;;  %v907_v24 = vld [vmem:[#allocation10 + $0x20] sm:$0xff]  ;;  %v908_v25 = vld [vmem:[#allocation10 + $0x28] sm:$0xff]  ;;  %v909_v30 = vld [vmem:[#allocation10 + $0x30] sm:$0xff]  ;;  %p6592_p10 = scmp.ne.s32.totalorder %s6494_s8, 0  ;;  %s4397_s4 = smov [#allocation20]  }
 0x132   : > { %v761_v26 = vld [vmem:[#allocation7 + $0x50] sm:$0xff]  ;;  %v921_v28 = vpack.c.bf16 %v908_v25, %v907_v24  ;;  %v910_v31 = vld [vmem:[#allocation10 + $0x38] sm:$0xff]  ;;  %v764_v33 = vld [vmem:[#allocation7 + $0x68] sm:$0xff]  ;;  %s4207_s26 = sshll.u32 %s4397_s4, 4  ;;  %s4208_s26 = int_to_ptr.vmem [resolvable:$false] %s4207_s26 }
 0x133   : > { %3499 = vmatpush3.bf16.msra.mxu0 %v768_v5  ;;  %3528 = vmatprep.subr.bf16.mxu1 %v919_v21  ;;  %v772_v29 = vpack.c.bf16 %v762_v27, %v761_v26  ;;  %v763_v32 = vld [vmem:[#allocation7 + $0x60] sm:$0xff]  ;;  %v922_v34 = vpack.c.bf16 %v910_v31, %v909_v30  ;;  %v912_v37 = vld [vmem:[#allocation10 + $0x48] sm:$0xff]  ;;  %v766_v39 = vld [vmem:[#allocation7 + $0x78] sm:$0xff]  ;;  %s4209_s29 = scalar_lea.vmem %s4208_s26, 4096 }
 0x134   : > { %3500 = vmatprep.subr.bf16.mxu0 %v769_v8  ;;  %3529 = vmatpush3.bf16.msra.mxu1 %v919_v21  ;;  %v773_v35 = vpack.c.bf16 %v764_v33, %v763_v32  ;;  %v911_v36 = vld [vmem:[#allocation10 + $0x40] sm:$0xff]  ;;  %v765_v38 = vld [vmem:[#allocation7 + $0x70] sm:$0xff]  ;;  %v914_v43 = vld [vmem:[#allocation10 + $0x58] sm:$0xff] }
 0x135   : > { %3530 = vmatprep.subr.bf16.mxu1 %v920_v22  ;;  %v923_v40 = vpack.c.bf16 %v912_v37, %v911_v36  ;;  %v774_v41 = vpack.c.bf16 %v766_v39, %v765_v38  ;;  %v913_v42 = vld [vmem:[#allocation10 + $0x50] sm:$0xff]  ;;  %v731_v47 = vld [vmem:[%s4815_s6 + $0x20] sm:$0xff]  ;;  %v732_v48 = vld [vmem:[%s4815_s6 + $0x28] sm:$0xff] }
 0x136   : > { %v729_v44 = vld [vmem:[%s4815_s6 + $0x10] sm:$0xff]  ;;  %v730_v45 = vld [vmem:[%s4815_s6 + $0x18] sm:$0xff]  ;;  %v924_v46 = vpack.c.bf16 %v914_v43, %v913_v42  ;;  %v4858_v50 = vpack.c.bf16 %v732_v48, %v731_v47  ;;  %v735_v53 = vld [vmem:[%s4815_s6 + $0x40] sm:$0xff] }
 0x137   : > { %3501 = vmatpush3.bf16.msra.mxu0 %v769_v8  ;;  %v4856_v49 = vpack.c.bf16 %v730_v45, %v729_v44  ;;  %v733_v51 = vld [vmem:[%s4815_s6 + $0x30] sm:$0xff]  ;;  %v734_v52 = vld [vmem:[%s4815_s6 + $0x38] sm:$0xff]  ;;  %v736_v54 = vld [vmem:[%s4815_s6 + $0x48] sm:$0xff] }
 0x138   : > { %3502 = vmatprep.subr.bf16.mxu0 %v770_v14  ;;  %3531 = vmatpush3.bf16.msra.mxu1 %v920_v22  ;;  %v4866_v55 = vpack.c.bf16 %v734_v52, %v733_v51  ;;  %v4868_v56 = vpack.c.bf16 %v736_v54, %v735_v53  ;;  %v737_v57 = vld [vmem:[%s4815_s6 + $0x50] sm:$0xff]  ;;  %v738_v58 = vld [vmem:[%s4815_s6 + $0x58] sm:$0xff]  ;;  %v739_v59 = vld [vmem:[%s4815_s6 + $0x60] sm:$0xff] }
 0x139   : > { %3532 = vmatprep.subr.bf16.mxu1 %v921_v28  ;;  %v740_v60 = vld [vmem:[%s4815_s6 + $0x68] sm:$0xff]  ;;  %v4876_v61 = vpack.c.bf16 %v738_v58, %v737_v57  ;;  %v741_v63 = vld [vmem:[%s4815_s6 + $0x70] sm:$0xff]  ;;  %v742_v0 = vld [vmem:[%s4815_s6 + $0x78] sm:$0xff] }
 0x13a   : > { %v4878_v62 = vpack.c.bf16 %v740_v60, %v739_v59  ;;  %v4884_v1 = vpack.c.bf16 %v742_v0, %v741_v63  ;;  %v915_v2 = vld [vmem:[#allocation10 + $0x60] sm:$0xff]  ;;  %v916_v3 = vld [vmem:[#allocation10 + $0x68] sm:$0xff]  ;;  %v917_v5 = vld [vmem:[#allocation10 + $0x70] sm:$0xff] }
 0x13b   : > { %3503 = vmatpush3.bf16.msra.mxu0 %v770_v14  ;;  %v925_v4 = vpack.c.bf16 %v916_v3, %v915_v2  ;;  %v918_v6 = vld [vmem:[#allocation10 + $0x78] sm:$0xff]  ;;  %v1040_v8 = vld [vmem:[#allocation11 + $0x8] sm:$0xff]  ;;  %v1043_v9 = vld [vmem:[#allocation11 + $0x20] sm:$0xff] }
 0x13c   : > { %3504 = vmatprep.subr.bf16.mxu0 %v771_v23  ;;  %3533 = vmatpush3.bf16.msra.mxu1 %v921_v28  ;;  %v926_v7 = vpack.c.bf16 %v918_v6, %v917_v5  ;;  %v1039_v10 = vld [vmem:[#allocation11] sm:$0xff]  ;;  %v1088_v11 = vpack.c.bf16 %v1043_v9, %v1040_v8  ;;  %v1042_v12 = vld [vmem:[#allocation11 + $0x18] sm:$0xff]  ;;  %v1041_v14 = vld [vmem:[#allocation11 + $0x10] sm:$0xff] }
 0x13d   : > { %3534 = vmatprep.subr.bf16.mxu1 %v922_v34  ;;  %v1044_v15 = vld [vmem:[#allocation11 + $0x28] sm:$0xff]  ;;  %v1087_v16 = vpack.c.bf16 %v1042_v12, %v1039_v10  ;;  %v1046_v18 = vld [vmem:[#allocation11 + $0x38] sm:$0xff]  ;;  %v1049_v19 = vld [vmem:[#allocation11 + $0x50] sm:$0xff] }
 0x13e   : > { %v4887_v17 = vpack.c.bf16 %v1044_v15, %v1041_v14  ;;  %v1045_v20 = vld [vmem:[#allocation11 + $0x30] sm:$0xff]  ;;  %v1091_v21 = vpack.c.bf16 %v1049_v19, %v1046_v18  ;;  %v1048_v22 = vld [vmem:[#allocation11 + $0x48] sm:$0xff]  ;;  %v1055_v25 = vld [vmem:[#allocation11 + $0x80] sm:$0xff] }
 0x13f   : > { %3505 = vmatpush3.bf16.msra.mxu0 %v771_v23  ;;  %v1090_v23 = vpack.c.bf16 %v1048_v22, %v1045_v20  ;;  %v1052_v24 = vld [vmem:[#allocation11 + $0x68] sm:$0xff]  ;;  %v1051_v27 = vld [vmem:[#allocation11 + $0x60] sm:$0xff]  ;;  %v1054_v28 = vld [vmem:[#allocation11 + $0x78] sm:$0xff] }
 0x140   : > { %3506 = vmatprep.subr.bf16.mxu0 %v772_v29  ;;  %3535 = vmatpush3.bf16.msra.mxu1 %v922_v34  ;;  %v1094_v26 = vpack.c.bf16 %v1055_v25, %v1052_v24  ;;  %v1061_v30 = vld [vmem:[#allocation11 + $0xb0] sm:$0xff]  ;;  %v1093_v31 = vpack.c.bf16 %v1054_v28, %v1051_v27  ;;  %v1060_v34 = vld [vmem:[#allocation11 + $0xa8] sm:$0xff]  ;;  %v1067_v36 = vld [vmem:[#allocation11 + $0xe0] sm:$0xff] }
 0x141   : > { %3536 = vmatprep.subr.bf16.mxu1 %v923_v40  ;;  %v1057_v33 = vld [vmem:[#allocation11 + $0x90] sm:$0xff]  ;;  %v1063_v39 = vld [vmem:[#allocation11 + $0xc0] sm:$0xff]  ;;  %v1076_v47 = vld [vmem:[#allocation11 + $0x128] sm:$0xff] }
 0x142   : > { %v1096_v37 = vpack.c.bf16 %v1060_v34, %v1057_v33  ;;  %v1073_v42 = vld [vmem:[#allocation11 + $0x110] sm:$0xff]  ;;  %v1079_v48 = vld [vmem:[#allocation11 + $0x140] sm:$0xff]  ;;  %v4890_v53 = vld [vmem:[#allocation8] ss:$0 sm:$0xff] }
 0x143   : > { %3507 = vmatpush3.bf16.msra.mxu0 %v772_v29  ;;  %v1058_v29 = vld [vmem:[#allocation11 + $0x98] sm:$0xff]  ;;  %v1069_v45 = vld [vmem:[#allocation11 + $0xf0] sm:$0xff]  ;;  %v1106_v52 = vpack.c.bf16 %v1079_v48, %v1076_v47  ;;  %v1056_v20 = vld [vmem:[#allocation11 + $0x88] sm:$0xff] }
 0x144   : > { %3508 = vmatprep.subr.bf16.mxu0 %v773_v35  ;;  %3537 = vmatpush3.bf16.msra.mxu1 %v923_v40  ;;  %v1097_v32 = vpack.c.bf16 %v1061_v30, %v1058_v29  ;;  %v1066_v40 = vld [vmem:[#allocation11 + $0xd8] sm:$0xff]  ;;  %v1053_v19 = vld [vmem:[#allocation11 + $0x70] sm:$0xff]  ;;  %v1059_v29 = vld [vmem:[#allocation11 + $0xa0] sm:$0xff] }
 0x145   : > { %3538 = vmatprep.subr.bf16.mxu1 %v924_v46  ;;  %v1099_v43 = vpack.c.bf16 %v1066_v40, %v1063_v39  ;;  %v1050_v8 = vld [vmem:[#allocation11 + $0x58] sm:$0xff]  ;;  %v1095_v27 = vpack.c.bf16 %v1056_v20, %v1053_v19  ;;  %v1068_v39 = vld [vmem:[#allocation11 + $0xe8] sm:$0xff]  ;;  %v1071_v48 = vld [vmem:[#allocation11 + $0x100] sm:$0xff] }
 0x146   : > { %v1062_v30 = vld [vmem:[#allocation11 + $0xb8] sm:$0xff]  ;;  %v1085_v20 = vld [vmem:[#allocation11 + $0x170] sm:$0xff] }
 0x147   : > { %3509 = vmatpush3.bf16.msra.mxu0 %v773_v35  ;;  %v1064_v35 = vld [vmem:[#allocation11 + $0xc8] sm:$0xff]  ;;  %v1082_v19 = vld [vmem:[#allocation11 + $0x158] sm:$0xff] }
 0x148   : > { %3510 = vmatprep.subr.bf16.mxu0 %v774_v41  ;;  %3539 = vmatpush3.bf16.msra.mxu1 %v924_v46  ;;  %v1100_v38 = vpack.c.bf16 %v1067_v36, %v1064_v35  ;;  %v1072_v46 = vld [vmem:[#allocation11 + $0x108] sm:$0xff]  ;;  %v1098_v36 = vpack.c.bf16 %v1062_v30, %v1059_v29 }
 0x149   : > { %3540 = vmatprep.subr.bf16.mxu1 %v925_v4  ;;  %v1102_v51 = vpack.c.bf16 %v1072_v46, %v1069_v45  ;;  %v2118_v29 = vld [vmem:[#allocation13 + $0x8] sm:$0xff] }
 0x14b   : > { %3511 = vmatpush3.bf16.msra.mxu0 %v774_v41  ;;  %v1070_v41 = vld [vmem:[#allocation11 + $0xf8] sm:$0xff] }
 0x14c   : > { %3541 = vmatpush3.bf16.msra.mxu1 %v925_v4  ;;  %1128 = vmatprep.subr.bf16.mxu0 %v1088_v11  ;;  %v1103_v44 = vpack.c.bf16 %v1073_v42, %v1070_v41 }
 0x14d   : > { %3542 = vmatprep.subr.bf16.mxu1 %v926_v7 }
 0x14e   : > { %3513 = vmatmul.mubr.bf16.vlgmr.msra.gmra.mrb[0].mxu0 %v4856_v49 }
 0x14f   : > { %3516 = vmatprep.mubr.bf16.mxu0 %v4858_v50  ;;  %1129 = vmatpush1.bf16.msra.mxu0 %v1087_v16 }
 0x150   : > { %3543 = vmatpush3.bf16.msra.mxu1 %v926_v7  ;;  %1130 = vmatprep.subr.bf16.mxu0 %v1091_v21  ;;  %v1047_v7 = vld [vmem:[#allocation11 + $0x40] sm:$0xff] }
 0x151   : > { %3560 = vmatprep.subr.bf16.mxu1 %v4887_v17  ;;  %v1092_v15 = vpack.c.bf16 %v1050_v8, %v1047_v7 }
 0x153   : > { %1131 = vmatpush1.bf16.msra.mxu0 %v1090_v23 }
 0x154   : > { %1132 = vmatprep.subr.bf16.mxu0 %v1094_v26 }
 0x156   : > { %3517 = vmatmul.mubr.bf16.gmra.mrb[4].mxu0 %v4866_v55 }
 0x157   : > { %3520 = vmatprep.mubr.bf16.mxu0 %v4868_v56  ;;  %1133 = vmatpush1.bf16.msra.mxu0 %v1093_v31 }
 0x158   : > { %1134 = vmatprep.subr.bf16.mxu0 %v1097_v32 }
 0x15b   : > { %1135 = vmatpush1.bf16.msra.mxu0 %v1096_v37 }
 0x15c   : > { %1136 = vmatprep.subr.bf16.mxu0 %v1100_v38 }
 0x15e   : > { %3521 = vmatmul.mubr.bf16.gmra.mrb[8].mxu0 %v4876_v61 }
 0x15f   : > { %3524 = vmatprep.mubr.bf16.mxu0 %v4878_v62  ;;  %1137 = vmatpush1.bf16.msra.mxu0 %v1099_v43 }
 0x160   : > { %1138 = vmatprep.subr.bf16.mxu0 %v1103_v44 }
 0x163   : > { %1139 = vmatpush1.bf16.msra.mxu0 %v1102_v51  ;;  %v1074_v51 = vld [vmem:[#allocation11 + $0x118] sm:$0xff] }
 0x164   : > { %1140 = vmatprep.subr.bf16.mxu0 %v1106_v52 }
 0x166   : > { %3525 = vmatmul.mubr.bf16.gmra.mrb[12].mxu0 %v4884_v1 }
 0x221   : > { %v3514_v54 = vpop.f32.mrb[0].mxu0 }
 0x222   : > { %v825_v57 = vadd.f32 %v3514_v54, %v4890_v53  ;;  %v816_v58 = vpop.f32.mrb[1].mxu0 }
 0x223   : > { %v817_v59 = vadd.f32 %v4890_v53, %v816_v58  ;;  %v3515_v60 = vpop.f32.mrb[2].mxu0 }
 0x224   : > { %v828_v63 = vadd.f32 %v3515_v60, %v4890_v53  ;;  %v819_v0 = vpop.f32.mrb[3].mxu0  ;;  %v881_v3 = vmax.f32 %v825_v57, 0.0  ;;  %v1104_v60 = vpack.c.bf16 %v1074_v51, %v1071_v48 }
 0x225   : > { %v820_v2 = vadd.f32 %v4890_v53, %v819_v0  ;;  %v879_v5 = vmax.f32 %v817_v59, 0.0 }
 0x226   : > { %v882_v4 = vmax.f32 %v828_v63, 0.0 }
 0x227   : > { %v880_v6 = vmax.f32 %v820_v2, 0.0 }
 0x228   : > { %v896_v9 = vpack.c.bf16 %v882_v4, %v881_v3 }
 0x229   : > { %v895_v10 = vpack.c.bf16 %v880_v6, %v879_v5  ;;  %v3518_v11 = vpop.f32.mrb[4].mxu0 }
 0x22a   : > { %v841_v12 = vadd.f32 %v3518_v11, %v4890_v53  ;;  %v832_v14 = vpop.f32.mrb[5].mxu0  ;;  %v1075_v11 = vld [vmem:[#allocation11 + $0x120] sm:$0xff] }
 0x22b   : > { %3544 = vmatprep.mubr.bf16.mxu1 %v895_v10  ;;  %v833_v16 = vadd.f32 %v4890_v53, %v832_v14  ;;  %v3519_v18 = vpop.f32.mrb[6].mxu0  ;;  %v1077_v14 = vld [vmem:[#allocation11 + $0x130] sm:$0xff] }
 0x22c   : > { %3545 = vmatmul.mubr.bf16.vlgmr.msra.gmra.mrb[0].mxu1 %v896_v9  ;;  %v885_v21 = vmax.f32 %v841_v12, 0.0  ;;  %v844_v22 = vadd.f32 %v3519_v18, %v4890_v53  ;;  %v835_v23 = vpop.f32.mrb[7].mxu0  ;;  %v1078_v12 = vld [vmem:[#allocation11 + $0x138] sm:$0xff] }
 0x22d   : > { %v883_v24 = vmax.f32 %v833_v16, 0.0  ;;  %v836_v25 = vadd.f32 %v4890_v53, %v835_v23  ;;  %3561 = vmatpush3.bf16.msra.mxu1 %v4887_v17  ;;  %v1065_v17 = vld [vmem:[#allocation11 + $0xd0] sm:$0xff]  ;;  %v1080_v16 = vld [vmem:[#allocation11 + $0x148] sm:$0xff]  ;;  %v1083_v23 = vld [vmem:[#allocation11 + $0x160] sm:$0xff] }
 0x22e   : > { %v886_v26 = vmax.f32 %v844_v22, 0.0  ;;  %3562 = vmatprep.subr.bf16.mxu1 %v1092_v15  ;;  %v1101_v46 = vpack.c.bf16 %v1068_v39, %v1065_v17  ;;  %v1107_v18 = vpack.c.bf16 %v1080_v16, %v1077_v14  ;;  %v1084_v22 = vld [vmem:[#allocation11 + $0x168] sm:$0xff]  ;;  %v2119_v39 = vld [vmem:[#allocation13 + $0x10] sm:$0xff] }
 0x22f   : > { %v884_v28 = vmax.f32 %v836_v25, 0.0  ;;  %v1086_v25 = vld [vmem:[#allocation11 + $0x178] sm:$0xff]  ;;  %v2127_v16 = vld [vmem:[#allocation13 + $0x50] sm:$0xff] }
 0x230   : > { %v898_v31 = vpack.c.bf16 %v886_v26, %v885_v21  ;;  %v1081_v21 = vld [vmem:[#allocation11 + $0x150] sm:$0xff]  ;;  %v1110_v26 = vpack.c.bf16 %v1086_v25, %v1083_v23  ;;  %v2130_v23 = vld [vmem:[#allocation13 + $0x68] sm:$0xff] }
 0x231   : > { %v897_v32 = vpack.c.bf16 %v884_v28, %v883_v24  ;;  %v3522_v33 = vpop.f32.mrb[8].mxu0  ;;  %3563 = vmatpush3.bf16.msra.mxu1 %v1092_v15  ;;  %v1105_v15 = vpack.c.bf16 %v1078_v12, %v1075_v11  ;;  %v1108_v24 = vpack.c.bf16 %v1084_v22, %v1081_v21  ;;  %v2117_v28 = vld [vmem:[#allocation13] sm:$0xff] }
 0x232   : > { %v857_v34 = vadd.f32 %v3522_v33, %v4890_v53  ;;  %v848_v35 = vpop.f32.mrb[9].mxu0  ;;  %3564 = vmatprep.subr.bf16.mxu1 %v1095_v27  ;;  %v2133_v30 = vpack.c.bf16 %v2118_v29, %v2117_v28  ;;  %v2129_v22 = vld [vmem:[#allocation13 + $0x60] sm:$0xff] }
 0x233   : > { %3548 = vmatprep.mubr.bf16.mxu1 %v897_v32  ;;  %v849_v37 = vadd.f32 %v4890_v53, %v848_v35  ;;  %v3523_v38 = vpop.f32.mrb[10].mxu0  ;;  %1141 = vmatpush1.bf16.msra.mxu0 %v1105_v15  ;;  %v4913_v32 = vld [vmem:[%s6508_s5] ss:$0 sm:$0xff] }
 0x234   : > { %3549 = vmatmul.mubr.bf16.gmra.mrb[4].mxu1 %v898_v31  ;;  %v889_v40 = vmax.f32 %v857_v34, 0.0  ;;  %v860_v41 = vadd.f32 %v3523_v38, %v4890_v53  ;;  %v851_v42 = vpop.f32.mrb[11].mxu0 }
 0x235   : > { %v887_v43 = vmax.f32 %v849_v37, 0.0  ;;  %v852_v44 = vadd.f32 %v4890_v53, %v851_v42  ;;  %3565 = vmatpush3.bf16.msra.mxu1 %v1095_v27  ;;  %v4395_v27 = vmov 0  }
 0x236   : > { %v890_v45 = vmax.f32 %v860_v41, 0.0  ;;  %3566 = vmatprep.subr.bf16.mxu1 %v1098_v36  ;;  %1160 = vmatprep.mubr.bf16.mxu0 %v4395_v27 }
 0x237   : > { %v888_v47 = vmax.f32 %v852_v44, 0.0 }
 0x238   : > { %v900_v52 = vpack.c.bf16 %v890_v45, %v889_v40  ;;  %v2120_v40 = vld [vmem:[#allocation13 + $0x18] sm:$0xff]  ;;  %v2121_v45 = vld [vmem:[#allocation13 + $0x20] sm:$0xff] }
 0x239   : > { %v899_v54 = vpack.c.bf16 %v888_v47, %v887_v43  ;;  %v3526_v57 = vpop.f32.mrb[12].mxu0  ;;  %3567 = vmatpush3.bf16.msra.mxu1 %v1098_v36  ;;  %v2134_v43 = vpack.c.bf16 %v2120_v40, %v2119_v39 }
 0x23a   : > { %v873_v58 = vadd.f32 %v3526_v57, %v4890_v53  ;;  %v864_v59 = vpop.f32.mrb[13].mxu0  ;;  %3568 = vmatprep.subr.bf16.mxu1 %v1101_v46 }
 0x23b   : > { %3552 = vmatprep.mubr.bf16.mxu1 %v899_v54  ;;  %v865_v63 = vadd.f32 %v4890_v53, %v864_v59  ;;  %v3527_v0 = vpop.f32.mrb[14].mxu0 }
 0x23c   : > { %3553 = vmatmul.mubr.bf16.gmra.mrb[8].mxu1 %v900_v52  ;;  %v893_v2 = vmax.f32 %v873_v58, 0.0  ;;  %v876_v3 = vadd.f32 %v3527_v0, %v4890_v53  ;;  %v867_v4 = vpop.f32.mrb[15].mxu0 }
 0x23d   : > { %v891_v5 = vmax.f32 %v865_v63, 0.0  ;;  %v868_v6 = vadd.f32 %v4890_v53, %v867_v4  ;;  %3569 = vmatpush3.bf16.msra.mxu1 %v1101_v46  ;;  %v1109_v53 = vpack.c.bf16 %v1085_v20, %v1082_v19  ;;  %v2122_v46 = vld [vmem:[#allocation13 + $0x28] sm:$0xff]  ;;  %v2124_v63 = vld [vmem:[#allocation13 + $0x38] sm:$0xff] }
 0x23e   : > { %v894_v7 = vmax.f32 %v876_v3, 0.0  ;;  %3570 = vmatprep.subr.bf16.mxu1 %v1104_v60  ;;  %v2135_v58 = vpack.c.bf16 %v2122_v46, %v2121_v45  ;;  %v2099_v46 = vld [vmem:[%s4825_s16 + $0x30] sm:$0xff] }
 0x23f   : > { %v892_v8 = vmax.f32 %v868_v6, 0.0  ;;  %1142 = vmatprep.subr.bf16.mxu0 %v1109_v53  ;;  %v2126_v6 = vld [vmem:[#allocation13 + $0x48] sm:$0xff] }
 0x240   : > { %v902_v9 = vpack.c.bf16 %v894_v7, %v893_v2  ;;  %1143 = vmatpush1.bf16.msra.mxu0 %v1108_v24 }
 0x241   : > { %v901_v10 = vpack.c.bf16 %v892_v8, %v891_v5  ;;  %3571 = vmatpush3.bf16.msra.mxu1 %v1104_v60  ;;  %v2123_v60 = vld [vmem:[#allocation13 + $0x30] sm:$0xff]  ;;  %v2125_v5 = vld [vmem:[#allocation13 + $0x40] sm:$0xff] }
 0x242   : > { %3572 = vmatprep.subr.bf16.mxu1 %v1107_v18  ;;  %v2136_v3 = vpack.c.bf16 %v2124_v63, %v2123_v60  ;;  %v2137_v14 = vpack.c.bf16 %v2126_v6, %v2125_v5  ;;  %v2106_v60 = vld [vmem:[%s4825_s16 + $0x68] sm:$0xff]  ;;  %v1113_v5 = vlaneseq }
 0x243   : > { %3556 = vmatprep.mubr.bf16.mxu1 %v901_v10 }
 0x244   : > { %3557 = vmatmul.mubr.bf16.gmra.mrb[12].mxu1 %v902_v9  ;;  %v1114_v6 = vshrl.u32 %v1113_v5, 7 }
 0x245   : > { %3573 = vmatpush3.bf16.msra.mxu1 %v1107_v18  ;;  %v2128_v18 = vld [vmem:[#allocation13 + $0x58] sm:$0xff] }
 0x246   : > { %3574 = vmatprep.subr.bf16.mxu1 %v1110_v26  ;;  %v2138_v53 = vpack.c.bf16 %v2128_v18, %v2127_v16 }
 0x249   : > { %3575 = vmatpush3.bf16.msra.mxu1 %v1110_v26 }
 0x24a   : > { %3592 = vmatprep.subr.bf16.mxu1 %v2133_v30 }
 0x2ff   : > { %v3546_v31 = vpop.f32.mrb[0].mxu1 }
 0x300   : > { %v968_v33 = vpop.f32.mrb[1].mxu1  ;;  %v977_v35 = vadd.f32 %v3546_v31, %v4913_v32  ;;  %v2139_v31 = vpack.c.bf16 %v2130_v23, %v2129_v22 }
 0x301   : > { %v3547_v34 = vpop.f32.mrb[2].mxu1  ;;  %v969_v38 = vadd.f32 %v4913_v32, %v968_v33  ;;  %v2093_v33 = vld [vmem:[%s4825_s16] sm:$0xff] }
 0x302   : > { %v980_v36 = vadd.f32 %v3547_v34, %v4913_v32  ;;  %v971_v37 = vpop.f32.mrb[3].mxu1  ;;  %v2094_v34 = vld [vmem:[%s4825_s16 + $0x8] sm:$0xff] }
 0x303   : > { %v972_v17 = vadd.f32 %v4913_v32, %v971_v37  ;;  %v2132_v37 = vld [vmem:[#allocation13 + $0x78] sm:$0xff]  ;;  %v2109_v39 = vpack.c.bf16 %v2094_v34, %v2093_v33 }
 0x304   : > { %v1032_v41 = vpack.c.bf16 %v980_v36, %v977_v35  ;;  %v2131_v36 = vld [vmem:[#allocation13 + $0x70] sm:$0xff] }
 0x305   : > { %v1031_v42 = vpack.c.bf16 %v972_v17, %v969_v38  ;;  %v2140_v40 = vpack.c.bf16 %v2132_v37, %v2131_v36 }
 0x307   : > { %1161 = vmatmul.mubr.bf16.vlgmr.msra.gmra.mrb[16].mxu0 %v1031_v42  ;;  %3576 = vmatprep.mubr.bf16.mxu1 %v1031_v42  ;;  %v3550_v44 = vpop.f32.mrb[4].mxu1  ;;  %v2097_v42 = vld [vmem:[%s4825_s16 + $0x20] sm:$0xff] }
 0x308   : > { %3577 = vmatmul.mubr.bf16.vlgmr.msra.gmra.mrb[16].mxu1 %v1032_v41  ;;  %v993_v47 = vadd.f32 %v3550_v44, %v4913_v32  ;;  %v984_v48 = vpop.f32.mrb[5].mxu1  ;;  %1170 = vmatprep.mubr.bf16.mxu0 %v4395_v27 }
 0x309   : > { %v985_v51 = vadd.f32 %v4913_v32, %v984_v48  ;;  %v3551_v52 = vpop.f32.mrb[6].mxu1  ;;  %3593 = vmatpush3.bf16.msra.mxu1 %v2133_v30  ;;  %v2101_v48 = vld [vmem:[%s4825_s16 + $0x40] sm:$0xff] }
 0x30a   : > { %v996_v54 = vadd.f32 %v3551_v52, %v4913_v32  ;;  %v987_v57 = vpop.f32.mrb[7].mxu1  ;;  %3594 = vmatprep.subr.bf16.mxu1 %v2134_v43 }
 0x30b   : > { %v988_v59 = vadd.f32 %v4913_v32, %v987_v57  ;;  %v2103_v57 = vld [vmem:[%s4825_s16 + $0x50] sm:$0xff] }
 0x30c   : > { %v1034_v0 = vpack.c.bf16 %v996_v54, %v993_v47  ;;  %v2100_v47 = vld [vmem:[%s4825_s16 + $0x38] sm:$0xff] }
 0x30d   : > { %v1033_v2 = vpack.c.bf16 %v988_v59, %v985_v51  ;;  %3595 = vmatpush3.bf16.msra.mxu1 %v2134_v43  ;;  %v2098_v43 = vld [vmem:[%s4825_s16 + $0x28] sm:$0xff]  ;;  %v2112_v52 = vpack.c.bf16 %v2100_v47, %v2099_v46  ;;  %v2105_v59 = vld [vmem:[%s4825_s16 + $0x60] sm:$0xff] }
 0x30e   : > { %3596 = vmatprep.subr.bf16.mxu1 %v2135_v58  ;;  %v2111_v45 = vpack.c.bf16 %v2098_v43, %v2097_v42  ;;  %v2102_v51 = vld [vmem:[%s4825_s16 + $0x48] sm:$0xff] }
 0x30f   : > { %1171 = vmatmul.mubr.bf16.gmra.mrb[20].mxu0 %v1032_v41  ;;  %3580 = vmatprep.mubr.bf16.mxu1 %v1033_v2  ;;  %v3554_v4 = vpop.f32.mrb[8].mxu1  ;;  %v2096_v41 = vld [vmem:[%s4825_s16 + $0x18] sm:$0xff]  ;;  %v2113_v54 = vpack.c.bf16 %v2102_v51, %v2101_v48 }
 0x310   : > { %3581 = vmatmul.mubr.bf16.gmra.mrb[20].mxu1 %v1034_v0  ;;  %1180 = vmatprep.mubr.bf16.mxu0 %v4395_v27  ;;  %v1009_v7 = vadd.f32 %v3554_v4, %v4913_v32  ;;  %v1000_v8 = vpop.f32.mrb[9].mxu1 }
 0x311   : > { %v1001_v9 = vadd.f32 %v4913_v32, %v1000_v8  ;;  %v3555_v10 = vpop.f32.mrb[10].mxu1  ;;  %3597 = vmatpush3.bf16.msra.mxu1 %v2135_v58  ;;  %v2104_v58 = vld [vmem:[%s4825_s16 + $0x58] sm:$0xff]  ;;  %v1339_v8 = vand.u32 127, %v1113_v5 }
 0x312   : > { %v1012_v11 = vadd.f32 %v3555_v10, %v4913_v32  ;;  %v1003_v12 = vpop.f32.mrb[11].mxu1  ;;  %3598 = vmatprep.subr.bf16.mxu1 %v2136_v3  ;;  %v2114_v63 = vpack.c.bf16 %v2104_v58, %v2103_v57 }
 0x313   : > { %v1004_v15 = vadd.f32 %v4913_v32, %v1003_v12  ;;  %vm1340_vm0 = vcmp.lt.s32.totalorder %v1339_v8, 32  ;;  %v1123_v12 = vsub.s32 2, %v1114_v6 }
 0x314   : > { %v1036_v19 = vpack.c.bf16 %v1012_v11, %v1009_v7  ;;  %v1115_v7 = vsub.s32 0, %v1114_v6 }
 0x315   : > { %v1035_v20 = vpack.c.bf16 %v1004_v15, %v1001_v9  ;;  %3599 = vmatpush3.bf16.msra.mxu1 %v2136_v3  ;;  %v2108_v3 = vld [vmem:[%s4825_s16 + $0x78] sm:$0xff]  ;;  %v1111_v9 = vld [vmem:[%s6509_s7] sm:$0x7]  ;;  %v4396_v15 = vmov 0.0  }
 0x316   : > { %3600 = vmatprep.subr.bf16.mxu1 %v2137_v14  ;;  %v4959_v10 = vrot.slane %v1111_v9, %v1115_v7 }
 0x317   : > { %1181 = vmatmul.mubr.bf16.gmra.mrb[24].mxu0 %v1033_v2  ;;  %3584 = vmatprep.mubr.bf16.mxu1 %v1035_v20  ;;  %v3558_v21 = vpop.f32.mrb[12].mxu1  ;;  %v2107_v2 = vld [vmem:[%s4825_s16 + $0x70] sm:$0xff] }
 0x318   : > { %1190 = vmatprep.mubr.bf16.mxu0 %v4395_v27  ;;  %3585 = vmatmul.mubr.bf16.gmra.mrb[24].mxu1 %v1036_v19  ;;  %v1025_v24 = vadd.f32 %v3558_v21, %v4913_v32  ;;  %v1016_v25 = vpop.f32.mrb[13].mxu1  ;;  %v2116_v4 = vpack.c.bf16 %v2108_v3, %v2107_v2  ;;  %v4971_v21 = vrot.slane %v1111_v9, %v1123_v12 }
 0x319   : > { %v1017_v26 = vadd.f32 %v4913_v32, %v1016_v25  ;;  %v3559_v28 = vpop.f32.mrb[14].mxu1  ;;  %3601 = vmatpush3.bf16.msra.mxu1 %v2137_v14 }
 0x31a   : > { %v1028_v29 = vadd.f32 %v3559_v28, %v4913_v32  ;;  %v1019_v30 = vpop.f32.mrb[15].mxu1  ;;  %3602 = vmatprep.subr.bf16.mxu1 %v2138_v53 }
 0x31b   : > { %v1020_v35 = vadd.f32 %v4913_v32, %v1019_v30  ;;  %v2095_v32 = vld [vmem:[%s4825_s16 + $0x10] sm:$0xff]  ;;  %s5902_s16 = scalar_lea.hbm %s6590_s30, %s5883_s17 }
 0x31c   : > { %v1038_v38 = vpack.c.bf16 %v1028_v29, %v1025_v24  ;;  %v2110_v44 = vpack.c.bf16 %v2096_v41, %v2095_v32 }
 0x31d   : > { %v1037_v17 = vpack.c.bf16 %v1020_v35, %v1017_v26  ;;  %3603 = vmatpush3.bf16.msra.mxu1 %v2138_v53 }
 0x31e   : > { %3604 = vmatprep.subr.bf16.mxu1 %v2139_v31 }
 0x31f   : > { %1191 = vmatmul.mubr.bf16.gmra.mrb[28].mxu0 %v1034_v0  ;;  %3588 = vmatprep.mubr.bf16.mxu1 %v1037_v17  ;;  %v2115_v0 = vpack.c.bf16 %v2106_v60, %v2105_v59 }
 0x320   : > { %1200 = vmatprep.mubr.bf16.mxu0 %v4395_v27  ;;  %3589 = vmatmul.mubr.bf16.gmra.mrb[28].mxu1 %v1038_v38 }
 0x321   : > { %3605 = vmatpush3.bf16.msra.mxu1 %v2139_v31  ;;  %3608 = vmatprep.mubr.bf16.mxu1 %v2109_v39 }
 0x322   : > { %3606 = vmatprep.subr.bf16.mxu1 %v2140_v40 }
 0x325   : > { %3607 = vmatpush3.bf16.msra.mxu1 %v2140_v40 }
 0x327   : > { %1201 = vmatmul.mubr.bf16.gmra.mrb[32].mxu0 %v1035_v20 }
 0x328   : > { %1210 = vmatprep.mubr.bf16.mxu0 %v4395_v27  ;;  %3609 = vmatmul.mubr.bf16.vlgmr.msra.gmra.mrb[32].mxu1 %v2110_v44 }
 0x329   : > { %3612 = vmatprep.mubr.bf16.mxu1 %v2111_v45 }
 0x32f   : > { %1211 = vmatmul.mubr.bf16.gmra.mrb[36].mxu0 %v1036_v19 }
 0x330   : > { %1220 = vmatprep.mubr.bf16.mxu0 %v4395_v27  ;;  %3613 = vmatmul.mubr.bf16.gmra.mrb[36].mxu1 %v2112_v52 }
 0x331   : > { %3616 = vmatprep.mubr.bf16.mxu1 %v2113_v54 }
 0x337   : > { %1221 = vmatmul.mubr.bf16.gmra.mrb[40].mxu0 %v1037_v17 }
 0x338   : > { %1230 = vmatprep.mubr.bf16.mxu0 %v4395_v27  ;;  %3617 = vmatmul.mubr.bf16.gmra.mrb[40].mxu1 %v2114_v63  ;;  %v1119_v27 = vsub.s32 1, %v1114_v6 }
 0x339   : > { %3620 = vmatprep.mubr.bf16.mxu1 %v2115_v0 }
 0x33a   : > { %v4961_v11 = vrot.slane %v1111_v9, %v1119_v27 }
 0x33f   : > { %1231 = vmatmul.mubr.bf16.gmra.mrb[44].mxu0 %v1038_v38 }
 0x340   : > { %3621 = vmatmul.mubr.bf16.gmra.mrb[44].mxu1 %v2116_v4  ;;  %3640 = vmatprep.mubr.bf16.mxu0 %v4849_v13  ;;  %v4963_v13 = vsel %vm1340_vm0, 1.0, %v4396_v15 }
 0x341   : > { %3648 = vmatprep.mubr.bf16.mxu1 %v4868_v56 }
 0x3da   : > { %v1162_v14 = vpop.f32.mrb[16].mxu0 }
 0x3db   : > { %v4966_v56 = vadd.f32 %v1162_v14, %v4959_v10  ;;  %v1164_v16 = vpop.f32.mrb[17].mxu0  ;;  %v3578_v18 = vpop.f32.mrb[16].mxu1 }
 0x3dc   : > { %v1166_v19 = vpop.f32.mrb[18].mxu0  ;;  %v1275_v20 = vpop.f32.mrb[17].mxu1  ;;  %v4969_v53 = vadd.f32 %v1164_v16, %v4961_v11  ;;  %v4984_v30 = vadd.f32 %v3578_v18, %v4971_v21 }
 0x3dd   : > { %v1168_v22 = vpop.f32.mrb[19].mxu0  ;;  %v3579_v23 = vpop.f32.mrb[18].mxu1  ;;  %v1345_v24 = vmul.f32 %v4963_v13, %v4966_v56  ;;  %v4994_v39 = vadd.f32 %v1166_v19, %v4959_v10  ;;  %v5004_v45 = vadd.f32 %v1275_v20, %v4971_v21 }
 0x3de   : > { %v4976_v25 = vadd.f32 %v1168_v22, %v4961_v11  ;;  %v1278_v26 = vpop.f32.mrb[19].mxu1  ;;  %v4979_v28 = vadd.f32 %v3579_v23, %v4971_v21  ;;  %v1595_v31 = vmul.f32 %v4963_v13, %v4969_v53  ;;  %v1847_v32 = vmul.f32 %v4963_v13, %v4984_v30 }
 0x3df   : > { %1361 = vadd.xlane.f32.xlu0 %v1345_v24  ;;  %v4989_v36 = vadd.f32 %v1278_v26, %v4971_v21  ;;  %v1346_v46 = vmul.f32 %v4963_v13, %v4994_v39  ;;  %v1845_v63 = vmul.f32 %v4963_v13, %v5004_v45 }
 0x3e0   : > { %v1596_v29 = vmul.f32 %v4963_v13, %v4976_v25  ;;  %v1848_v38 = vmul.f32 %v4963_v13, %v4979_v28 }
 0x3e1   : > { %v1846_v44 = vmul.f32 %v4963_v13, %v4989_v36 }
 0x3e2   : > { %v1172_v33 = vpop.f32.mrb[20].mxu0  ;;  %1613 = vadd.xlane.f32.xlu1 %v1596_v29 }
 0x3e3   : > { %v1174_v34 = vpop.f32.mrb[21].mxu0  ;;  %1611 = vadd.xlane.f32.xlu0 %v1595_v31  ;;  %v3582_v35 = vpop.f32.mrb[20].mxu1  ;;  %v4999_v43 = vadd.f32 %v1172_v33, %v4959_v10 }
 0x3e4   : > { %v1176_v37 = vpop.f32.mrb[22].mxu0  ;;  %v1291_v17 = vpop.f32.mrb[21].mxu1  ;;  %v5018_v59 = vadd.f32 %v1174_v34, %v4961_v11  ;;  %v5032_v5 = vadd.f32 %v3582_v35, %v4971_v21 }
 0x3e5   : > { %v1178_v40 = vpop.f32.mrb[23].mxu0  ;;  %v3583_v41 = vpop.f32.mrb[22].mxu1  ;;  %v5011_v52 = vadd.f32 %v1176_v37, %v4959_v10  ;;  %v1347_v57 = vmul.f32 %v4963_v13, %v4999_v43  ;;  %v5052_v16 = vadd.f32 %v1291_v17, %v4971_v21  ;;  %v2741_v37 = vld [vmem:[#allocation14] sm:$0xff] }
 0x3e6   : > { %1867 = vadd.xlane.f32.xlu1 %v1848_v38  ;;  %v1294_v42 = vpop.f32.mrb[23].mxu1  ;;  %v5027_v3 = vadd.f32 %v1178_v40, %v4961_v11  ;;  %6512 = vst [vmem:[#allocation35_spill] sm:$0xff] %v5032_v5  ;;  %v1597_v6 = vmul.f32 %v4963_v13, %v5018_v59  ;;  %v5043_v27 = vadd.f32 %v3583_v41, %v4971_v21  ;;  %v2742_v38 = vld [vmem:[#allocation14 + $0x8] sm:$0xff] }
 0x3e7   : > { %1865 = vadd.xlane.f32.xlu0 %v1847_v32  ;;  %6510 = vst [vmem:[#allocation33_spill] sm:$0xff] %v5011_v52  ;;  %v1348_v4 = vmul.f32 %v4963_v13, %v5011_v52  ;;  %6514 = vst [vmem:[#allocation37_spill] sm:$0xff] %v5052_v16  ;;  %v1851_v19 = vmul.f32 %v4963_v13, %v5032_v5  ;;  %v5063_v23 = vadd.f32 %v1294_v42, %v4971_v21 }
 0x3e8   : > { %6511 = vst [vmem:[#allocation34_spill] sm:$0xff] %v5027_v3  ;;  %6513 = vst [vmem:[#allocation36_spill] sm:$0xff] %v5043_v27  ;;  %v1598_v14 = vmul.f32 %v4963_v13, %v5027_v3  ;;  %v1852_v24 = vmul.f32 %v4963_v13, %v5043_v27  ;;  %v1849_v29 = vmul.f32 %v4963_v13, %v5052_v16 }
 0x3e9   : > { %6515 = vst [vmem:[#allocation38_spill] sm:$0xff] %v5063_v23  ;;  %v1850_v41 = vmul.f32 %v4963_v13, %v5063_v23 }
 0x3ea   : > { %v1182_v47 = vpop.f32.mrb[24].mxu0  ;;  %1863 = vadd.xlane.f32.xlu1 %v1846_v44  ;;  %v2757_v44 = vpack.c.bf16 %v2742_v38, %v2741_v37  ;;  %v2743_v37 = vld [vmem:[#allocation14 + $0x10] sm:$0xff]  ;;  %v2744_v38 = vld [vmem:[#allocation14 + $0x18] sm:$0xff] }
 0x3eb   : > { %v1184_v48 = vpop.f32.mrb[25].mxu0  ;;  %1363 = vadd.xlane.f32.xlu0 %v1346_v46  ;;  %v5008_v51 = vpop.f32.mrb[24].mxu1  ;;  %v5068_v26 = vadd.f32 %v1182_v47, %v4959_v10 }
 0x3ec   : > { %v1186_v54 = vpop.f32.mrb[26].mxu0  ;;  %v5015_v58 = vpop.f32.mrb[25].mxu1  ;;  %v5088_v46 = vadd.f32 %v1184_v48, %v4961_v11  ;;  %3624 = vmatprep.subr.bf16.mxu0 %v2757_v44  ;;  %3656 = vmatprep.subr.bf16.mxu1 %v2757_v44 }
 0x3ed   : > { %v1188_v60 = vpop.f32.mrb[27].mxu0  ;;  %v5022_v0 = vpop.f32.mrb[26].mxu1  ;;  %6516 = vst [vmem:[#allocation39_spill] sm:$0xff] %v5068_v26  ;;  %v5078_v17 = vadd.f32 %v1186_v54, %v4959_v10  ;;  %v1349_v54 = vmul.f32 %v4963_v13, %v5068_v26  ;;  %3625 = vmatpush3.bf16.msra.mxu0 %v2757_v44  ;;  %3664 = vmatpush3.bf16.msra.mxu1 %v2757_v44 }
 0x3ee   : > { %1365 = vadd.xlane.f32.xlu1 %v1347_v57  ;;  %v5024_v2 = vpop.f32.mrb[27].mxu1  ;;  %6518 = vst [vmem:[#allocation41_spill] sm:$0xff] %v5088_v46  ;;  %v5103_v48 = vadd.f32 %v1188_v60, %v4961_v11 }
 0x3ef   : > { %1861 = vadd.xlane.f32.xlu0 %v1845_v63  ;;  %6517 = vst [vmem:[#allocation40_spill] sm:$0xff] %v5078_v17 }
 0x3f0   : > { %6519 = vst [vmem:[#allocation42_spill] sm:$0xff] %v5103_v48  ;;  %v1600_v44 = vmul.f32 %v4963_v13, %v5103_v48 }
 0x3f2   : > { %v5036_v7 = vpop.f32.mrb[28].mxu0  ;;  %1367 = vadd.xlane.f32.xlu1 %v1348_v4 }
 0x3f3   : > { %v5038_v8 = vpop.f32.mrb[29].mxu0  ;;  %1615 = vadd.xlane.f32.xlu0 %v1597_v6  ;;  %v5040_v9 = vpop.f32.mrb[28].mxu1 }
 0x3f4   : > { %v5045_v12 = vpop.f32.mrb[30].mxu0  ;;  %v5049_v15 = vpop.f32.mrb[29].mxu1 }
 0x3f5   : > { %v5054_v18 = vpop.f32.mrb[31].mxu0  ;;  %v5058_v20 = vpop.f32.mrb[30].mxu1 }
 0x3f6   : > { %1617 = vadd.xlane.f32.xlu1 %v1598_v14  ;;  %v5060_v22 = vpop.f32.mrb[31].mxu1  ;;  %v1350_v14 = vmul.f32 %v4963_v13, %v5078_v17  ;;  %v5208_v16 = vadd.f32 %v5058_v20, %v4971_v21 }
 0x3f7   : > { %1873 = vadd.xlane.f32.xlu0 %v1851_v19  ;;  %v5109_v19 = vadd.f32 %v5008_v51, %v4971_v21 }
 0x3f9   : > { %6520 = vst [vmem:[#allocation43_spill] sm:$0xff] %v5109_v19 }
 0x3fa   : > { %v1202_v31 = vpop.f32.mrb[32].mxu0  ;;  %1875 = vadd.xlane.f32.xlu1 %v1852_v24  ;;  %v1599_v24 = vmul.f32 %v4963_v13, %v5088_v46  ;;  %v5164_v46 = vadd.f32 %v5045_v12, %v4959_v10 }
 0x3fb   : > { %v5073_v33 = vadd.f32 %v1202_v31, %v4959_v10  ;;  %v1204_v34 = vpop.f32.mrb[33].mxu0  ;;  %1869 = vadd.xlane.f32.xlu0 %v1849_v29  ;;  %v5075_v35 = vpop.f32.mrb[32].mxu1 }
 0x3fc   : > { %v5081_v40 = vadd.f32 %v1204_v34, %v4961_v11  ;;  %v1206_v32 = vpop.f32.mrb[34].mxu0  ;;  %v5085_v42 = vpop.f32.mrb[33].mxu1  ;;  %6525 = vst [vmem:[#allocation48_spill] sm:$0xff] %v5164_v46 }
 0x3fd   : > { %v5091_v47 = vadd.f32 %v1206_v32, %v4959_v10  ;;  %v1208_v57 = vpop.f32.mrb[35].mxu0  ;;  %v5095_v63 = vpop.f32.mrb[34].mxu1  ;;  %v5120_v32 = vadd.f32 %v5022_v0, %v4971_v21  ;;  %v1855_v0 = vmul.f32 %v4963_v13, %v5109_v19  ;;  %v2746_v19 = vld [vmem:[#allocation14 + $0x28] sm:$0xff] }
 0x3fe   : > { %v5098_v4 = vadd.f32 %v1208_v57, %v4961_v11  ;;  %1871 = vadd.xlane.f32.xlu1 %v1850_v41  ;;  %v5100_v6 = vpop.f32.mrb[35].mxu1 }
 0x3ff   : > { %1369 = vadd.xlane.f32.xlu0 %v1349_v54  ;;  %6521 = vst [vmem:[#allocation44_spill] sm:$0xff] %v5120_v32  ;;  %v2758_v54 = vpack.c.bf16 %v2744_v38, %v2743_v37  ;;  %v1856_v37 = vmul.f32 %v4963_v13, %v5120_v32  ;;  %v5153_v38 = vadd.f32 %v5036_v7, %v4959_v10  ;;  %v2745_v32 = vld [vmem:[#allocation14 + $0x20] sm:$0xff] }
 0x401   : > { %3626 = vmatprep.subr.bf16.mxu0 %v2758_v54  ;;  %3657 = vmatprep.subr.bf16.mxu1 %v2758_v54  ;;  %6524 = vst [vmem:[#allocation47_spill] sm:$0xff] %v5153_v38  ;;  %v1351_v12 = vmul.f32 %v4963_v13, %v5153_v38  ;;  %v2748_v38 = vld [vmem:[#allocation14 + $0x38] sm:$0xff] }
 0x402   : > { %v1212_v29 = vpop.f32.mrb[36].mxu0  ;;  %1371 = vadd.xlane.f32.xlu1 %v1350_v14  ;;  %v5131_v14 = vadd.f32 %v5015_v58, %v4971_v21  ;;  %v5147_v58 = vadd.f32 %v5024_v2, %v4971_v21  ;;  %3627 = vmatpush3.bf16.msra.mxu0 %v2758_v54 }
 0x403   : > { %v5114_v31 = vadd.f32 %v1212_v29, %v4959_v10  ;;  %v1214_v60 = vpop.f32.mrb[37].mxu0  ;;  %1619 = vadd.xlane.f32.xlu0 %v1599_v24  ;;  %v5116_v34 = vpop.f32.mrb[36].mxu1  ;;  %3665 = vmatpush3.bf16.msra.mxu1 %v2758_v54 }
 0x404   : > { %v5123_v51 = vadd.f32 %v1214_v60, %v4961_v11  ;;  %v1216_v41 = vpop.f32.mrb[38].mxu0  ;;  %v5127_v57 = vpop.f32.mrb[37].mxu1  ;;  %6522 = vst [vmem:[#allocation45_spill] sm:$0xff] %v5131_v14  ;;  %6523 = vst [vmem:[#allocation46_spill] sm:$0xff] %v5147_v58  ;;  %v1854_v54 = vmul.f32 %v4963_v13, %v5147_v58 }
 0x405   : > { %v5134_v24 = vadd.f32 %v1216_v41, %v4959_v10  ;;  %v1218_v29 = vpop.f32.mrb[39].mxu0  ;;  %v5138_v60 = vpop.f32.mrb[38].mxu1  ;;  %v1853_v41 = vmul.f32 %v4963_v13, %v5131_v14 }
 0x406   : > { %v5141_v17 = vadd.f32 %v1218_v29, %v4961_v11  ;;  %1621 = vadd.xlane.f32.xlu1 %v1600_v44  ;;  %v5143_v48 = vpop.f32.mrb[39].mxu1 }
 0x407   : > { %1881 = vadd.xlane.f32.xlu0 %v1855_v0 }
 0x40a   : > { %v1222_v44 = vpop.f32.mrb[40].mxu0  ;;  %1883 = vadd.xlane.f32.xlu1 %v1856_v37 }
 0x40b   : > { %v5158_v29 = vadd.f32 %v1222_v44, %v4959_v10  ;;  %v1224_v2 = vpop.f32.mrb[41].mxu0  ;;  %1877 = vadd.xlane.f32.xlu0 %v1853_v41  ;;  %v5160_v0 = vpop.f32.mrb[40].mxu1  ;;  %v2759_v44 = vpack.c.bf16 %v2746_v19, %v2745_v32  ;;  %v5175_v41 = vadd.f32 %v5038_v8, %v4961_v11  ;;  %v5191_v8 = vadd.f32 %v5054_v18, %v4961_v11 }
 0x40c   : > { %v5167_v7 = vadd.f32 %v1224_v2, %v4961_v11  ;;  %v1226_v14 = vpop.f32.mrb[42].mxu0  ;;  %v5171_v37 = vpop.f32.mrb[41].mxu1  ;;  %v1352_v19 = vmul.f32 %v4963_v13, %v5164_v46  ;;  %v5197_v32 = vadd.f32 %v5040_v9, %v4971_v21  ;;  %v2747_v46 = vld [vmem:[#allocation14 + $0x30] sm:$0xff] }
 0x40d   : > { %6526 = vst [vmem:[#allocation49_spill] sm:$0xff] %v5175_v41  ;;  %v5178_v23 = vadd.f32 %v1226_v14, %v4959_v10  ;;  %v1228_v26 = vpop.f32.mrb[43].mxu0  ;;  %v5182_v2 = vpop.f32.mrb[42].mxu1  ;;  %3628 = vmatprep.subr.bf16.mxu0 %v2759_v44  ;;  %6527 = vst [vmem:[#allocation50_spill] sm:$0xff] %v5191_v8  ;;  %3658 = vmatprep.subr.bf16.mxu1 %v2759_v44 }
 0x40e   : > { %v5185_v27 = vadd.f32 %v1228_v26, %v4961_v11  ;;  %1879 = vadd.xlane.f32.xlu1 %v1854_v54  ;;  %v5187_v58 = vpop.f32.mrb[43].mxu1  ;;  %3629 = vmatpush3.bf16.msra.mxu0 %v2759_v44  ;;  %v1601_v26 = vmul.f32 %v4963_v13, %v5175_v41  ;;  %v1859_v20 = vmul.f32 %v4963_v13, %v5197_v32 }
 0x40f   : > { %1373 = vadd.xlane.f32.xlu0 %v1351_v12  ;;  %3666 = vmatpush3.bf16.msra.mxu1 %v2759_v44  ;;  %v1602_v44 = vmul.f32 %v4963_v13, %v5191_v8 }
 0x412   : > { %v1232_v14 = vpop.f32.mrb[44].mxu0  ;;  %1375 = vadd.xlane.f32.xlu1 %v1352_v19 }
 0x413   : > { %v5202_v54 = vadd.f32 %v1232_v14, %v4959_v10  ;;  %v1234_v18 = vpop.f32.mrb[45].mxu0  ;;  %1623 = vadd.xlane.f32.xlu0 %v1601_v26  ;;  %v5204_v12 = vpop.f32.mrb[44].mxu1  ;;  %v2760_v14 = vpack.c.bf16 %v2748_v38, %v2747_v46  ;;  %v5219_v26 = vadd.f32 %v5049_v15, %v4971_v21  ;;  %v5236_v15 = vld [vmem:[%s6373_s11] ss:$0 sm:$0xff]  ;;  %v1860_v46 = vmul.f32 %v4963_v13, %v5208_v16  ;;  %v2749_v38 = vld [vmem:[#allocation14 + $0x40] sm:$0xff] }
 0x414   : > { %v5211_v9 = vadd.f32 %v1234_v18, %v4961_v11  ;;  %v1236_v41 = vpop.f32.mrb[46].mxu0  ;;  %v5215_v19 = vpop.f32.mrb[45].mxu1 }
 0x415   : > { %v5222_v3 = vadd.f32 %v1236_v41, %v4959_v10  ;;  %v1238_v5 = vpop.f32.mrb[47].mxu0  ;;  %v5226_v18 = vpop.f32.mrb[46].mxu1  ;;  %3630 = vmatprep.subr.bf16.mxu0 %v2760_v14  ;;  %v5240_v10 = vadd.f32 %v5060_v22, %v4971_v21  ;;  %3659 = vmatprep.subr.bf16.mxu1 %v2760_v14  ;;  %v2750_v41 = vld [vmem:[#allocation14 + $0x48] sm:$0xff] }
 0x416   : > { %v5229_v52 = vadd.f32 %v1238_v5, %v4961_v11  ;;  %1625 = vadd.xlane.f32.xlu1 %v1602_v44  ;;  %v5231_v8 = vpop.f32.mrb[47].mxu1  ;;  %3631 = vmatpush3.bf16.msra.mxu0 %v2760_v14  ;;  %v1857_v11 = vmul.f32 %v4963_v13, %v5219_v26  ;;  %v5248_v5 = vadd.f32 %v5075_v35, %v5236_v15 }
 0x417   : > { %1889 = vadd.xlane.f32.xlu0 %v1859_v20  ;;  %3667 = vmatpush3.bf16.msra.mxu1 %v2760_v14  ;;  %v1858_v21 = vmul.f32 %v4963_v13, %v5240_v10  ;;  %v2761_v22 = vpack.c.bf16 %v2750_v41, %v2749_v38  ;;  %v1353_v44 = vmul.f32 %v4963_v13, %v5073_v33 }
 0x418   : > { %v2247_v20 = vmul.f32 %v5248_v5, %v5248_v5  ;;  %v5258_v35 = vadd.f32 %v5095_v63, %v5236_v15  ;;  %v1603_v14 = vmul.f32 %v4963_v13, %v5081_v40  ;;  %v5264_v38 = vadd.f32 %v5236_v15, %v5085_v42 }
 0x419   : > { %3632 = vmatprep.subr.bf16.mxu0 %v2761_v22  ;;  %3660 = vmatprep.subr.bf16.mxu1 %v2761_v22  ;;  %v1354_v41 = vmul.f32 %v4963_v13, %v5091_v47  ;;  %v5270_v63 = vadd.f32 %v5236_v15, %v5100_v6  ;;  %v1604_v6 = vmul.f32 %v4963_v13, %v5098_v4 }
 0x41a   : > { %1891 = vadd.xlane.f32.xlu1 %v1860_v46  ;;  %3633 = vmatpush3.bf16.msra.mxu0 %v2761_v22  ;;  %v2751_v46 = vld [vmem:[#allocation14 + $0x50] sm:$0xff] }
 0x41b   : > { %1885 = vadd.xlane.f32.xlu0 %v1857_v11  ;;  %3668 = vmatpush3.bf16.msra.mxu1 %v2761_v22  ;;  %v2752_v11 = vld [vmem:[#allocation14 + $0x58] sm:$0xff]  ;;  %v2245_v22 = vmul.f32 %v5264_v38, %v5264_v38  ;;  %v2246_v42 = vmul.f32 %v5270_v63, %v5270_v63 }
 0x41e   : > { %1887 = vadd.xlane.f32.xlu1 %v1858_v21  ;;  %v2762_v21 = vpack.c.bf16 %v2752_v11, %v2751_v46  ;;  %v2754_v46 = vld [vmem:[#allocation14 + $0x68] sm:$0xff]  ;;  %v1355_v11 = vmul.f32 %v4963_v13, %v5114_v31 }
 0x41f   : > { %1377 = vadd.xlane.f32.xlu0 %v1353_v44  ;;  %v2248_v44 = vmul.f32 %v5258_v35, %v5258_v35 }
 0x420   : > { %3634 = vmatprep.subr.bf16.mxu0 %v2762_v21  ;;  %3661 = vmatprep.subr.bf16.mxu1 %v2762_v21 }
 0x421   : > { %3635 = vmatpush3.bf16.msra.mxu0 %v2762_v21  ;;  %3669 = vmatpush3.bf16.msra.mxu1 %v2762_v21  ;;  %v1605_v21 = vmul.f32 %v4963_v13, %v5123_v51 }
 0x422   : > { %2265 = vadd.xlane.f32.xlu1 %v2247_v20  ;;  %v5280_v20 = vadd.f32 %v5116_v34, %v5236_v15  ;;  %v5290_v34 = vadd.f32 %v5138_v60, %v5236_v15  ;;  %v5302_v60 = vadd.f32 %v5236_v15, %v5143_v48  ;;  %v5313_v48 = vadd.f32 %v5160_v0, %v5236_v15 }
 0x423   : > { %1627 = vadd.xlane.f32.xlu0 %v1603_v14  ;;  %v2753_v14 = vld [vmem:[#allocation14 + $0x60] sm:$0xff]  ;;  %v5326_v0 = vadd.f32 %v5182_v2, %v5236_v15  ;;  %v5340_v2 = vadd.f32 %v5236_v15, %v5187_v58  ;;  %v1608_v58 = vmul.f32 %v4963_v13, %v5185_v27 }
 0x424   : > { %6528 = vst [vmem:[#allocation51_spill] sm:$0xff] %v5280_v20  ;;  %6529 = vst [vmem:[#allocation52_spill] sm:$0xff] %v5290_v34 }
 0x425   : > { %6530 = vst [vmem:[#allocation53_spill] sm:$0xff] %v5302_v60  ;;  %6531 = vst [vmem:[#allocation54_spill] sm:$0xff] %v5313_v48 }
 0x426   : > { %1379 = vadd.xlane.f32.xlu1 %v1354_v41  ;;  %v2763_v41 = vpack.c.bf16 %v2754_v46, %v2753_v14  ;;  %v5296_v14 = vadd.f32 %v5236_v15, %v5127_v57  ;;  %v1356_v46 = vmul.f32 %v4963_v13, %v5134_v24  ;;  %6532 = vst [vmem:[#allocation55_spill] sm:$0xff] %v5326_v0  ;;  %6534 = vst [vmem:[#allocation57_spill] sm:$0xff] %v5340_v2 }
 0x427   : > { %2267 = vadd.xlane.f32.xlu0 %v2248_v44  ;;  %v2251_v44 = vmul.f32 %v5280_v20, %v5280_v20 }
 0x428   : > { %3636 = vmatprep.subr.bf16.mxu0 %v2763_v41  ;;  %3662 = vmatprep.subr.bf16.mxu1 %v2763_v41  ;;  %v2249_v57 = vmul.f32 %v5296_v14, %v5296_v14 }
 0x429   : > { %3637 = vmatpush3.bf16.msra.mxu0 %v2763_v41  ;;  %3670 = vmatpush3.bf16.msra.mxu1 %v2763_v41  ;;  %v2250_v41 = vmul.f32 %v5302_v60, %v5302_v60 }
 0x42a   : > { %2261 = vadd.xlane.f32.xlu1 %v2245_v22  ;;  %v2755_v22 = vld [vmem:[#allocation14 + $0x70] sm:$0xff] }
 0x42b   : > { %2263 = vadd.xlane.f32.xlu0 %v2246_v42  ;;  %v2756_v42 = vld [vmem:[#allocation14 + $0x78] sm:$0xff] }
 0x42e   : > { %1629 = vadd.xlane.f32.xlu1 %v1604_v6  ;;  %v2764_v6 = vpack.c.bf16 %v2756_v42, %v2755_v22  ;;  %v2256_v22 = vmul.f32 %v5326_v0, %v5326_v0  ;;  %v1359_v42 = vmul.f32 %v4963_v13, %v5202_v54 }
 0x42f   : > { %1381 = vadd.xlane.f32.xlu0 %v1355_v11  ;;  %v2252_v11 = vmul.f32 %v5290_v34, %v5290_v34 }
 0x430   : > { %3638 = vmatprep.subr.bf16.mxu0 %v2764_v6  ;;  %3663 = vmatprep.subr.bf16.mxu1 %v2764_v6 }
 0x431   : > { %3639 = vmatpush3.bf16.msra.mxu0 %v2764_v6  ;;  %3671 = vmatpush3.bf16.msra.mxu1 %v2764_v6 }
 0x432   : > { %2273 = vadd.xlane.f32.xlu1 %v2251_v44  ;;  %v1606_v44 = vmul.f32 %v4963_v13, %v5141_v17 }
 0x433   : > { %1631 = vadd.xlane.f32.xlu0 %v1605_v21  ;;  %v1357_v21 = vmul.f32 %v4963_v13, %v5158_v29 }
 0x434   : > { %3641 = vmatmul.mubr.bf16.vlgmr.msra.gmra.mrb[48].mxu0 %v4856_v49  ;;  %3649 = vmatmul.mubr.bf16.vlgmr.msra.gmra.mrb[48].mxu1 %v4876_v61  ;;  %v2255_v49 = vmul.f32 %v5313_v48, %v5313_v48  ;;  %v5334_v61 = vadd.f32 %v5236_v15, %v5171_v37  ;;  %v5350_v37 = vadd.f32 %v5204_v12, %v5236_v15 }
 0x435   : > { %3644 = vmatprep.mubr.bf16.mxu0 %v4858_v50  ;;  %3652 = vmatprep.mubr.bf16.mxu1 %v4878_v62  ;;  %v1607_v50 = vmul.f32 %v4963_v13, %v5167_v7  ;;  %v1358_v62 = vmul.f32 %v4963_v13, %v5178_v23  ;;  %v1609_v12 = vmul.f32 %v4963_v13, %v5211_v9 }
 0x436   : > { %1383 = vadd.xlane.f32.xlu1 %v1356_v46  ;;  %6533 = vst [vmem:[#allocation56_spill] sm:$0xff] %v5334_v61  ;;  %6535 = vst [vmem:[#allocation58_spill] sm:$0xff] %v5350_v37  ;;  %v2259_v6 = vmul.f32 %v5350_v37, %v5350_v37  ;;  %v5360_v46 = vadd.f32 %v5226_v18, %v5236_v15 }
 0x437   : > { %2275 = vadd.xlane.f32.xlu0 %v2252_v11  ;;  %v5366_v11 = vadd.f32 %v5236_v15, %v5215_v19  ;;  %v1610_v19 = vmul.f32 %v4963_v13, %v5229_v52 }
 0x438   : > { %6536 = vst [vmem:[#allocation59_spill] sm:$0xff] %v5360_v46  ;;  %v2260_v18 = vmul.f32 %v5360_v46, %v5360_v46 }
 0x439   : > { %6537 = vst [vmem:[#allocation60_spill] sm:$0xff] %v5366_v11 }
 0x43a   : > { %2269 = vadd.xlane.f32.xlu1 %v2249_v57  ;;  %v1360_v57 = vmul.f32 %v4963_v13, %v5222_v3 }
 0x43b   : > { %2271 = vadd.xlane.f32.xlu0 %v2250_v41  ;;  %v5372_v41 = vadd.f32 %v5236_v15, %v5231_v8 }
 0x43c   : > { %3645 = vmatmul.mubr.bf16.gmra.mrb[52].mxu0 %v4866_v55  ;;  %3653 = vmatmul.mubr.bf16.gmra.mrb[52].mxu1 %v4884_v1  ;;  %v2253_v55 = vmul.f32 %v5334_v61, %v5334_v61  ;;  %v2254_v1 = vmul.f32 %v5340_v2, %v5340_v2 }
 0x43d   : > { %6538 = vst [vmem:[#allocation61_spill] sm:$0xff] %v5372_v41 }
 0x43e   : > { %1633 = vadd.xlane.f32.xlu1 %v1606_v44  ;;  %v2257_v44 = vmul.f32 %v5366_v11, %v5366_v11 }
 0x43f   : > { %1385 = vadd.xlane.f32.xlu0 %v1357_v21  ;;  %v2258_v21 = vmul.f32 %v5372_v41, %v5372_v41 }
 0x442   : > { %2281 = vadd.xlane.f32.xlu1 %v2255_v49 }
 0x443   : > { %1635 = vadd.xlane.f32.xlu0 %v1607_v50 }
 0x446   : > { %1387 = vadd.xlane.f32.xlu1 %v1358_v62 }
 0x447   : > { %2283 = vadd.xlane.f32.xlu0 %v2256_v22 }
 0x44a   : > { %2277 = vadd.xlane.f32.xlu1 %v2253_v55 }
 0x44b   : > { %2279 = vadd.xlane.f32.xlu0 %v2254_v1 }
 0x44e   : > { %1637 = vadd.xlane.f32.xlu1 %v1608_v58 }
 0x44f   : > { %1389 = vadd.xlane.f32.xlu0 %v1359_v42 }
 0x452   : > { %2289 = vadd.xlane.f32.xlu1 %v2259_v6 }
 0x453   : > { %1639 = vadd.xlane.f32.xlu0 %v1609_v12 }
 0x456   : > { %1391 = vadd.xlane.f32.xlu1 %v1360_v57 }
 0x457   : > { %2291 = vadd.xlane.f32.xlu0 %v2260_v18 }
 0x45a   : > { %2285 = vadd.xlane.f32.xlu1 %v2257_v44 }
 0x45b   : > { %2287 = vadd.xlane.f32.xlu0 %v2258_v21 }
 0x45e   : > { %1641 = vadd.xlane.f32.xlu1 %v1610_v19 }
 0x46c   : > { %v1362_v49 = vpop.xlane.xlu0 %1361 }
 0x46d   : > { %v1393_v8 = vmul.f32 0.03125, %v1362_v49 }
 0x46f   : > { %v1409_v15 = vsub.f32 %v4966_v56, %v1393_v8  ;;  %v1614_v50 = vpop.xlane.xlu1 %1613 }
 0x470   : > { %v1612_v62 = vpop.xlane.xlu0 %1611  ;;  %v1644_v18 = vmul.f32 0.03125, %v1614_v50 }
 0x471   : > { %v1643_v22 = vmul.f32 0.03125, %v1612_v62  ;;  %v5384_v55 = vmul.f32 %v4963_v13, %v1409_v15 }
 0x472   : > { %v1660_v8 = vsub.f32 %v4976_v25, %v1644_v18 }
 0x473   : > { %v1659_v1 = vsub.f32 %v4969_v53, %v1643_v22  ;;  %v1868_v58 = vpop.xlane.xlu1 %1867  ;;  %v1441_v42 = vmul.f32 %v5384_v55, %v5384_v55 }
 0x474   : > { %v1866_v6 = vpop.xlane.xlu0 %1865  ;;  %v1896_v15 = vmul.f32 0.03125, %v1868_v58 }
 0x475   : > { %v1895_v12 = vmul.f32 0.03125, %v1866_v6  ;;  %1457 = vadd.xlane.f32.xlu0 %v1441_v42  ;;  %v5390_v57 = vmul.f32 %v4963_v13, %v1659_v1 }
 0x477   : > { %v1911_v56 = vsub.f32 %v4984_v30, %v1895_v12  ;;  %v1864_v44 = vpop.xlane.xlu1 %1863  ;;  %v1691_v21 = vmul.f32 %v5390_v57, %v5390_v57  ;;  %v1912_v12 = vsub.f32 %v4979_v28, %v1896_v15 }
 0x478   : > { %v1364_v19 = vpop.xlane.xlu0 %1363  ;;  %v1894_v25 = vmul.f32 0.03125, %v1864_v44 }
 0x479   : > { %v1394_v49 = vmul.f32 0.03125, %v1364_v19  ;;  %1707 = vadd.xlane.f32.xlu0 %v1691_v21  ;;  %v5396_v53 = vmul.f32 %v4963_v13, %v1911_v56  ;;  %v5407_v56 = vmul.f32 %v4963_v13, %v1660_v8  ;;  %v5419_v44 = vmul.f32 %v4963_v13, %v1912_v12 }
 0x47b   : > { %v1410_v62 = vsub.f32 %v4994_v39, %v1394_v49  ;;  %v1366_v22 = vpop.xlane.xlu1 %1365  ;;  %v1943_v50 = vmul.f32 %v5396_v53, %v5396_v53  ;;  %v1692_v28 = vmul.f32 %v5407_v56, %v5407_v56  ;;  %v1944_v12 = vmul.f32 %v5419_v44, %v5419_v44 }
 0x47c   : > { %v1395_v30 = vmul.f32 0.03125, %v1366_v22  ;;  %v1862_v1 = vpop.xlane.xlu0 %1861 }
 0x47d   : > { %v1893_v42 = vmul.f32 0.03125, %v1862_v1  ;;  %1961 = vadd.xlane.f32.xlu0 %v1943_v50  ;;  %v5403_v6 = vmul.f32 %v4963_v13, %v1410_v62 }
 0x47e   : > { %v1411_v58 = vsub.f32 %v4999_v43, %v1395_v30  ;;  %v1910_v43 = vsub.f32 %v4989_v36, %v1894_v25  ;;  %v6540_v36 = vld [vmem:[#allocation35_spill] sm:$0xff] }
 0x47f   : > { %v1909_v39 = vsub.f32 %v5004_v45, %v1893_v42  ;;  %v1368_v18 = vpop.xlane.xlu1 %1367  ;;  %v1442_v21 = vmul.f32 %v5403_v6, %v5403_v6  ;;  %v6539_v42 = vld [vmem:[#allocation33_spill] sm:$0xff] }
 0x480   : > { %v1616_v19 = vpop.xlane.xlu0 %1615  ;;  %v1396_v22 = vmul.f32 0.03125, %v1368_v18  ;;  %v5426_v50 = vmul.f32 %v4963_v13, %v1411_v58 }
 0x481   : > { %v1645_v49 = vmul.f32 0.03125, %v1616_v19  ;;  %1459 = vadd.xlane.f32.xlu1 %v1442_v21  ;;  %v5414_v62 = vmul.f32 %v4963_v13, %v1909_v39  ;;  %v5435_v19 = vmul.f32 %v4963_v13, %v1910_v43 }
 0x482   : > { %v1412_v39 = vsub.f32 %v6539_v42, %v1396_v22  ;;  %v1443_v21 = vmul.f32 %v5426_v50, %v5426_v50  ;;  %v6541_v22 = vld [vmem:[#allocation34_spill] sm:$0xff] }
 0x483   : > { %v1661_v45 = vsub.f32 %v5018_v59, %v1645_v49  ;;  %v1618_v8 = vpop.xlane.xlu1 %1617  ;;  %v1941_v15 = vmul.f32 %v5414_v62, %v5414_v62  ;;  %v1942_v43 = vmul.f32 %v5435_v19, %v5435_v19 }
 0x484   : > { %v1874_v30 = vpop.xlane.xlu0 %1873  ;;  %v1646_v18 = vmul.f32 0.03125, %v1618_v8 }
 0x485   : > { %v1899_v1 = vmul.f32 0.03125, %v1874_v30  ;;  %1709 = vadd.xlane.f32.xlu1 %v1692_v28  ;;  %1957 = vadd.xlane.f32.xlu0 %v1941_v15  ;;  %v5438_v58 = vmul.f32 %v4963_v13, %v1661_v45  ;;  %v5442_v30 = vmul.f32 %v4963_v13, %v1412_v39 }
 0x486   : > { %v1662_v8 = vsub.f32 %v6541_v22, %v1646_v18  ;;  %v6543_v18 = vld [vmem:[#allocation36_spill] sm:$0xff]  ;;  %v6544_v22 = vld [vmem:[#allocation39_spill] sm:$0xff] }
 0x487   : > { %v1915_v25 = vsub.f32 %v6540_v36, %v1899_v1  ;;  %v1876_v59 = vpop.xlane.xlu1 %1875  ;;  %v6542_v1 = vld [vmem:[#allocation37_spill] sm:$0xff]  ;;  %v1693_v45 = vmul.f32 %v5438_v58, %v5438_v58  ;;  %v1444_v39 = vmul.f32 %v5442_v30, %v5442_v30 }
 0x488   : > { %v1870_v49 = vpop.xlane.xlu0 %1869  ;;  %v1900_v15 = vmul.f32 0.03125, %v1876_v59 }
 0x489   : > { %v1897_v28 = vmul.f32 0.03125, %v1870_v49  ;;  %1963 = vadd.xlane.f32.xlu1 %v1944_v12  ;;  %1461 = vadd.xlane.f32.xlu0 %v1443_v21  ;;  %v5450_v46 = vmul.f32 %v4963_v13, %v1915_v25  ;;  %v5456_v49 = vmul.f32 %v4963_v13, %v1662_v8 }
 0x48a   : > { %v1916_v59 = vsub.f32 %v6543_v18, %v1900_v15  ;;  %v6546_v18 = vld [vmem:[#allocation41_spill] sm:$0xff] }
 0x48b   : > { %v1913_v42 = vsub.f32 %v6542_v1, %v1897_v28  ;;  %v1872_v36 = vpop.xlane.xlu1 %1871  ;;  %v1947_v25 = vmul.f32 %v5450_v46, %v5450_v46 }
 0x48c   : > { %v1370_v12 = vpop.xlane.xlu0 %1369  ;;  %v1898_v28 = vmul.f32 0.03125, %v1872_v36  ;;  %v5467_v8 = vmul.f32 %v4963_v13, %v1916_v59  ;;  %v6545_v36 = vld [vmem:[#allocation38_spill] sm:$0xff] }
 0x48d   : > { %v1397_v21 = vmul.f32 0.03125, %v1370_v12  ;;  %1959 = vadd.xlane.f32.xlu1 %v1942_v43  ;;  %1711 = vadd.xlane.f32.xlu0 %v1693_v45  ;;  %v5462_v41 = vmul.f32 %v4963_v13, %v1913_v42  ;;  %v1694_v12 = vmul.f32 %v5456_v49, %v5456_v49 }
 0x48e   : > { %v1948_v59 = vmul.f32 %v5467_v8, %v5467_v8 }
 0x48f   : > { %v1413_v1 = vsub.f32 %v6544_v22, %v1397_v21  ;;  %v1372_v37 = vpop.xlane.xlu1 %1371  ;;  %v1914_v21 = vsub.f32 %v6545_v36, %v1898_v28  ;;  %v1945_v42 = vmul.f32 %v5462_v41, %v5462_v41  ;;  %v6548_v28 = vld [vmem:[#allocation43_spill] sm:$0xff] }
 0x490   : > { %v1620_v43 = vpop.xlane.xlu0 %1619  ;;  %v1398_v15 = vmul.f32 0.03125, %v1372_v37  ;;  %v6547_v37 = vld [vmem:[#allocation40_spill] sm:$0xff] }
 0x491   : > { %v1647_v45 = vmul.f32 0.03125, %v1620_v43  ;;  %1463 = vadd.xlane.f32.xlu1 %v1444_v39  ;;  %1969 = vadd.xlane.f32.xlu0 %v1947_v25  ;;  %v5474_v0 = vmul.f32 %v4963_v13, %v1413_v1  ;;  %v5483_v2 = vmul.f32 %v4963_v13, %v1914_v21 }
 0x492   : > { %v1414_v43 = vsub.f32 %v6547_v37, %v1398_v15 }
 0x493   : > { %v1663_v22 = vsub.f32 %v6546_v18, %v1647_v45  ;;  %v1622_v11 = vpop.xlane.xlu1 %1621  ;;  %v1445_v18 = vmul.f32 %v5474_v0, %v5474_v0  ;;  %v1946_v21 = vmul.f32 %v5483_v2, %v5483_v2 }
 0x494   : > { %v1882_v39 = vpop.xlane.xlu0 %1881  ;;  %v1648_v48 = vmul.f32 0.03125, %v1622_v11  ;;  %v6549_v11 = vld [vmem:[#allocation42_spill] sm:$0xff]  ;;  %v5490_v37 = vmul.f32 %v4963_v13, %v1414_v43 }
 0x495   : > { %v1903_v25 = vmul.f32 0.03125, %v1882_v39  ;;  %1713 = vadd.xlane.f32.xlu1 %v1694_v12  ;;  %1965 = vadd.xlane.f32.xlu0 %v1945_v42  ;;  %v5486_v1 = vmul.f32 %v4963_v13, %v1663_v22 }
 0x496   : > { %v1664_v15 = vsub.f32 %v6549_v11, %v1648_v48  ;;  %6550 = vst [vmem:[#allocation33_spill] sm:$0xff] %v5490_v37  ;;  %v6553_v48 = vld [vmem:[#allocation44_spill] sm:$0xff]  ;;  %v1446_v43 = vmul.f32 %v5490_v37, %v5490_v37  ;;  %v6555_v11 = vld [vmem:[#allocation47_spill] sm:$0xff] }
 0x497   : > { %v1919_v36 = vsub.f32 %v6548_v28, %v1903_v25  ;;  %v1884_v45 = vpop.xlane.xlu1 %1883  ;;  %v6551_v25 = vld [vmem:[#allocation45_spill] sm:$0xff]  ;;  %v1695_v22 = vmul.f32 %v5486_v1, %v5486_v1 }
 0x498   : > { %v1878_v12 = vpop.xlane.xlu0 %1877  ;;  %v1904_v39 = vmul.f32 0.03125, %v1884_v45 }
 0x499   : > { %v1901_v42 = vmul.f32 0.03125, %v1878_v12  ;;  %1971 = vadd.xlane.f32.xlu1 %v1948_v59  ;;  %1465 = vadd.xlane.f32.xlu0 %v1445_v18  ;;  %v5498_v34 = vmul.f32 %v4963_v13, %v1919_v36  ;;  %v5504_v12 = vmul.f32 %v4963_v13, %v1664_v15 }
 0x49a   : > { %v1920_v45 = vsub.f32 %v6553_v48, %v1904_v39  ;;  %v6559_v48 = vld [vmem:[#allocation49_spill] sm:$0xff] }
 0x49b   : > { %v1917_v28 = vsub.f32 %v6551_v25, %v1901_v42  ;;  %v1880_v61 = vpop.xlane.xlu1 %1879  ;;  %6552 = vst [vmem:[#allocation35_spill] sm:$0xff] %v5498_v34  ;;  %6554 = vst [vmem:[#allocation34_spill] sm:$0xff] %v5504_v12  ;;  %v1951_v36 = vmul.f32 %v5498_v34, %v5498_v34 }
 0x49c   : > { %v1374_v59 = vpop.xlane.xlu0 %1373  ;;  %v1902_v42 = vmul.f32 0.03125, %v1880_v61  ;;  %v5515_v15 = vmul.f32 %v4963_v13, %v1920_v45  ;;  %v6558_v61 = vld [vmem:[#allocation46_spill] sm:$0xff] }
 0x49d   : > { %v1399_v18 = vmul.f32 0.03125, %v1374_v59  ;;  %1967 = vadd.xlane.f32.xlu1 %v1946_v21  ;;  %1715 = vadd.xlane.f32.xlu0 %v1695_v22  ;;  %v5510_v60 = vmul.f32 %v4963_v13, %v1917_v28  ;;  %v1696_v59 = vmul.f32 %v5504_v12, %v5504_v12 }
 0x49e   : > { %6557 = vst [vmem:[#allocation36_spill] sm:$0xff] %v5515_v15  ;;  %v1952_v45 = vmul.f32 %v5515_v15, %v5515_v15 }
 0x49f   : > { %v1415_v25 = vsub.f32 %v6555_v11, %v1399_v18  ;;  %v1376_v20 = vpop.xlane.xlu1 %1375  ;;  %6556 = vst [vmem:[#allocation37_spill] sm:$0xff] %v5510_v60  ;;  %v1918_v18 = vsub.f32 %v6558_v61, %v1902_v42  ;;  %v1949_v28 = vmul.f32 %v5510_v60, %v5510_v60 }
 0x4a0   : > { %v1624_v21 = vpop.xlane.xlu0 %1623  ;;  %v1400_v39 = vmul.f32 0.03125, %v1376_v20  ;;  %v6561_v20 = vld [vmem:[#allocation48_spill] sm:$0xff] }
 0x4a1   : > { %v1649_v22 = vmul.f32 0.03125, %v1624_v21  ;;  %1467 = vadd.xlane.f32.xlu1 %v1446_v43  ;;  %1977 = vadd.xlane.f32.xlu0 %v1951_v36  ;;  %v5522_v34 = vmul.f32 %v4963_v13, %v1415_v25  ;;  %v5534_v61 = vmul.f32 %v4963_v13, %v1918_v18 }
 0x4a2   : > { %v1416_v36 = vsub.f32 %v6561_v20, %v1400_v39 }
 0x4a3   : > { %v1665_v11 = vsub.f32 %v6559_v48, %v1649_v22  ;;  %v1626_v37 = vpop.xlane.xlu1 %1625  ;;  %6560 = vst [vmem:[#allocation39_spill] sm:$0xff] %v5522_v34  ;;  %v1447_v22 = vmul.f32 %v5522_v34, %v5522_v34  ;;  %v1950_v34 = vmul.f32 %v5534_v61, %v5534_v61 }
 0x4a4   : > { %v5524_v43 = vpop.xlane.xlu0 %1889  ;;  %v1650_v21 = vmul.f32 0.03125, %v1626_v37  ;;  %v5540_v39 = vmul.f32 %v4963_v13, %v1416_v36 }
 0x4a5   : > { %1717 = vadd.xlane.f32.xlu1 %v1696_v59  ;;  %1973 = vadd.xlane.f32.xlu0 %v1949_v28  ;;  %v5537_v25 = vmul.f32 %v4963_v13, %v1665_v11  ;;  %v6562_v28 = vld [vmem:[#allocation50_spill] sm:$0xff] }
 0x4a6   : > { %v1666_v37 = vsub.f32 %v6562_v28, %v1650_v21  ;;  %v1448_v36 = vmul.f32 %v5540_v39, %v5540_v39 }
 0x4a7   : > { %v5529_v42 = vpop.xlane.xlu1 %1891  ;;  %v1697_v18 = vmul.f32 %v5537_v25, %v5537_v25 }
 0x4a8   : > { %v1886_v48 = vpop.xlane.xlu0 %1885 }
 0x4a9   : > { %v1905_v59 = vmul.f32 0.03125, %v1886_v48  ;;  %1979 = vadd.xlane.f32.xlu1 %v1952_v45  ;;  %1469 = vadd.xlane.f32.xlu0 %v1447_v22 }
 0x4ab   : > { %v1921_v20 = vsub.f32 %v5219_v26, %v1905_v59  ;;  %v1888_v15 = vpop.xlane.xlu1 %1887 }
 0x4ac   : > { %v1906_v11 = vmul.f32 0.03125, %v1888_v15  ;;  %v1378_v60 = vpop.xlane.xlu0 %1377  ;;  %v5560_v15 = vmul.f32 %v4963_v13, %v1666_v37 }
 0x4ad   : > { %v1401_v12 = vmul.f32 0.03125, %v1378_v60  ;;  %1975 = vadd.xlane.f32.xlu1 %v1950_v34  ;;  %1719 = vadd.xlane.f32.xlu0 %v1697_v18  ;;  %v5549_v45 = vmul.f32 %v4963_v13, %v1921_v20 }
 0x4ae   : > { %v1922_v26 = vsub.f32 %v5240_v10, %v1906_v11  ;;  %6563 = vst [vmem:[#allocation38_spill] sm:$0xff] %v5560_v15 }
 0x4af   : > { %v1417_v21 = vsub.f32 %v5073_v33, %v1401_v12  ;;  %v5555_v22 = vpop.xlane.xlu1 %2265  ;;  %v1953_v48 = vmul.f32 %v5549_v45, %v5549_v45  ;;  %v1698_v33 = vmul.f32 %v5560_v15, %v5560_v15 }
 0x4b0   : > { %v1628_v34 = vpop.xlane.xlu0 %1627  ;;  %v5571_v20 = vmul.f32 %v4963_v13, %v1922_v26  ;;  %3809 = vrsqrt.f32 %v5555_v22  ;;  %vm2309_vm1 = vcmp.eq.f32.partialorder %v5555_v22, inf  ;;  %vm2311_vm2 = vcmp.eq.f32.partialorder %v5555_v22, 0.0 }
 0x4b1   : > { %v1651_v60 = vmul.f32 0.03125, %v1628_v34  ;;  %1471 = vadd.xlane.f32.xlu1 %v1448_v36  ;;  %1981 = vadd.xlane.f32.xlu0 %v1953_v48  ;;  %v5563_v59 = vmul.f32 %v4963_v13, %v1417_v21 }
 0x4b2   : > { %6565 = vst [vmem:[#allocation40_spill] sm:$0xff] %v5571_v20  ;;  %v1954_v21 = vmul.f32 %v5571_v20, %v5571_v20 }
 0x4b3   : > { %6564 = vst [vmem:[#allocation41_spill] sm:$0xff] %v5563_v59  ;;  %v1667_v28 = vsub.f32 %v5081_v40, %v1651_v60  ;;  %v1380_v10 = vpop.xlane.xlu1 %1379  ;;  %v1449_v12 = vmul.f32 %v5563_v59, %v5563_v59 }
 0x4b4   : > { %v1402_v37 = vmul.f32 0.03125, %v1380_v10  ;;  %v5573_v18 = vpop.xlane.xlu0 %2267 }
 0x4b5   : > { %1721 = vadd.xlane.f32.xlu1 %v1698_v33  ;;  %1473 = vadd.xlane.f32.xlu0 %v1449_v12  ;;  %v5577_v36 = vmul.f32 %v4963_v13, %v1667_v28  ;;  %vm2316_vm5 = vcmp.eq.f32.partialorder %v5573_v18, inf  ;;  %vm2318_vm7 = vcmp.eq.f32.partialorder %v5573_v18, 0.0 }
 0x4b6   : > { %v1418_v11 = vsub.f32 %v5091_v47, %v1402_v37 }
 0x4b7   : > { %6566 = vst [vmem:[#allocation43_spill] sm:$0xff] %v5577_v36  ;;  %v5579_v40 = vpop.xlane.xlu1 %2261  ;;  %v1699_v26 = vmul.f32 %v5577_v36, %v5577_v36 }
 0x4b8   : > { %v5583_v48 = vpop.xlane.xlu0 %2263  ;;  %v5588_v34 = vmul.f32 %v4963_v13, %v1418_v11  ;;  %3811 = vrsqrt.f32 %v5579_v40  ;;  %vm2295_vm3 = vcmp.eq.f32.partialorder %v5579_v40, inf  ;;  %vm2297_vm4 = vcmp.eq.f32.partialorder %v5579_v40, 0.0 }
 0x4b9   : > { %1983 = vadd.xlane.f32.xlu1 %v1954_v21  ;;  %1723 = vadd.xlane.f32.xlu0 %v1699_v26  ;;  %3813 = vrsqrt.f32 %v5573_v18  ;;  %vm2302_vm6 = vcmp.eq.f32.partialorder %v5583_v48, inf  ;;  %vm2304_vm8 = vcmp.eq.f32.partialorder %v5583_v48, 0.0 }
 0x4ba   : > { %6567 = vst [vmem:[#allocation42_spill] sm:$0xff] %v5588_v34  ;;  %v1450_v28 = vmul.f32 %v5588_v34, %v5588_v34  ;;  %3815 = vrsqrt.f32 %v5583_v48 }
 0x4bb   : > { %v1630_v60 = vpop.xlane.xlu1 %1629 }
 0x4bc   : > { %v1652_v47 = vmul.f32 0.03125, %v1630_v60  ;;  %v1382_v10 = vpop.xlane.xlu0 %1381 }
 0x4bd   : > { %v1403_v33 = vmul.f32 0.03125, %v1382_v10  ;;  %1475 = vadd.xlane.f32.xlu1 %v1450_v28 }
 0x4be   : > { %v1668_v12 = vsub.f32 %v5098_v4, %v1652_v47 }
 0x4bf   : > { %v1419_v37 = vsub.f32 %v5114_v31, %v1403_v33  ;;  %v5594_v21 = vpop.xlane.xlu1 %2273 }
 0x4c0   : > { %v1632_v20 = vpop.xlane.xlu0 %1631  ;;  %v5600_v26 = vmul.f32 %v4963_v13, %v1668_v12  ;;  %3817 = vrsqrt.f32 %v5594_v21  ;;  %vm2337_vm9 = vcmp.eq.f32.partialorder %v5594_v21, inf  ;;  %vm2339_vm10 = vcmp.eq.f32.partialorder %v5594_v21, 0.0 }
 0x4c1   : > { %v5597_v36 = vmul.f32 %v4963_v13, %v1419_v37  ;;  %v1653_v11 = vmul.f32 0.03125, %v1632_v20 }
 0x4c2   : > { %6569 = vst [vmem:[#allocation44_spill] sm:$0xff] %v5600_v26  ;;  %v1700_v31 = vmul.f32 %v5600_v26, %v5600_v26 }
 0x4c3   : > { %6568 = vst [vmem:[#allocation45_spill] sm:$0xff] %v5597_v36  ;;  %v1669_v60 = vsub.f32 %v5123_v51, %v1653_v11  ;;  %v1384_v59 = vpop.xlane.xlu1 %1383  ;;  %v1451_v10 = vmul.f32 %v5597_v36, %v5597_v36 }
 0x4c4   : > { %v1404_v4 = vmul.f32 0.03125, %v1384_v59  ;;  %v5607_v47 = vpop.xlane.xlu0 %2275  ;;  %1725 = vadd.xlane.f32.xlu1 %v1700_v31 }
 0x4c5   : > { %1477 = vadd.xlane.f32.xlu0 %v1451_v10  ;;  %v5610_v28 = vmul.f32 %v4963_v13, %v1669_v60  ;;  %3819 = vrsqrt.f32 %v5607_v47  ;;  %vm2344_vm11 = vcmp.eq.f32.partialorder %v5607_v47, inf  ;;  %vm2346_vm12 = vcmp.eq.f32.partialorder %v5607_v47, 0.0 }
 0x4c6   : > { %v1420_v20 = vsub.f32 %v5134_v24, %v1404_v4 }
 0x4c7   : > { %6570 = vst [vmem:[#allocation47_spill] sm:$0xff] %v5610_v28  ;;  %v5613_v33 = vpop.xlane.xlu1 %2269  ;;  %v1701_v59 = vmul.f32 %v5610_v28, %v5610_v28 }
 0x4c8   : > { %v5616_v51 = vmul.f32 %v4963_v13, %v1420_v20  ;;  %v5618_v12 = vpop.xlane.xlu0 %2271  ;;  %vm2323_vm13 = vcmp.eq.f32.partialorder %v5613_v33, inf  ;;  %vm2325_vm14 = vcmp.eq.f32.partialorder %v5613_v33, 0.0 }
 0x4c9   : > { %1727 = vadd.xlane.f32.xlu0 %v1701_v59  ;;  %vm2330_vm15 = vcmp.eq.f32.partialorder %v5618_v12, inf  ;;  %vm2332_vm0 = vcmp.eq.f32.partialorder %v5618_v12, 0.0 }
 0x4ca   : > { %6571 = vst [vmem:[#allocation46_spill] sm:$0xff] %v5616_v51  ;;  %v1452_v11 = vmul.f32 %v5616_v51, %v5616_v51 }
 0x4cb   : > { %v1634_v37 = vpop.xlane.xlu1 %1633 }
 0x4cc   : > { %v1654_v60 = vmul.f32 0.03125, %v1634_v37  ;;  %v1386_v10 = vpop.xlane.xlu0 %1385  ;;  %1479 = vadd.xlane.f32.xlu1 %v1452_v11 }
 0x4cd   : > { %v1405_v24 = vmul.f32 0.03125, %v1386_v10 }
 0x4ce   : > { %v1670_v4 = vsub.f32 %v5141_v17, %v1654_v60 }
 0x4cf   : > { %v1421_v31 = vsub.f32 %v5158_v29, %v1405_v24  ;;  %v5626_v20 = vpop.xlane.xlu1 %2281 }
 0x4d0   : > { %v5629_v26 = vmul.f32 %v4963_v13, %v1670_v4  ;;  %v1636_v36 = vpop.xlane.xlu0 %1635 }
 0x4d1   : > { %v5632_v28 = vmul.f32 %v4963_v13, %v1421_v31  ;;  %v1655_v34 = vmul.f32 0.03125, %v1636_v36 }
 0x4d2   : > { %6572 = vst [vmem:[#allocation49_spill] sm:$0xff] %v5629_v26  ;;  %v1702_v59 = vmul.f32 %v5629_v26, %v5629_v26 }
 0x4d3   : > { %6573 = vst [vmem:[#allocation48_spill] sm:$0xff] %v5632_v28  ;;  %v1388_v37 = vpop.xlane.xlu1 %1387  ;;  %v1453_v11 = vmul.f32 %v5632_v28, %v5632_v28  ;;  %v1671_v17 = vsub.f32 %v5167_v7, %v1655_v34 }
 0x4d4   : > { %v1406_v29 = vmul.f32 0.03125, %v1388_v37  ;;  %1729 = vadd.xlane.f32.xlu1 %v1702_v59  ;;  %v5639_v60 = vpop.xlane.xlu0 %2283 }
 0x4d5   : > { %1481 = vadd.xlane.f32.xlu0 %v1453_v11  ;;  %v5642_v10 = vmul.f32 %v4963_v13, %v1671_v17 }
 0x4d6   : > { %v1422_v24 = vsub.f32 %v5178_v23, %v1406_v29 }
 0x4d7   : > { %6574 = vst [vmem:[#allocation50_spill] sm:$0xff] %v5642_v10  ;;  %v5645_v36 = vpop.xlane.xlu1 %2277  ;;  %v1703_v7 = vmul.f32 %v5642_v10, %v5642_v10 }
 0x4d8   : > { %v5647_v4 = vpop.xlane.xlu0 %2279  ;;  %v5650_v31 = vmul.f32 %v4963_v13, %v1422_v24 }
 0x4d9   : > { %1731 = vadd.xlane.f32.xlu0 %v1703_v7  ;;  %v1907_v7 = vmul.f32 0.03125, %v5524_v43 }
 0x4da   : > { %6575 = vst [vmem:[#allocation62_spill] sm:$0xff] %v5650_v31  ;;  %v1454_v59 = vmul.f32 %v5650_v31, %v5650_v31 }
 0x4db   : > { %v1638_v34 = vpop.xlane.xlu1 %1637 }
 0x4dc   : > { %v1656_v37 = vmul.f32 0.03125, %v1638_v34  ;;  %v1390_v11 = vpop.xlane.xlu0 %1389  ;;  %1483 = vadd.xlane.f32.xlu1 %v1454_v59 }
 0x4dd   : > { %v1407_v17 = vmul.f32 0.03125, %v1390_v11 }
 0x4de   : > { %v1672_v23 = vsub.f32 %v5185_v27, %v1656_v37 }
 0x4df   : > { %v1423_v29 = vsub.f32 %v5202_v54, %v1407_v17  ;;  %v5658_v28 = vpop.xlane.xlu1 %2289  ;;  %v1923_v17 = vsub.f32 %v5197_v32, %v1907_v7 }
 0x4e0   : > { %6576 = vst [vmem:[#allocation63_spill] sm:$0xff] %v5658_v28  ;;  %v5661_v24 = vmul.f32 %v4963_v13, %v1672_v23  ;;  %v1640_v26 = vpop.xlane.xlu0 %1639 }
 0x4e1   : > { %v5664_v10 = vmul.f32 %v4963_v13, %v1423_v29  ;;  %v1657_v51 = vmul.f32 0.03125, %v1640_v26  ;;  %v1908_v29 = vmul.f32 0.03125, %v5529_v42 }
 0x4e2   : > { %6577 = vst [vmem:[#allocation64_spill] sm:$0xff] %v5661_v24  ;;  %v1704_v34 = vmul.f32 %v5661_v24, %v5661_v24 }
 0x4e3   : > { %6578 = vst [vmem:[#allocation65_spill] sm:$0xff] %v5664_v10  ;;  %v1392_v59 = vpop.xlane.xlu1 %1391  ;;  %v1455_v27 = vmul.f32 %v5664_v10, %v5664_v10  ;;  %v1673_v54 = vsub.f32 %v5211_v9, %v1657_v51  ;;  %v5684_v10 = vmul.f32 %v4963_v13, %v1923_v17 }
 0x4e4   : > { %v1408_v37 = vmul.f32 0.03125, %v1392_v59  ;;  %1733 = vadd.xlane.f32.xlu1 %v1704_v34  ;;  %v1924_v34 = vsub.f32 %v5208_v16, %v1908_v29  ;;  %v5709_v17 = vpop.xlane.xlu0 %2291 }
 0x4e5   : > { %1485 = vadd.xlane.f32.xlu0 %v1455_v27  ;;  %v5675_v26 = vmul.f32 %v4963_v13, %v1673_v54  ;;  %6581 = vst [vmem:[#allocation68_spill] sm:$0xff] %v5684_v10  ;;  %v1955_v7 = vmul.f32 %v5684_v10, %v5684_v10  ;;  %6584 = vst [vmem:[#allocation71_spill] sm:$0xff] %v5709_v17 }
 0x4e6   : > { %v1424_v11 = vsub.f32 %v5222_v3, %v1408_v37  ;;  %v5700_v27 = vmul.f32 %v4963_v13, %v1924_v34  ;;  %v3810_v37 = vpop.eup %3809 }
 0x4e7   : > { %6579 = vst [vmem:[#allocation66_spill] sm:$0xff] %v5675_v26  ;;  %v5677_v23 = vpop.xlane.xlu1 %2285  ;;  %v1705_v3 = vmul.f32 %v5675_v26, %v5675_v26  ;;  %v3812_v16 = vpop.eup %3811 }
 0x4e8   : > { %v5680_v43 = vmul.f32 %v4963_v13, %v1424_v11  ;;  %6583 = vst [vmem:[#allocation70_spill] sm:$0xff] %v5700_v27  ;;  %v2308_v11 = vmul.f32 %v3810_v37, %v5555_v22 }
 0x4e9   : > { %1735 = vadd.xlane.f32.xlu0 %v1705_v3  ;;  %v2312_v3 = vand.u32 2147483648, %v5555_v22 }
 0x4ea   : > { %6580 = vst [vmem:[#allocation67_spill] sm:$0xff] %v5680_v43  ;;  %v1456_v32 = vmul.f32 %v5680_v43, %v5680_v43  ;;  %v2310_v29 = vsel %vm2309_vm1, %v5555_v22, %v2308_v11 }
 0x4eb   : > { %v1642_v9 = vpop.xlane.xlu1 %1641 }
 0x4ec   : > { %v1658_v51 = vmul.f32 0.03125, %v1642_v9  ;;  %1487 = vadd.xlane.f32.xlu1 %v1456_v32  ;;  %v5718_v9 = vpop.xlane.xlu0 %2287  ;;  %v3814_v32 = vpop.eup %3813 }
 0x4ed   : > { %1985 = vadd.xlane.f32.xlu0 %v1955_v7  ;;  %6585 = vst [vmem:[#allocation72_spill] sm:$0xff] %v5718_v9  ;;  %v3816_v7 = vpop.eup %3815  ;;  %v2315_v37 = vmul.f32 %v3814_v32, %v5573_v18 }
 0x4ee   : > { %v1674_v42 = vsub.f32 %v5229_v52, %v1658_v51  ;;  %v1956_v52 = vmul.f32 %v5700_v27, %v5700_v27  ;;  %v2313_v51 = vsel %vm2311_vm2, %v2312_v3, %v2310_v29  ;;  %v3818_v11 = vpop.eup %3817  ;;  %v2301_v27 = vmul.f32 %v3816_v7, %v5583_v48 }
 0x4ef   : > { %v2317_v3 = vsel %vm2316_vm5, %v5573_v18, %v2315_v37  ;;  %v2305_v7 = vand.u32 2147483648, %v5583_v48 }
 0x4f0   : > { %v5697_v59 = vmul.f32 %v4963_v13, %v1674_v42  ;;  %v2294_v13 = vmul.f32 %v3812_v16, %v5579_v40  ;;  %v2298_v42 = vand.u32 2147483648, %v5579_v40 }
 0x4f2   : > { %6582 = vst [vmem:[#allocation69_spill] sm:$0xff] %v5697_v59  ;;  %v1706_v54 = vmul.f32 %v5697_v59, %v5697_v59  ;;  %v2296_v34 = vsel %vm2295_vm3, %v5579_v40, %v2294_v13  ;;  %v2319_v59 = vand.u32 2147483648, %v5573_v18  ;;  %v2336_v40 = vmul.f32 %v3818_v11, %v5594_v21 }
 0x4f4   : > { %1737 = vadd.xlane.f32.xlu1 %v1706_v54  ;;  %v2407_v54 = vmax.f32 %v2313_v51, 1e-12  ;;  %v2303_v51 = vsel %vm2302_vm6, %v5583_v48, %v2301_v27  ;;  %v2340_v27 = vand.u32 2147483648, %v5594_v21 }
 0x4f6   : > { %3821 = vrcp.f32 %v2407_v54 }
 0x4f8   : > { %1987 = vadd.xlane.f32.xlu1 %v1956_v52  ;;  %v2299_v52 = vsel %vm2297_vm4, %v2298_v42, %v2296_v34  ;;  %v3820_v34 = vpop.eup %3819  ;;  %v2320_v42 = vsel %vm2318_vm7, %v2319_v59, %v2317_v3 }
 0x4f9   : > { %v2405_v29 = vmax.f32 %v2299_v52, 1e-12  ;;  %v2306_v52 = vsel %vm2304_vm8, %v2305_v7, %v2303_v51 }
 0x4fa   : > { %v2406_v11 = vmax.f32 %v2306_v52, 1e-12 }
 0x500   : > { %v3822_v3 = vpop.eup %3821 }
 0x502   : > { %v1458_v22 = vpop.xlane.xlu0 %1457 }
 0x503   : > { %v1489_v16 = vmul.f32 0.03125, %v1458_v22  ;;  %v2408_v22 = vmax.f32 %v2320_v42, 1e-12 }
 0x505   : > { %v1505_v13 = vadd.f32 1e-05, %v1489_v16  ;;  %v2343_v16 = vmul.f32 %v3820_v34, %v5607_v47 }
 0x506   : > { %v1708_v10 = vpop.xlane.xlu0 %1707 }
 0x507   : > { %3823 = vrsqrt.f32 %v1505_v13  ;;  %v1739_v32 = vmul.f32 0.03125, %v1708_v10  ;;  %v2338_v10 = vsel %vm2337_vm9, %v5594_v21, %v2336_v40  ;;  %v2345_v40 = vsel %vm2344_vm11, %v5607_v47, %v2343_v16  ;;  %v5749_v21 = vld [vmem:[%s6586_s21] ss:$0 sm:$0xff] }
 0x508   : > { %3825 = vrsqrt.f32 %v5613_v33  ;;  %v5762_v16 = vld [vmem:[%s6587_s20] ss:$0 sm:$0xff] }
 0x509   : > { %3827 = vrcp.f32 %v2405_v29  ;;  %v1755_v54 = vadd.f32 1e-05, %v1739_v32  ;;  %v2341_v29 = vsel %vm2339_vm10, %v2340_v27, %v2338_v10  ;;  %v2347_v32 = vand.u32 2147483648, %v5607_v47  ;;  %v5770_v47 = vld [vmem:[%s6586_s21 + $0x1] ss:$0 sm:$0xff] }
 0x50a   : > { %v1962_v37 = vpop.xlane.xlu0 %1961  ;;  %v2411_v34 = vmax.f32 %v2341_v29, 1e-12  ;;  %v3642_v29 = vpop.f32.mrb[48].mxu0 }
 0x50b   : > { %3829 = vrsqrt.f32 %v1755_v54  ;;  %v1991_v18 = vmul.f32 0.03125, %v1962_v37  ;;  %v5757_v27 = vsel %vm2346_vm12, %v2347_v32, %v2345_v40  ;;  %v5773_v40 = vmul.f32 %v3822_v3, %v5248_v5  ;;  %v2806_v32 = vpop.f32.mrb[49].mxu0 }
 0x50c   : > { %3831 = vrsqrt.f32 %v5618_v12  ;;  %v3643_v54 = vpop.f32.mrb[50].mxu0 }
 0x50d   : > { %v2007_v59 = vadd.f32 1e-05, %v1991_v18  ;;  %3833 = vrcp.f32 %v2408_v22 }
 0x50e   : > { %v1460_v13 = vpop.xlane.xlu1 %1459 }
 0x50f   : > { %v1490_v48 = vmul.f32 0.03125, %v1460_v13  ;;  %3835 = vrsqrt.f32 %v2007_v59  ;;  %v3650_v13 = vpop.f32.mrb[48].mxu1 }
 0x510   : > { %3837 = vrcp.f32 %v2406_v11 }
 0x511   : > { %v3824_v51 = vpop.eup %3823  ;;  %v1506_v42 = vadd.f32 1e-05, %v1490_v48 }
 0x512   : > { %v3826_v7 = vpop.eup %3825  ;;  %v1537_v52 = vmul.f32 %v3824_v51, %v5384_v55  ;;  %v1710_v10 = vpop.xlane.xlu1 %1709 }
 0x513   : > { %v1958_v18 = vpop.xlane.xlu0 %1957  ;;  %v3828_v22 = vpop.eup %3827  ;;  %3839 = vrsqrt.f32 %v1506_v42  ;;  %v1740_v59 = vmul.f32 0.03125, %v1710_v10  ;;  %v2322_v10 = vmul.f32 %v3826_v7, %v5613_v33  ;;  %v5790_v7 = vld [vmem:[%s6587_s20 + $0x1] ss:$0 sm:$0xff] }
 0x514   : > { %v1989_v11 = vmul.f32 0.03125, %v1958_v18  ;;  %3841 = vrsqrt.f32 %v5626_v20  ;;  %v1557_v48 = vmul.f32 %v5749_v21, %v1537_v52  ;;  %v2838_v51 = vpop.f32.mrb[49].mxu1  ;;  %v5778_v43 = vmul.f32 %v3828_v22, %v5264_v38 }
 0x515   : > { %v3830_v42 = vpop.eup %3829  ;;  %3843 = vrcp.f32 %v2411_v34  ;;  %v1756_v18 = vadd.f32 1e-05, %v1740_v59  ;;  %v3651_v55 = vpop.f32.mrb[50].mxu1  ;;  %v5785_v34 = vld [vmem:[%s6588_s14] ss:$0 sm:$0xff]  ;;  %s2964_s14 = sshll.u32 %s5797_s3, 4  ;;  %s5909_s14 = int_to_ptr.vmem [resolvable:$true] %s2964_s14 }
 0x516   : > { %v2005_v37 = vadd.f32 1e-05, %v1989_v11  ;;  %v1577_v26 = vadd.f32 %v5762_v16, %v1557_v48  ;;  %v1787_v5 = vmul.f32 %v3830_v42, %v5390_v57  ;;  %v1964_v3 = vpop.xlane.xlu1 %1963  ;;  %v2815_v59 = vadd.f32 %v3642_v29, %v5785_v34  ;;  %v2809_v11 = vpop.f32.mrb[51].mxu0  ;;  %p4210_p9 = scmp.lt.s32.totalorder %s5909_s14, %s4208_s26 }
 0x517   : > { %v1462_v24 = vpop.xlane.xlu0 %1461  ;;  %3845 = vrsqrt.f32 %v1756_v18  ;;  %v1992_v38 = vmul.f32 0.03125, %v1964_v3  ;;  %v2841_v57 = vpop.f32.mrb[51].mxu1  ;;  %v2847_v52 = vadd.f32 %v3650_v13, %v5785_v34 }
 0x518   : > { %v1491_v22 = vmul.f32 0.03125, %v1462_v24  ;;  %v2453_v48 = vmul.f32 0.17677669, %v1577_v26  ;;  %v1807_v42 = vmul.f32 %v5770_v47, %v1787_v5  ;;  %3847 = vrsqrt.f32 %v2005_v37  ;;  %v3832_v31 = vpop.eup %3831  ;;  %2871 = vst [vmem:[%s5797_s3 + $0x10] sm:$0xff] %v2815_v59  ;;  %v3646_v59 = vpop.f32.mrb[52].mxu0 }
 0x519   : > { %v2008_v17 = vadd.f32 1e-05, %v1992_v38  ;;  %v2807_v24 = vadd.f32 %v5785_v34, %v2806_v32  ;;  %v2839_v26 = vadd.f32 %v5785_v34, %v2838_v51  ;;  %v5802_v29 = vpop.eup %3833  ;;  %v5807_v37 = vsel %vm2323_vm13, %v5613_v33, %v2322_v10  ;;  %2879 = vst [vmem:[%s5797_s3 + $0x50] sm:$0xff] %v2847_v52  ;;  %v2822_v52 = vpop.f32.mrb[53].mxu0 }
 0x51a   : > { %v1507_v28 = vadd.f32 1e-05, %v1491_v22  ;;  %v3315_v13 = vpack.c.bf16 %v5778_v43, %v2453_v48  ;;  %v1827_v18 = vadd.f32 %v5790_v7, %v1807_v42  ;;  %v1960_v5 = vpop.xlane.xlu1 %1959  ;;  %v2818_v32 = vadd.f32 %v3643_v54, %v5785_v34  ;;  %v3836_v38 = vpop.eup %3835 }
 0x51b   : > { %v1712_v3 = vpop.xlane.xlu0 %1711  ;;  %3849 = vrsqrt.f32 %v2008_v17  ;;  %v1990_v51 = vmul.f32 0.03125, %v1960_v5  ;;  %2869 = vst [vmem:[%s5797_s3] sm:$0xff] %v2807_v24  ;;  %2877 = vst [vmem:[%s5797_s3 + $0x40] sm:$0xff] %v2839_v26  ;;  %v2850_v10 = vadd.f32 %v3651_v55, %v5785_v34  ;;  %v3654_v48 = vpop.f32.mrb[52].mxu1  ;;  %v5818_v9 = vmul.f32 %v3832_v31, %v5618_v12 }
 0x51c   : > { %v1741_v22 = vmul.f32 0.03125, %v1712_v3  ;;  %v3838_v42 = vpop.eup %3837  ;;  %2565 = vst [vmem:[%s5821_s22] sm:$0xff] %v3315_v13  ;;  %v3331_v17 = vpack.c.bf16 %v5778_v43, %v1827_v18  ;;  %3851 = vrsqrt.f32 %v1507_v28  ;;  %2872 = vst [vmem:[%s5797_s3 + $0x18] sm:$0xff] %v2818_v32  ;;  %v2810_v54 = vadd.f32 %v5785_v34, %v2809_v11  ;;  %v2854_v55 = vpop.f32.mrb[53].mxu1 }
 0x51d   : > { %v3840_v24 = vpop.eup %3839  ;;  %v2006_v26 = vadd.f32 1e-05, %v1990_v51  ;;  %2880 = vst [vmem:[%s5797_s3 + $0x58] sm:$0xff] %v2850_v10  ;;  %v2842_v31 = vadd.f32 %v5785_v34, %v2841_v57  ;;  %v2831_v3 = vadd.f32 %v3646_v59, %v5785_v34  ;;  %v3647_v15 = vpop.f32.mrb[54].mxu0  ;;  %v2039_v28 = vmul.f32 %v3836_v38, %v5396_v53 }
 0x51e   : > { %v1757_v5 = vadd.f32 1e-05, %v1741_v22  ;;  %v3655_v13 = vpop.f32.mrb[54].mxu1  ;;  %v5830_v43 = vpop.eup %3841  ;;  %2645 = vst [vmem:[%s5833_s13] sm:$0xff] %v3331_v17  ;;  %v1538_v11 = vmul.f32 %v3840_v24, %v5403_v6  ;;  %2870 = vst [vmem:[%s5797_s3 + $0x8] sm:$0xff] %v2810_v54  ;;  %v2863_v57 = vadd.f32 %v3654_v48, %v5785_v34  ;;  %v2823_v51 = vadd.f32 %v5785_v34, %v2822_v52 }
 0x51f   : > { %v1464_v18 = vpop.xlane.xlu1 %1463  ;;  %v1970_v32 = vpop.xlane.xlu0 %1969  ;;  %3853 = vrsqrt.f32 %v2006_v26  ;;  %2878 = vst [vmem:[%s5797_s3 + $0x48] sm:$0xff] %v2842_v31  ;;  %2875 = vst [vmem:[%s5797_s3 + $0x30] sm:$0xff] %v2831_v3  ;;  %v2855_v53 = vadd.f32 %v5785_v34, %v2854_v55  ;;  %v2834_v48 = vadd.f32 %v3647_v15, %v5785_v34  ;;  %v2866_v54 = vadd.f32 %v3655_v13, %v5785_v34  ;;  %v5866_v13 = vld [vmem:[%s6586_s21 + $0x2] ss:$0 sm:$0xff] }
 0x520   : > { %v5841_v22 = vpop.eup %3843  ;;  %v1492_v10 = vmul.f32 0.03125, %v1464_v18  ;;  %v1995_v59 = vmul.f32 0.03125, %v1970_v32  ;;  %v2825_v6 = vpop.f32.mrb[55].mxu0  ;;  %v1558_v17 = vmul.f32 %v5749_v21, %v1538_v11  ;;  %3855 = vrsqrt.f32 %v1757_v5  ;;  %2883 = vst [vmem:[%s5797_s3 + $0x70] sm:$0xff] %v2863_v57  ;;  %2873 = vst [vmem:[%s5797_s3 + $0x20] sm:$0xff] %v2823_v51 }
 0x521   : > { %v2857_v38 = vpop.f32.mrb[55].mxu1  ;;  %v3846_v52 = vpop.eup %3845  ;;  %2881 = vst [vmem:[%s5797_s3 + $0x60] sm:$0xff] %v2855_v53  ;;  %v2826_v55 = vadd.f32 %v5785_v34, %v2825_v6  ;;  %v6589_v5 = vand.u32 2147483648, %v5613_v33  ;;  %3857 = vrsqrt.f32 %v5639_v60  ;;  %2876 = vst [vmem:[%s5797_s3 + $0x38] sm:$0xff] %v2834_v48  ;;  %v5873_v33 = vmul.f32 %v3838_v42, %v5270_v63 }
 0x522   : > { %v1508_v24 = vadd.f32 1e-05, %v1492_v10  ;;  %v2011_v26 = vadd.f32 1e-05, %v1995_v59  ;;  %v2858_v31 = vadd.f32 %v5785_v34, %v2857_v38  ;;  %v3848_v3 = vpop.eup %3847  ;;  %v1578_v11 = vadd.f32 %v5762_v16, %v1558_v17  ;;  %2884 = vst [vmem:[%s5797_s3 + $0x78] sm:$0xff] %v2866_v54 }
 0x523   : > { %v5860_v15 = vsel %vm2325_vm14, %v6589_v5, %v5807_v37  ;;  %v1788_v34 = vmul.f32 %v3846_v52, %v5407_v56  ;;  %v1714_v18 = vpop.xlane.xlu1 %1713  ;;  %v1966_v32 = vpop.xlane.xlu0 %1965  ;;  %2874 = vst [vmem:[%s5797_s3 + $0x28] sm:$0xff] %v2826_v55  ;;  %v2331_v51 = vsel %vm2330_vm15, %v5618_v12, %v5818_v9  ;;  %v2059_v63 = vmul.f32 %v5866_v13, %v2039_v28  ;;  %v5890_v9 = vld [vmem:[%s6587_s20 + $0x2] ss:$0 sm:$0xff] }
 0x524   : > { %3859 = vrsqrt.f32 %v1508_v24  ;;  %v1742_v37 = vmul.f32 0.03125, %v1714_v18  ;;  %v1993_v57 = vmul.f32 0.03125, %v1966_v32  ;;  %2882 = vst [vmem:[%s5797_s3 + $0x68] sm:$0xff] %v2858_v31  ;;  %v2454_v10 = vmul.f32 0.17677669, %v1578_v11  ;;  %s4203_s3 = scalar_lea.vmem %s5909_s14, 2048 }
 0x525   : > { %v1808_v56 = vmul.f32 %v5770_v47, %v1788_v34  ;;  %3861 = vrsqrt.f32 %v2011_v26  ;;  %v3850_v59 = vpop.eup %3849  ;;  %v2037_v48 = vmul.f32 %v3848_v3, %v5414_v62  ;;  %v2409_v24 = vmax.f32 %v5860_v15, 1e-12  ;;  %p4204_p4 = scmp.ne.s32.totalorder %s5909_s14, %s4203_s3  ;;  %p4211_p8 = scmp.lt.s32.totalorder %s4209_s29, %s4203_s3 }
 0x526   : > { %3863 = vrsqrt.f32 %v5645_v36  ;;  %v1758_v42 = vadd.f32 1e-05, %v1742_v37  ;;  %v2009_v53 = vadd.f32 1e-05, %v1993_v57  ;;  %v3852_v6 = vpop.eup %3851  ;;  %v3316_v38 = vpack.c.bf16 %v5873_v33, %v2454_v10 }
 0x527   : > { %v1828_v17 = vadd.f32 %v5790_v7, %v1808_v56  ;;  %v2040_v54 = vmul.f32 %v3850_v59, %v5419_v44  ;;  %v1972_v28 = vpop.xlane.xlu1 %1971  ;;  %v1466_v52 = vpop.xlane.xlu0 %1465  ;;  %v1539_v26 = vmul.f32 %v3852_v6, %v5426_v50  ;;  %v6591_v3 = vand.u32 2147483648, %v5618_v12  ;;  %p4205_p5 = pnand %p4204_p4, %p6592_p10  ;;  %p4212_p11 = por %p4211_p8, %p4210_p9 }
 0x528   : > { %3865 = vrsqrt.f32 %v1758_v42  ;;  %v1996_v55 = vmul.f32 0.03125, %v1972_v28  ;;  %2566 = vst [vmem:[%s5821_s22 + $0x8] sm:$0xff] %v3316_v38  ;;  %v1493_v31 = vmul.f32 0.03125, %v1466_v52  ;;  %v2079_v11 = vadd.f32 %v5890_v9, %v2059_v63 }
 0x529   : > { %v3332_v62 = vpack.c.bf16 %v5873_v33, %v1828_v17  ;;  %v2060_v44 = vmul.f32 %v5866_v13, %v2040_v54  ;;  %3867 = vrsqrt.f32 %v2009_v53  ;;  %v3854_v50 = vpop.eup %3853  ;;  %v5915_v5 = vsel %vm2332_vm0, %v6591_v3, %v2331_v51  ;;  %p4206_p7 = pneg %p4205_p5 }
 0x52a   : > { %v1559_v34 = vmul.f32 %v5749_v21, %v1539_v26  ;;  %v2012_v18 = vadd.f32 1e-05, %v1996_v55 }
 0x52b   : > { %p4213_p3 = pnand %p4212_p11, %p4206_p7 }
 0x52d   : > { %4216 = shalt.err (!%p4213_p3)
}
 0x52e   : > { %s4217_s19 = scalar_lea.hbm %s5902_s16, 2048  ;;  %s4221_s4 = scalar_lea.hbm %s6590_s30, 4096 }
 0x52f   : > { %p4218_p12 = scmp.ne.s32.totalorder %s5902_s16, %s4217_s19  ;;  %p4222_p0 = scmp.lt.u32.totalorder %s5902_s16, %s6590_s30 }
 0x530   : > { %p4223_p6 = scmp.lt.u32.totalorder %s4221_s4, %s4217_s19  ;;  %p4225_p4 = scmp.lt.u32.totalorder %s4217_s19, %s5902_s16 }
 0x531   : > { %p4219_p1 = pnand %p4218_p12, %p6592_p10 }
 0x532   : > { %p4224_p2 = por %p4223_p6, %p4222_p0 }
 0x533   : > { %p4220_p13 = pneg %p4219_p1 }
 0x534   : > { %p4226_p5 = por %p4225_p4, %p4224_p2 }
 0x536   : > { %p4227_p7 = pnand %p4226_p5, %p4220_p13 }
 0x538   : > { %4230 = shalt.err (!%p4227_p7)
}
 0x539   : > { %s6456_s3 = smov 128   ;;  %s6458_s29 = smov 8   ;;  %v3856_v12 = vpop.eup %3855  ;;  %2646 = vst [vmem:[%s5833_s13 + $0x8] sm:$0xff] %v3332_v62  ;;  %v2057_v32 = vmul.f32 %v5866_v13, %v2037_v48  ;;  %v2080_v33 = vadd.f32 %v5890_v9, %v2060_v44  ;;  %v2038_v37 = vmul.f32 %v3854_v50, %v5435_v19  ;;  %v1509_v57 = vadd.f32 1e-05, %v1493_v31  ;;  %v1968_v51 = vpop.xlane.xlu1 %1967 }
 0x53a   : > { %3703 = dma.vmem_to_hbm [thread:$0]  (%p6592_p10), %s5909_s14, 2048, %s5902_s16, %s2901_s28, %s6456_s3, %s6456_s3, %s6458_s29   ;;  %v1716_v10 = vpop.xlane.xlu0 %1715  ;;  %v1579_v56 = vadd.f32 %v5762_v16, %v1559_v34  ;;  %v1789_v59 = vmul.f32 %v3856_v12, %v5438_v58  ;;  %3869 = vrsqrt.f32 %v2012_v18  ;;  %v1994_v63 = vmul.f32 0.03125, %v1968_v51  ;;  %v5952_v42 = vpop.eup %3857 }
 0x53b   : > { %v3377_v53 = vpack.c.bf16 %v2080_v33, %v2079_v11  ;;  %v2058_v6 = vmul.f32 %v5866_v13, %v2038_v37  ;;  %3871 = vrsqrt.f32 %v1509_v57  ;;  %v1743_v38 = vmul.f32 0.03125, %v1716_v10  ;;  %v3860_v17 = vpop.eup %3859  ;;  %s5961_s12 = scalar_lea.vmem [#allocation19], %s3236_s2  ;;  %s2915_s26 = sshll.u32 %s5821_s22, 4  ;;  %s6227_s26 = int_to_ptr.vmem [resolvable:$true] %s2915_s26 }
 0x53c   : > { %3873 = vrcp.f32 %v2409_v24  ;;  %v2455_v19 = vmul.f32 0.17677669, %v1579_v56  ;;  %v1809_v48 = vmul.f32 %v5770_v47, %v1789_v59  ;;  %v2010_v54 = vadd.f32 1e-05, %v1994_v63  ;;  %v3862_v28 = vpop.eup %3861  ;;  %s6634_s2 = sld [smem:[#allocation86_spill]]  ;;  %s2886_s14 = scalar_lea.sflag [#allocation4], %s4808_s23 }
 0x53d   : > { %v2077_v58 = vadd.f32 %v5890_v9, %v2057_v32  ;;  %3409 = vst [vmem:[%s5961_s12 + $0x8] sm:$0xff] %v3377_v53   ;;  %v2078_v52 = vadd.f32 %v5890_v9, %v2058_v6  ;;  %v1540_v26 = vmul.f32 %v3860_v17, %v5442_v30  ;;  %v1759_v55 = vadd.f32 1e-05, %v1743_v38  ;;  %v1468_v15 = vpop.xlane.xlu1 %1467  ;;  %v3864_v62 = vpop.eup %3863  ;;  %s4231_s3 = scalar_lea.vmem %s6227_s26, 2048  ;;  %s4400_s19 = smov [#allocation16]  }
 0x53e   : > { %v1978_v24 = vpop.xlane.xlu0 %1977  ;;  %v2410_v44 = vmax.f32 %v5915_v5, 1e-12  ;;  %v3317_v31 = vpack.c.bf16 %v5773_v40, %v2455_v19  ;;  %v1829_v50 = vadd.f32 %v5790_v7, %v1809_v48  ;;  %3875 = vrsqrt.f32 %v2010_v54  ;;  %v3866_v18 = vpop.eup %3865  ;;  %p4232_p9 = scmp.ne.s32.totalorder %s6227_s26, %s4231_s3 }
 0x53f   : > { %v3372_v3 = vpack.c.bf16 %v2078_v52, %v2077_v58  ;;  %v1560_v11 = vmul.f32 %v5749_v21, %v1540_v26  ;;  %3877 = vrsqrt.f32 %v1759_v55  ;;  %v1494_v34 = vmul.f32 0.03125, %v1468_v15  ;;  %v3868_v33 = vpop.eup %3867 }
 0x540   : > { %v6593_v30 = vmax.f32 %v5757_v27, 1e-12  ;;  %2567 = vst [vmem:[%s5821_s22 + $0x10] sm:$0xff] %v3317_v31  ;;  %v3333_v12 = vpack.c.bf16 %v5773_v40, %v1829_v50  ;;  %v2043_v5 = vmul.f32 %v3862_v28, %v5450_v46  ;;  %v1999_v32 = vmul.f32 0.03125, %v1978_v24  ;;  %p4233_p8 = pnand %p4232_p9, %p6592_p10 }
 0x541   : > { %3373 = vst [vmem:[%s5961_s12] sm:$0xff] %v3372_v3   ;;  %v1580_v37 = vadd.f32 %v5762_v16, %v1560_v11  ;;  %v1790_v57 = vmul.f32 %v3866_v18, %v5456_v49  ;;  %v1510_v51 = vadd.f32 1e-05, %v1494_v34  ;;  %v1718_v10 = vpop.xlane.xlu1 %1717  ;;  %v2428_v27 = vmul.f32 %v5802_v29, %v5258_v35 }
 0x542   : > { %3879 = vrcp.f32 %v6593_v30  ;;  %v1974_v56 = vpop.xlane.xlu0 %1973  ;;  %2647 = vst [vmem:[%s5833_s13 + $0x10] sm:$0xff] %v3333_v12  ;;  %v2015_v40 = vadd.f32 1e-05, %v1999_v32  ;;  %v1744_v59 = vmul.f32 0.03125, %v1718_v10  ;;  %vm2351_vm1 = vcmp.eq.f32.partialorder %v5645_v36, inf  ;;  %s6225_s28 = scalar_lea.hbm %s6634_s2, %s5883_s17  ;;  %p4234_p11 = pneg %p4233_p8 }
 0x543   : > { %3881 = vrsqrt.f32 %v5647_v4  ;;  %v2456_v46 = vmul.f32 0.17677669, %v1580_v37  ;;  %v1810_v63 = vmul.f32 %v5770_v47, %v1790_v57  ;;  %v1997_v53 = vmul.f32 0.03125, %v1974_v56 }
 0x544   : > { %3883 = vrcp.f32 %v2410_v44  ;;  %v3870_v6 = vpop.eup %3869  ;;  %v2063_v49 = vmul.f32 %v5866_v13, %v2043_v5  ;;  %v2041_v38 = vmul.f32 %v3868_v33, %v5462_v41  ;;  %v1760_v17 = vadd.f32 1e-05, %v1744_v59 }
 0x545   : > { %3885 = vrsqrt.f32 %v1510_v51  ;;  %v3872_v19 = vpop.eup %3871  ;;  %v3318_v48 = vpack.c.bf16 %v2428_v27, %v2456_v46  ;;  %v1830_v35 = vadd.f32 %v5790_v7, %v1810_v63  ;;  %v2044_v29 = vmul.f32 %v3870_v6, %v5467_v8  ;;  %v1980_v28 = vpop.xlane.xlu1 %1979 }
 0x546   : > { %3887 = vrsqrt.f32 %v2015_v40  ;;  %v2013_v54 = vadd.f32 1e-05, %v1997_v53  ;;  %v1470_v58 = vpop.xlane.xlu0 %1469  ;;  %v3874_v52 = vpop.eup %3873  ;;  %v2354_v26 = vand.u32 2147483648, %v5645_v36  ;;  %v1541_v55 = vmul.f32 %v3872_v19, %v5474_v0 }
 0x547   : > { %3889 = vrsqrt.f32 %v1760_v17  ;;  %v2000_v15 = vmul.f32 0.03125, %v1980_v28  ;;  %2568 = vst [vmem:[%s5821_s22 + $0x18] sm:$0xff] %v3318_v48  ;;  %v3334_v41 = vpack.c.bf16 %v2428_v27, %v1830_v35  ;;  %v2064_v24 = vmul.f32 %v5866_v13, %v2044_v29  ;;  %v6594_v29 = vld [vmem:[#allocation33_spill] sm:$0xff] }
 0x548   : > { %3891 = vrsqrt.f32 %v2013_v54  ;;  %v1495_v44 = vmul.f32 0.03125, %v1470_v58  ;;  %v3876_v31 = vpop.eup %3875  ;;  %v2350_v8 = vmul.f32 %v3864_v62, %v5645_v36  ;;  %vm2353_vm2 = vcmp.eq.f32.partialorder %v5645_v36, 0.0  ;;  %v6595_v58 = vld [vmem:[#allocation35_spill] sm:$0xff] }
 0x549   : > { %v2083_v50 = vadd.f32 %v5890_v9, %v2063_v49  ;;  %v1561_v3 = vmul.f32 %v5749_v21, %v1541_v55  ;;  %v2016_v11 = vadd.f32 1e-05, %v2000_v15  ;;  %v3878_v34 = vpop.eup %3877  ;;  %2648 = vst [vmem:[%s5833_s13 + $0x18] sm:$0xff] %v3334_v41  ;;  %v2061_v0 = vmul.f32 %v5866_v13, %v2041_v38  ;;  %v1976_v5 = vpop.xlane.xlu1 %1975 }
 0x54a   : > { %v2084_v18 = vadd.f32 %v5890_v9, %v2064_v24  ;;  %v2042_v30 = vmul.f32 %v3876_v31, %v5483_v2  ;;  %v1511_v12 = vadd.f32 1e-05, %v1495_v44  ;;  %v1720_v32 = vpop.xlane.xlu0 %1719  ;;  %v1791_v37 = vmul.f32 %v3878_v34, %v5486_v1 }
 0x54b   : > { %v1581_v62 = vadd.f32 %v5762_v16, %v1561_v3  ;;  %3893 = vrsqrt.f32 %v2016_v11  ;;  %v1998_v57 = vmul.f32 0.03125, %v1976_v5  ;;  %v1745_v27 = vmul.f32 0.03125, %v1720_v32  ;;  %v6596_v11 = vld [vmem:[#allocation34_spill] sm:$0xff] }
 0x54c   : > { %v6000_v33 = vpop.eup %3879  ;;  %v3387_v10 = vpack.c.bf16 %v2084_v18, %v2083_v50  ;;  %v2062_v56 = vmul.f32 %v5866_v13, %v2042_v30  ;;  %3895 = vrsqrt.f32 %v1511_v12  ;;  %v2430_v2 = vmul.f32 %v3874_v52, %v5296_v14  ;;  %v6597_v12 = vld [vmem:[#allocation53_spill] sm:$0xff] }
 0x54d   : > { %v3882_v51 = vpop.eup %3881  ;;  %v2457_v59 = vmul.f32 0.17677669, %v1581_v62  ;;  %v1811_v46 = vmul.f32 %v5770_v47, %v1791_v37  ;;  %v2014_v63 = vadd.f32 1e-05, %v1998_v57  ;;  %v2352_v1 = vsel %vm2351_vm1, %v5645_v36, %v2350_v8  ;;  %v1472_v17 = vpop.xlane.xlu1 %1471 }
 0x54e   : > { %v3884_v40 = vpop.eup %3883  ;;  %v2081_v6 = vadd.f32 %v5890_v9, %v2061_v0  ;;  %3411 = vst [vmem:[%s5961_s12 + $0x18] sm:$0xff] %v3387_v10   ;;  %v2082_v49 = vadd.f32 %v5890_v9, %v2062_v56  ;;  %v1761_v38 = vadd.f32 1e-05, %v1745_v27  ;;  %v1982_v19 = vpop.xlane.xlu0 %1981  ;;  %v1496_v55 = vmul.f32 0.03125, %v1472_v17  ;;  %v6598_v56 = vld [vmem:[#allocation37_spill] sm:$0xff]  ;;  %v6600_v17 = vld [vmem:[#allocation39_spill] sm:$0xff] }
 0x54f   : > { %v3886_v53 = vpop.eup %3885  ;;  %v3319_v14 = vpack.c.bf16 %v2430_v2, %v2457_v59  ;;  %v1831_v35 = vadd.f32 %v5790_v7, %v1811_v46  ;;  %3897 = vrsqrt.f32 %v2014_v63  ;;  %v6018_v41 = vmul.f32 %v5830_v43, %v5626_v20  ;;  %v6599_v63 = vld [vmem:[#allocation36_spill] sm:$0xff] }
 0x550   : > { %v3888_v48 = vpop.eup %3887  ;;  %v1542_v54 = vmul.f32 %v3886_v53, %v6594_v29  ;;  %v3382_v28 = vpack.c.bf16 %v2082_v49, %v2081_v6  ;;  %3899 = vrsqrt.f32 %v1761_v38  ;;  %v2001_v31 = vmul.f32 0.03125, %v1982_v19 }
 0x551   : > { %v2047_v52 = vmul.f32 %v3888_v48, %v6595_v58  ;;  %v3890_v15 = vpop.eup %3889  ;;  %2569 = vst [vmem:[%s5821_s22 + $0x20] sm:$0xff] %v3319_v14  ;;  %v3335_v24 = vpack.c.bf16 %v2430_v2, %v1831_v35  ;;  %v2355_v50 = vsel %vm2353_vm2, %v2354_v26, %v2352_v1  ;;  %vm2358_vm3 = vcmp.eq.f32.partialorder %v5647_v4, inf  ;;  %v1722_v0 = vpop.xlane.xlu1 %1721 }
 0x552   : > { %v1562_v44 = vmul.f32 %v5749_v21, %v1542_v54  ;;  %v3892_v8 = vpop.eup %3891  ;;  %v2361_v3 = vand.u32 2147483648, %v5647_v4  ;;  %3410 = vst [vmem:[%s5961_s12 + $0x10] sm:$0xff] %v3382_v28   ;;  %v1792_v34 = vmul.f32 %v3890_v15, %v6596_v11  ;;  %v1512_v43 = vadd.f32 1e-05, %v1496_v55  ;;  %v1474_v18 = vpop.xlane.xlu0 %1473  ;;  %v6601_v28 = vld [vmem:[#allocation51_spill] sm:$0xff] }
 0x553   : > { %2649 = vst [vmem:[%s5833_s13 + $0x20] sm:$0xff] %v3335_v24  ;;  %v2432_v5 = vmul.f32 %v3884_v40, %v6597_v12  ;;  %v2017_v32 = vadd.f32 1e-05, %v2001_v31  ;;  %v1746_v62 = vmul.f32 0.03125, %v1722_v0  ;;  %vm2365_vm4 = vcmp.eq.f32.partialorder %v5626_v20, inf }
 0x554   : > { %v1582_v30 = vadd.f32 %v5762_v16, %v1562_v44  ;;  %v2067_v36 = vmul.f32 %v5866_v13, %v2047_v52  ;;  %v1812_v26 = vmul.f32 %v5770_v47, %v1792_v34  ;;  %3901 = vrsqrt.f32 %v1512_v43 }
 0x555   : > { %v1497_v37 = vmul.f32 0.03125, %v1474_v18  ;;  %v3894_v57 = vpop.eup %3893  ;;  %vm2360_vm5 = vcmp.eq.f32.partialorder %v5647_v4, 0.0  ;;  %v2045_v27 = vmul.f32 %v3892_v8, %v6598_v56  ;;  %3903 = vrsqrt.f32 %v2017_v32  ;;  %v1984_v6 = vpop.xlane.xlu1 %1983 }
 0x556   : > { %v2458_v10 = vmul.f32 0.17677669, %v1582_v30  ;;  %v1762_v2 = vadd.f32 1e-05, %v1746_v62  ;;  %v3896_v59 = vpop.eup %3895  ;;  %v2357_v40 = vmul.f32 %v3882_v51, %v5647_v4  ;;  %v1832_v46 = vadd.f32 %v5790_v7, %v1812_v26  ;;  %v1724_v55 = vpop.xlane.xlu0 %1723 }
 0x557   : > { %v2048_v53 = vmul.f32 %v3894_v57, %v6599_v63  ;;  %v1513_v1 = vadd.f32 1e-05, %v1497_v37  ;;  %vm2367_vm6 = vcmp.eq.f32.partialorder %v5626_v20, 0.0  ;;  %v2413_v49 = vmax.f32 %v2355_v50, 1e-12  ;;  %v6603_v63 = vld [vmem:[#allocation38_spill] sm:$0xff] }
 0x558   : > { %v3320_v38 = vpack.c.bf16 %v2432_v5, %v2458_v10  ;;  %v1543_v19 = vmul.f32 %v3896_v59, %v6600_v17  ;;  %3905 = vrsqrt.f32 %v1762_v2  ;;  %v3336_v48 = vpack.c.bf16 %v2432_v5, %v1832_v46 }
 0x559   : > { %v2068_v14 = vmul.f32 %v5866_v13, %v2048_v53  ;;  %3907 = vrsqrt.f32 %v1513_v1  ;;  %v2002_v35 = vmul.f32 0.03125, %v1984_v6  ;;  %v3898_v51 = vpop.eup %3897  ;;  %v2087_v29 = vadd.f32 %v5890_v9, %v2067_v36  ;;  %v1476_v34 = vpop.xlane.xlu1 %1475 }
 0x55a   : > { %2570 = vst [vmem:[%s5821_s22 + $0x28] sm:$0xff] %v3320_v38  ;;  %v2065_v54 = vmul.f32 %v5866_v13, %v2045_v27  ;;  %v2434_v58 = vmul.f32 %v5841_v22, %v6601_v28  ;;  %v1563_v52 = vmul.f32 %v5749_v21, %v1543_v19  ;;  %v3900_v15 = vpop.eup %3899  ;;  %2650 = vst [vmem:[%s5833_s13 + $0x28] sm:$0xff] %v3336_v48  ;;  %v1747_v8 = vmul.f32 0.03125, %v1724_v55  ;;  %v1478_v53 = vpop.xlane.xlu0 %1477  ;;  %v6606_v55 = vld [vmem:[#allocation72_spill] sm:$0xff] }
 0x55b   : > { %v2088_v24 = vadd.f32 %v5890_v9, %v2068_v14  ;;  %v2046_v44 = vmul.f32 %v3898_v51, %v5534_v61  ;;  %v2018_v31 = vadd.f32 1e-05, %v2002_v35  ;;  %3909 = vrcp.f32 %v2413_v49  ;;  %v6604_v49 = vld [vmem:[#allocation41_spill] sm:$0xff]  ;;  %v6605_v14 = vld [vmem:[#allocation52_spill] sm:$0xff] }
 0x55c   : > { %v2359_v50 = vsel %vm2358_vm3, %v5647_v4, %v2357_v40  ;;  %v1583_v11 = vadd.f32 %v5762_v16, %v1563_v52  ;;  %v1793_v22 = vmul.f32 %v3900_v15, %v5537_v25  ;;  %v1763_v18 = vadd.f32 1e-05, %v1747_v8 }
 0x55d   : > { %v3397_v43 = vpack.c.bf16 %v2088_v24, %v2087_v29  ;;  %v2066_v0 = vmul.f32 %v5866_v13, %v2046_v44  ;;  %3911 = vrsqrt.f32 %v2018_v31  ;;  %v2366_v61 = vsel %vm2365_vm4, %v5626_v20, %v6018_v41  ;;  %v1726_v17 = vpop.xlane.xlu1 %1725  ;;  %v6607_v31 = vld [vmem:[#allocation40_spill] sm:$0xff] }
 0x55e   : > { %v2459_v30 = vmul.f32 0.17677669, %v1583_v11  ;;  %v1813_v12 = vmul.f32 %v5770_v47, %v1793_v22  ;;  %v1498_v5 = vmul.f32 0.03125, %v1476_v34  ;;  %v3902_v32 = vpop.eup %3901  ;;  %v2362_v25 = vsel %vm2360_vm5, %v2361_v3, %v2359_v50  ;;  %v6608_v34 = vld [vmem:[#allocation56_spill] sm:$0xff] }
 0x55f   : > { %v2085_v62 = vadd.f32 %v5890_v9, %v2065_v54  ;;  %3413 = vst [vmem:[%s5961_s12 + $0x28] sm:$0xff] %v3397_v43   ;;  %v2086_v36 = vadd.f32 %v5890_v9, %v2066_v0  ;;  %3913 = vrsqrt.f32 %v1763_v18  ;;  %v3904_v26 = vpop.eup %3903  ;;  %v1544_v57 = vmul.f32 %v3902_v32, %v5540_v39 }
 0x560   : > { %v3321_v41 = vpack.c.bf16 %v2434_v58, %v2459_v30  ;;  %v1833_v37 = vadd.f32 %v5790_v7, %v1813_v12  ;;  %v1514_v10 = vadd.f32 1e-05, %v1498_v5  ;;  %v6602_v56 = vand.u32 2147483648, %v5626_v20  ;;  %v1728_v12 = vpop.xlane.xlu0 %1727 }
 0x561   : > { %3915 = vrsqrt.f32 %v5677_v23  ;;  %v3392_v3 = vpack.c.bf16 %v2086_v36, %v2085_v62  ;;  %v2414_v2 = vmax.f32 %v2362_v25, 1e-12  ;;  %v1564_v40 = vmul.f32 %v5749_v21, %v1544_v57  ;;  %v1480_v36 = vpop.xlane.xlu1 %1479 }
 0x562   : > { %v2369_v4 = vsel %vm2367_vm6, %v6602_v56, %v2366_v61  ;;  %v3906_v27 = vpop.eup %3905  ;;  %2571 = vst [vmem:[%s5821_s22 + $0x30] sm:$0xff] %v3321_v41  ;;  %v3337_v59 = vpack.c.bf16 %v2434_v58, %v1833_v37  ;;  %3917 = vrsqrt.f32 %v1514_v10  ;;  %vm2372_vm7 = vcmp.eq.f32.partialorder %v5639_v60, inf  ;;  %v6609_v61 = vld [vmem:[#allocation43_spill] sm:$0xff] }
 0x563   : > { %v3908_v46 = vpop.eup %3907  ;;  %3412 = vst [vmem:[%s5961_s12 + $0x20] sm:$0xff] %v3392_v3   ;;  %v2049_v39 = vmul.f32 %v3904_v26, %v5549_v45  ;;  %v1794_v20 = vmul.f32 %v3906_v27, %v6603_v63  ;;  %v2415_v1 = vmax.f32 %v2369_v4, 1e-12  ;;  %v1584_v6 = vadd.f32 %v5762_v16, %v1564_v40  ;;  %v6610_v56 = vld [vmem:[#allocation63_spill] sm:$0xff]  ;;  %v6611_v4 = vld [vmem:[#allocation42_spill] sm:$0xff] }
 0x564   : > { %2651 = vst [vmem:[%s5833_s13 + $0x30] sm:$0xff] %v3337_v59  ;;  %v1545_v38 = vmul.f32 %v3908_v46, %v6604_v49  ;;  %v1499_v19 = vmul.f32 0.03125, %v1478_v53  ;;  %v2371_v48 = vmul.f32 %v5952_v42, %v5639_v60  ;;  %v2436_v35 = vmul.f32 %v6000_v33, %v6605_v14 }
 0x565   : > { %v1814_v51 = vmul.f32 %v5770_v47, %v1794_v20  ;;  %v1748_v45 = vmul.f32 0.03125, %v1726_v17  ;;  %v3910_v29 = vpop.eup %3909  ;;  %3919 = vrcp.f32 %v2414_v2  ;;  %v2460_v54 = vmul.f32 0.17677669, %v1584_v6 }
 0x566   : > { %v1565_v28 = vmul.f32 %v5749_v21, %v1545_v38  ;;  %v1515_v58 = vadd.f32 1e-05, %v1499_v19  ;;  %3921 = vrsqrt.f32 %v6606_v55  ;;  %v2069_v15 = vmul.f32 %v5866_v13, %v2049_v39  ;;  %v1730_v38 = vpop.xlane.xlu1 %1729  ;;  %v6612_v19 = vld [vmem:[#allocation57_spill] sm:$0xff] }
 0x567   : > { %v3912_v52 = vpop.eup %3911  ;;  %v1834_v42 = vadd.f32 %v5790_v7, %v1814_v51  ;;  %v1764_v24 = vadd.f32 1e-05, %v1748_v45  ;;  %v3322_v44 = vpack.c.bf16 %v2436_v35, %v2460_v54  ;;  %v2373_v11 = vsel %vm2372_vm7, %v5639_v60, %v2371_v48  ;;  %v6614_v54 = vld [vmem:[#allocation44_spill] sm:$0xff] }
 0x568   : > { %v1585_v33 = vadd.f32 %v5762_v16, %v1565_v28  ;;  %v2050_v8 = vmul.f32 %v3912_v52, %v6607_v31  ;;  %3923 = vrsqrt.f32 %v1515_v58  ;;  %vm2374_vm8 = vcmp.eq.f32.partialorder %v5639_v60, 0.0 }
 0x569   : > { %v3914_v50 = vpop.eup %3913  ;;  %v3338_v22 = vpack.c.bf16 %v2436_v35, %v1834_v42  ;;  %3925 = vrsqrt.f32 %v1764_v24  ;;  %2572 = vst [vmem:[%s5821_s22 + $0x38] sm:$0xff] %v3322_v44  ;;  %v2438_v43 = vmul.f32 %v3910_v29, %v6608_v34  ;;  %v2375_v32 = vand.u32 2147483648, %v5639_v60  ;;  %v6613_v35 = vld [vmem:[#allocation45_spill] sm:$0xff]  ;;  %v1482_v29 = vpop.xlane.xlu0 %1481 }
 0x56a   : > { %v2461_v0 = vmul.f32 0.17677669, %v1585_v33  ;;  %v2070_v18 = vmul.f32 %v5866_v13, %v2050_v8  ;;  %v1795_v30 = vmul.f32 %v3914_v50, %v6609_v61  ;;  %3927 = vrcp.f32 %v2415_v1 }
 0x56b   : > { %v3916_v5 = vpop.eup %3915  ;;  %v2089_v25 = vadd.f32 %v5890_v9, %v2069_v15  ;;  %2652 = vst [vmem:[%s5833_s13 + $0x38] sm:$0xff] %v3338_v22  ;;  %v1749_v62 = vmul.f32 0.03125, %v1728_v12  ;;  %v1500_v57 = vmul.f32 0.03125, %v1480_v36  ;;  %v2376_v10 = vsel %vm2374_vm8, %v2375_v32, %v2373_v11  ;;  %v6617_v12 = vld [vmem:[#allocation47_spill] sm:$0xff] }
 0x56c   : > { %v3918_v26 = vpop.eup %3917  ;;  %v3323_v41 = vpack.c.bf16 %v2438_v43, %v2461_v0  ;;  %v2090_v37 = vadd.f32 %v5890_v9, %v2070_v18  ;;  %v1815_v13 = vmul.f32 %v5770_v47, %v1795_v30  ;;  %3929 = vrsqrt.f32 %v6610_v56 }
 0x56d   : > { %v1546_v3 = vmul.f32 %v3918_v26, %v6611_v4  ;;  %v1765_v27 = vadd.f32 1e-05, %v1749_v62  ;;  %v2378_v2 = vmul.f32 %v3916_v5, %v5677_v23  ;;  %v1516_v9 = vadd.f32 1e-05, %v1500_v57  ;;  %v6618_v62 = vld [vmem:[#allocation46_spill] sm:$0xff]  ;;  %v1732_v26 = vpop.xlane.xlu0 %1731 }
 0x56e   : > { %2573 = vst [vmem:[%s5821_s22 + $0x40] sm:$0xff] %v3323_v41  ;;  %v3402_v59 = vpack.c.bf16 %v2090_v37, %v2089_v25  ;;  %v1835_v40 = vadd.f32 %v5790_v7, %v1815_v13  ;;  %v2416_v63 = vmax.f32 %v2376_v10, 1e-12  ;;  %vm2379_vm9 = vcmp.eq.f32.partialorder %v5677_v23, inf  ;;  %v1484_v41 = vpop.xlane.xlu1 %1483  ;;  %v6150_v4 = vld [vmem:[%s6586_s21] ss:$0 sm:$0xff] }
 0x56f   : > { %v1566_v46 = vmul.f32 %v5749_v21, %v1546_v3  ;;  %3931 = vrsqrt.f32 %v1765_v27  ;;  %v3920_v39 = vpop.eup %3919  ;;  %v2380_v6 = vsel %vm2379_vm9, %v5677_v23, %v2378_v2  ;;  %v2382_v49 = vand.u32 2147483648, %v5677_v23 }
 0x570   : > { %3414 = vst [vmem:[%s5961_s12 + $0x30] sm:$0xff] %v3402_v59   ;;  %v3339_v60 = vpack.c.bf16 %v2438_v43, %v1835_v40  ;;  %3933 = vrsqrt.f32 %v1516_v9  ;;  %v3922_v20 = vpop.eup %3921  ;;  %v2440_v48 = vmul.f32 %v3920_v39, %v6612_v19  ;;  %v1750_v45 = vmul.f32 0.03125, %v1730_v38  ;;  %v6615_v43 = vld [vmem:[#allocation71_spill] sm:$0xff]  ;;  %v6157_v9 = vld [vmem:[%s6587_s20] ss:$0 sm:$0xff] }
 0x571   : > { %v1586_v53 = vadd.f32 %v5762_v16, %v1566_v46  ;;  %3935 = vrcp.f32 %v2416_v63  ;;  %vm2381_vm10 = vcmp.eq.f32.partialorder %v5677_v23, 0.0  ;;  %v1501_v58 = vmul.f32 0.03125, %v1482_v29  ;;  %v6171_v29 = vld [vmem:[%s6586_s21 + $0x1] ss:$0 sm:$0xff] }
 0x572   : > { %v3924_v1 = vpop.eup %3923  ;;  %2653 = vst [vmem:[%s5833_s13 + $0x40] sm:$0xff] %v3339_v60  ;;  %v2383_v15 = vsel %vm2381_vm10, %v2382_v49, %v2380_v6  ;;  %v1766_v44 = vadd.f32 1e-05, %v1750_v45  ;;  %v2385_v50 = vmul.f32 %v3922_v20, %v6606_v55  ;;  %vm2386_vm11 = vcmp.eq.f32.partialorder %v6606_v55, inf  ;;  %v6619_v60 = vld [vmem:[#allocation55_spill] sm:$0xff]  ;;  %v6620_v6 = vld [vmem:[#allocation49_spill] sm:$0xff]  ;;  %v1734_v38 = vpop.xlane.xlu1 %1733 }
 0x573   : > { %v3926_v17 = vpop.eup %3925  ;;  %v2462_v14 = vmul.f32 0.17677669, %v1586_v53  ;;  %v1547_v51 = vmul.f32 %v3924_v1, %v6613_v35  ;;  %v1517_v31 = vadd.f32 1e-05, %v1501_v58  ;;  %v2417_v23 = vmax.f32 %v2383_v15, 1e-12  ;;  %v1486_v45 = vpop.xlane.xlu0 %1485 }
 0x574   : > { %v1796_v28 = vmul.f32 %v3926_v17, %v6614_v54  ;;  %v3928_v52 = vpop.eup %3927  ;;  %3937 = vrsqrt.f32 %v1766_v44  ;;  %v2389_v32 = vand.u32 2147483648, %v6606_v55  ;;  %v1751_v13 = vmul.f32 0.03125, %v1732_v26 }
 0x575   : > { %v3324_v42 = vpack.c.bf16 %v2440_v48, %v2462_v14  ;;  %v1567_v24 = vmul.f32 %v5749_v21, %v1547_v51  ;;  %3939 = vrsqrt.f32 %v1517_v31  ;;  %v6616_v21 = vld [vmem:[#allocation54_spill] sm:$0xff]  ;;  %v1502_v57 = vmul.f32 0.03125, %v1484_v41  ;;  %v6621_v14 = vld [vmem:[#allocation48_spill] sm:$0xff] }
 0x576   : > { %v1816_v33 = vmul.f32 %v5770_v47, %v1796_v28  ;;  %v3930_v8 = vpop.eup %3929  ;;  %3941 = vrsqrt.f32 %v6615_v43  ;;  %v2442_v0 = vmul.f32 %v3928_v52, %v6616_v21  ;;  %vm2388_vm12 = vcmp.eq.f32.partialorder %v6606_v55, 0.0 }
 0x577   : > { %2574 = vst [vmem:[%s5821_s22 + $0x48] sm:$0xff] %v3324_v42  ;;  %v1587_v11 = vadd.f32 %v5762_v16, %v1567_v24  ;;  %v2387_v16 = vsel %vm2386_vm11, %v6606_v55, %v2385_v50  ;;  %3943 = vrcp.f32 %v2417_v23  ;;  %v2392_v10 = vmul.f32 %v3930_v8, %v6610_v56 }
 0x578   : > { %v1836_v22 = vadd.f32 %v5790_v7, %v1816_v33  ;;  %v2390_v2 = vsel %vm2388_vm12, %v2389_v32, %v2387_v16  ;;  %v1518_v40 = vadd.f32 1e-05, %v1502_v57  ;;  %vm2393_vm13 = vcmp.eq.f32.partialorder %v6610_v56, inf  ;;  %v6624_v32 = vld [vmem:[#allocation62_spill] sm:$0xff] }
 0x579   : > { %v3932_v34 = vpop.eup %3931  ;;  %v2463_v18 = vmul.f32 0.17677669, %v1587_v11  ;;  %v2418_v63 = vmax.f32 %v2390_v2, 1e-12  ;;  %v2394_v1 = vsel %vm2393_vm13, %v6610_v56, %v2392_v10  ;;  %v2396_v19 = vand.u32 2147483648, %v6610_v56  ;;  %v6622_v11 = vld [vmem:[#allocation60_spill] sm:$0xff]  ;;  %v1488_v16 = vpop.xlane.xlu1 %1487 }
 0x57a   : > { %v3934_v61 = vpop.eup %3933  ;;  %v3340_v30 = vpack.c.bf16 %v2440_v48, %v1836_v22  ;;  %v1797_v5 = vmul.f32 %v3932_v34, %v6617_v12  ;;  %v1752_v51 = vmul.f32 0.03125, %v1734_v38  ;;  %vm2395_vm14 = vcmp.eq.f32.partialorder %v6610_v56, 0.0  ;;  %v6180_v56 = vld [vmem:[%s6587_s20 + $0x1] ss:$0 sm:$0xff] }
 0x57b   : > { %v3325_v25 = vpack.c.bf16 %v2442_v0, %v2463_v18  ;;  %v1548_v36 = vmul.f32 %v3934_v61, %v6618_v62  ;;  %v3936_v27 = vpop.eup %3935  ;;  %v1503_v28 = vmul.f32 0.03125, %v1486_v45  ;;  %v2397_v58 = vsel %vm2395_vm14, %v2396_v19, %v2394_v1  ;;  %v6627_v1 = vld [vmem:[#allocation65_spill] sm:$0xff] }
 0x57c   : > { %2654 = vst [vmem:[%s5833_s13 + $0x48] sm:$0xff] %v3340_v30  ;;  %v1817_v37 = vmul.f32 %v5770_v47, %v1797_v5  ;;  %v1767_v47 = vadd.f32 1e-05, %v1751_v13  ;;  %v2444_v20 = vmul.f32 %v3936_v27, %v6619_v60  ;;  %v1768_v15 = vadd.f32 1e-05, %v1752_v51  ;;  %v6623_v30 = vld [vmem:[#allocation50_spill] sm:$0xff]  ;;  %v1736_v5 = vpop.xlane.xlu0 %1735 }
 0x57d   : > { %2575 = vst [vmem:[%s5821_s22 + $0x50] sm:$0xff] %v3325_v25  ;;  %v1568_v3 = vmul.f32 %v6150_v4, %v1548_v36  ;;  %v1519_v33 = vadd.f32 1e-05, %v1503_v28  ;;  %v2419_v8 = vmax.f32 %v2397_v58, 1e-12  ;;  %vm2400_vm15 = vcmp.eq.f32.partialorder %v6615_v43, inf }
 0x57e   : > { %v1837_v59 = vadd.f32 %v5790_v7, %v1817_v37  ;;  %3945 = vrsqrt.f32 %v1767_v47  ;;  %v3938_v39 = vpop.eup %3937  ;;  %vm2402_vm0 = vcmp.eq.f32.partialorder %v6615_v43, 0.0  ;;  %v2403_v18 = vand.u32 2147483648, %v6615_v43  ;;  %v6626_v60 = vld [vmem:[#allocation64_spill] sm:$0xff]  ;;  %v6628_v58 = vld [vmem:[#allocation58_spill] sm:$0xff] }
 0x57f   : > { %v1588_v55 = vadd.f32 %v6157_v9, %v1568_v3  ;;  %3947 = vrsqrt.f32 %v1518_v40  ;;  %v3940_v7 = vpop.eup %3939  ;;  %v1798_v49 = vmul.f32 %v3938_v39, %v6620_v6  ;;  %v1753_v62 = vmul.f32 0.03125, %v1736_v5 }
 0x580   : > { %v3341_v46 = vpack.c.bf16 %v2442_v0, %v1837_v59  ;;  %v3942_v17 = vpop.eup %3941  ;;  %v1549_v35 = vmul.f32 %v3940_v7, %v6621_v14  ;;  %3949 = vrcp.f32 %v2418_v63  ;;  %v1504_v36 = vmul.f32 0.03125, %v1488_v16  ;;  %v1986_v3 = vpop.xlane.xlu0 %1985 }
 0x581   : > { %v2464_v53 = vmul.f32 0.17677669, %v1588_v55  ;;  %v1818_v54 = vmul.f32 %v6171_v29, %v1798_v49  ;;  %v3944_v42 = vpop.eup %3943  ;;  %v2399_v24 = vmul.f32 %v3942_v17, %v6615_v43  ;;  %3951 = vrsqrt.f32 %v1768_v15  ;;  %v1738_v7 = vpop.xlane.xlu1 %1737 }
 0x582   : > { %2655 = vst [vmem:[%s5833_s13 + $0x50] sm:$0xff] %v3341_v46  ;;  %v1569_v52 = vmul.f32 %v6150_v4, %v1549_v35  ;;  %3953 = vrsqrt.f32 %v1519_v33  ;;  %v2446_v23 = vmul.f32 %v3944_v42, %v6622_v11  ;;  %v1769_v13 = vadd.f32 1e-05, %v1753_v62  ;;  %v6625_v46 = vld [vmem:[#allocation61_spill] sm:$0xff] }
 0x583   : > { %v3326_v48 = vpack.c.bf16 %v2444_v20, %v2464_v53  ;;  %v1838_v44 = vadd.f32 %v6180_v56, %v1818_v54  ;;  %v2401_v21 = vsel %vm2400_vm15, %v6615_v43, %v2399_v24  ;;  %3955 = vrcp.f32 %v2419_v8  ;;  %v6633_v62 = vld [vmem:[#allocation69_spill] sm:$0xff] }
 0x584   : > { %v1589_v31 = vadd.f32 %v6157_v9, %v1569_v52  ;;  %v2404_v26 = vsel %vm2402_vm0, %v2403_v18, %v2401_v21  ;;  %v1520_v57 = vadd.f32 1e-05, %v1504_v36  ;;  %3957 = vrsqrt.f32 %v1769_v13  ;;  %v6635_v13 = vld [vmem:[#allocation70_spill] sm:$0xff] }
 0x585   : > { %2576 = vst [vmem:[%s5821_s22 + $0x58] sm:$0xff] %v3326_v48  ;;  %v3342_v50 = vpack.c.bf16 %v2444_v20, %v1838_v44  ;;  %v2420_v27 = vmax.f32 %v2404_v26, 1e-12  ;;  %v2003_v59 = vmul.f32 0.03125, %v1986_v3  ;;  %v1754_v49 = vmul.f32 0.03125, %v1738_v7  ;;  %v1988_v51 = vpop.xlane.xlu1 %1987 }
 0x586   : > { %v2465_v22 = vmul.f32 0.17677669, %v1589_v31  ;;  %3959 = vrsqrt.f32 %v1520_v57  ;;  %v2004_v54 = vmul.f32 0.03125, %v1988_v51  ;;  %v6629_v31 = vld [vmem:[#allocation66_spill] sm:$0xff] }
 0x587   : > { %2656 = vst [vmem:[%s5833_s13 + $0x58] sm:$0xff] %v3342_v50  ;;  %v2019_v53 = vadd.f32 1e-05, %v2003_v59  ;;  %3961 = vrcp.f32 %v2420_v27  ;;  %v1770_v48 = vadd.f32 1e-05, %v1754_v49  ;;  %v6630_v50 = vld [vmem:[#allocation67_spill] sm:$0xff] }
 0x588   : > { %v3946_v34 = vpop.eup %3945  ;;  %v3327_v61 = vpack.c.bf16 %v2446_v23, %v2465_v22  ;;  %v2020_v42 = vadd.f32 1e-05, %v2004_v54 }
 0x589   : > { %v3948_v0 = vpop.eup %3947  ;;  %v1799_v12 = vmul.f32 %v3946_v34, %v6623_v30  ;;  %3963 = vrsqrt.f32 %v2019_v53 }
 0x58a   : > { %v1550_v25 = vmul.f32 %v3948_v0, %v6624_v32  ;;  %2577 = vst [vmem:[%s5821_s22 + $0x60] sm:$0xff] %v3327_v61  ;;  %v3950_v10 = vpop.eup %3949  ;;  %3965 = vrsqrt.f32 %v1770_v48  ;;  %v6632_v32 = vld [vmem:[#allocation68_spill] sm:$0xff] }
 0x58b   : > { %v1819_v41 = vmul.f32 %v6171_v29, %v1799_v12  ;;  %v3952_v47 = vpop.eup %3951  ;;  %v2448_v39 = vmul.f32 %v3950_v10, %v6625_v46  ;;  %3967 = vrsqrt.f32 %v2020_v42  ;;  %v6631_v12 = vld [vmem:[#allocation59_spill] sm:$0xff] }
 0x58c   : > { %v1570_v37 = vmul.f32 %v6150_v4, %v1550_v25  ;;  %v3954_v55 = vpop.eup %3953  ;;  %v1800_v20 = vmul.f32 %v3952_v47, %v6626_v60 }
 0x58d   : > { %v1839_v43 = vadd.f32 %v6180_v56, %v1819_v41  ;;  %v1551_v6 = vmul.f32 %v3954_v55, %v6627_v1  ;;  %v3956_v14 = vpop.eup %3955  ;;  %v3973_v41 = vld [vmem:[%s6586_s21 + $0x2] ss:$0 sm:$0xff] }
 0x58e   : > { %v1590_v2 = vadd.f32 %v6157_v9, %v1570_v37  ;;  %v1820_v17 = vmul.f32 %v6171_v29, %v1800_v20  ;;  %v2450_v52 = vmul.f32 %v3956_v14, %v6628_v58  ;;  %v3958_v24 = vpop.eup %3957 }
 0x58f   : > { %v3343_v40 = vpack.c.bf16 %v2446_v23, %v1839_v43  ;;  %v1571_v19 = vmul.f32 %v6150_v4, %v1551_v6  ;;  %v1801_v8 = vmul.f32 %v3958_v24, %v6629_v31 }
 0x590   : > { %v2466_v63 = vmul.f32 0.17677669, %v1590_v2  ;;  %v1840_v35 = vadd.f32 %v6180_v56, %v1820_v17  ;;  %v3960_v44 = vpop.eup %3959 }
 0x591   : > { %2657 = vst [vmem:[%s5833_s13 + $0x60] sm:$0xff] %v3343_v40  ;;  %v1591_v45 = vadd.f32 %v6157_v9, %v1571_v19  ;;  %v1552_v11 = vmul.f32 %v3960_v44, %v6630_v50  ;;  %v1821_v23 = vmul.f32 %v6171_v29, %v1801_v8  ;;  %v3962_v22 = vpop.eup %3961 }
 0x592   : > { %v3328_v38 = vpack.c.bf16 %v2448_v39, %v2466_v63  ;;  %v3344_v28 = vpack.c.bf16 %v2448_v39, %v1840_v35  ;;  %v2452_v5 = vmul.f32 %v3962_v22, %v6631_v12 }
 0x593   : > { %v2467_v15 = vmul.f32 0.17677669, %v1591_v45  ;;  %v1572_v34 = vmul.f32 %v6150_v4, %v1552_v11  ;;  %v3964_v21 = vpop.eup %3963  ;;  %v1841_v0 = vadd.f32 %v6180_v56, %v1821_v23 }
 0x594   : > { %2578 = vst [vmem:[%s5821_s22 + $0x68] sm:$0xff] %v3328_v38  ;;  %2658 = vst [vmem:[%s5833_s13 + $0x68] sm:$0xff] %v3344_v28  ;;  %v3966_v61 = vpop.eup %3965  ;;  %v2051_v25 = vmul.f32 %v3964_v21, %v6632_v32 }
 0x595   : > { %v3329_v33 = vpack.c.bf16 %v2450_v52, %v2467_v15  ;;  %v1592_v18 = vadd.f32 %v6157_v9, %v1572_v34  ;;  %v3345_v30 = vpack.c.bf16 %v2450_v52, %v1841_v0  ;;  %v1802_v4 = vmul.f32 %v3966_v61, %v6633_v62  ;;  %v3968_v9 = vpop.eup %3967 }
 0x596   : > { %v2071_v37 = vmul.f32 %v3973_v41, %v2051_v25  ;;  %v2052_v57 = vmul.f32 %v3968_v9, %v6635_v13 }
 0x597   : > { %2579 = vst [vmem:[%s5821_s22 + $0x70] sm:$0xff] %v3329_v33  ;;  %v2468_v16 = vmul.f32 0.17677669, %v1592_v18  ;;  %2659 = vst [vmem:[%s5833_s13 + $0x70] sm:$0xff] %v3345_v30  ;;  %v1822_v26 = vmul.f32 %v6171_v29, %v1802_v4 }
 0x599   : > { %v3330_v36 = vpack.c.bf16 %v2452_v5, %v2468_v16  ;;  %v1842_v29 = vadd.f32 %v6180_v56, %v1822_v26 }
 0x59b   : > { %2580 = vst [vmem:[%s5821_s22 + $0x78] sm:$0xff] %v3330_v36  ;;  %s4235_s22 = sshll.u32 %s4400_s19, 4  ;;  %s4236_s22 = int_to_ptr.vmem [resolvable:$false] %s4235_s22 }
 0x59c   : > { %s4237_s29 = scalar_lea.vmem %s4236_s22, 4096  ;;  %p4238_p3 = scmp.lt.s32.totalorder %s6227_s26, %s4236_s22 }
 0x59d   : > { %p4239_p12 = scmp.lt.s32.totalorder %s4237_s29, %s4231_s3 }
 0x59f   : > { %p4240_p1 = por %p4239_p12, %p4238_p3 }
 0x5a1   : > { %p4241_p13 = pnand %p4240_p1, %p4234_p11 }
 0x5a3   : > { %4244 = shalt.err (!%p4241_p13)
}
 0x5a4   : > { %s4245_s1 = scalar_lea.hbm %s6225_s28, 2048  ;;  %s4249_s19 = scalar_lea.hbm %s6634_s2, 4096 }
 0x5a5   : > { %p4246_p0 = scmp.ne.s32.totalorder %s6225_s28, %s4245_s1  ;;  %p4250_p4 = scmp.lt.u32.totalorder %s6225_s28, %s6634_s2 }
 0x5a6   : > { %p4251_p5 = scmp.lt.u32.totalorder %s4249_s19, %s4245_s1  ;;  %p4253_p9 = scmp.lt.u32.totalorder %s4245_s1, %s6225_s28 }
 0x5a7   : > { %p4247_p6 = pnand %p4246_p0, %p6592_p10 }
 0x5a8   : > { %p4252_p7 = por %p4251_p5, %p4250_p4 }
 0x5a9   : > { %p4248_p2 = pneg %p4247_p6 }
 0x5aa   : > { %p4254_p8 = por %p4253_p9, %p4252_p7 }
 0x5ac   : > { %p4255_p11 = pnand %p4254_p8, %p4248_p2 }
 0x5ae   : > { %4258 = shalt.err (!%p4255_p11)
}
 0x5af   : > { %s6636_s3 = smov 8   ;;  %s6637_s29 = smov 128   ;;  %v3346_v56 = vpack.c.bf16 %v2452_v5, %v1842_v29  ;;  %v2072_v10 = vmul.f32 %v3973_v41, %v2052_v57  ;;  %v3974_v43 = vld [vmem:[%s6587_s20 + $0x2] ss:$0 sm:$0xff] }
 0x5b0   : > { %3700 = dma.vmem_to_hbm [thread:$0]  (%p6592_p10), %s6227_s26, 2048, %s6225_s28, %s2886_s14, %s6637_s29, %s6637_s29, %s6636_s3   ;;  %v2091_v3 = vadd.f32 %v3974_v43, %v2071_v37 }
 0x5b1   : > { %s6638_s1 = sld [smem:[#allocation87_spill]]  ;;  %s6639_s19 = sshll.u32 %s5833_s13, 4  ;;  %2660 = vst [vmem:[%s5833_s13 + $0x78] sm:$0xff] %v3346_v56  ;;  %v2092_v27 = vadd.f32 %v3974_v43, %v2072_v10  ;;  %s6273_s19 = int_to_ptr.vmem [resolvable:$true] %s6639_s19 }
 0x5b2   : > { %s6640_s26 = sshll.u32 %s4516_s0, 10  ;;  %s6641_s2 = sld [smem:[#allocation88_spill]] }
 0x5b3   : > { %s6643_s16 = sand.u32 1, %s4516_s0   ;;  %s4259_s23 = scalar_lea.vmem %s6273_s19, 2048 }
 0x5b4   : > { %s6292_s5 = scalar_lea.sflag [#allocation18], %s6643_s16  ;;  %p4260_p3 = scmp.ne.s32.totalorder %s6273_s19, %s4259_s23 }
 0x5b5   : > { %s4401_s22 = smov [#allocation17]  }
 0x5b6   : > { %p4261_p12 = pnand %p4260_p3, %p6592_p10  ;;  %s4263_s13 = sshll.u32 %s4401_s22, 4  ;;  %s4264_s13 = int_to_ptr.vmem [resolvable:$false] %s4263_s13 }
 0x5b7   : > { %s6269_s6 = scalar_lea.hbm %s6638_s1, %s5883_s17  ;;  %s6642_s17 = sshll.u32 %s5961_s12, 4  ;;  %s6288_s17 = int_to_ptr.vmem [resolvable:$true] %s6642_s17 }
 0x5b8   : > { %s6284_s4 = scalar_lea.hbm %s6641_s2, %s6640_s26  ;;  %p4262_p1 = pneg %p4261_p12 }
 0x5b9   : > { %s4265_s7 = scalar_lea.vmem %s4264_s13, 4096  ;;  %p4266_p13 = scmp.lt.s32.totalorder %s6273_s19, %s4264_s13 }
 0x5ba   : > { %p4267_p0 = scmp.lt.s32.totalorder %s4265_s7, %s4259_s23 }
 0x5bc   : > { %p4268_p6 = por %p4267_p0, %p4266_p13 }
 0x5be   : > { %p4269_p2 = pnand %p4268_p6, %p4262_p1 }
 0x5c0   : > { %4272 = shalt.err (!%p4269_p2)
}
 0x5c1   : > { %s4273_s0 = scalar_lea.hbm %s6269_s6, 2048  ;;  %s4277_s14 = scalar_lea.hbm %s6638_s1, 4096 }
 0x5c2   : > { %p4274_p4 = scmp.ne.s32.totalorder %s6269_s6, %s4273_s0  ;;  %p4278_p9 = scmp.lt.u32.totalorder %s6269_s6, %s6638_s1 }
 0x5c3   : > { %p4279_p8 = scmp.lt.u32.totalorder %s4277_s14, %s4273_s0  ;;  %p4281_p3 = scmp.lt.u32.totalorder %s4273_s0, %s6269_s6 }
 0x5c4   : > { %p4275_p5 = pnand %p4274_p4, %p6592_p10 }
 0x5c5   : > { %p4280_p11 = por %p4279_p8, %p4278_p9 }
 0x5c6   : > { %p4276_p7 = pneg %p4275_p5 }
 0x5c7   : > { %p4282_p12 = por %p4281_p3, %p4280_p11 }
 0x5c9   : > { %p4283_p1 = pnand %p4282_p12, %p4276_p7 }
 0x5cb   : > { %4286 = shalt.err (!%p4283_p1)
}
 0x5cc   : > { %3701 = dma.vmem_to_hbm [thread:$0]  (%p6592_p10), %s6273_s19, 2048, %s6269_s6, %s6292_s5, %s6637_s29, %s6637_s29, %s6636_s3   ;;  %v3407_v2 = vpack.c.bf16 %v2092_v27, %v2091_v3 }
 0x5cd   : > { %s4287_s7 = scalar_lea.vmem %s6288_s17, 1024  ;;  %s4402_s23 = smov [#allocation19]  }
 0x5ce   : > { %3415 = vst [vmem:[%s5961_s12 + $0x38] sm:$0xff] %v3407_v2   ;;  %p4288_p13 = scmp.ne.s32.totalorder %s6288_s17, %s4287_s7  ;;  %s4291_s13 = sshll.u32 %s4402_s23, 4  ;;  %s4292_s13 = int_to_ptr.vmem [resolvable:$false] %s4291_s13 }
 0x5cf   : > { %s4293_s0 = scalar_lea.vmem %s4292_s13, 2048  ;;  %p4294_p2 = scmp.lt.s32.totalorder %s6288_s17, %s4292_s13 }
 0x5d0   : > { %p4289_p0 = pnand %p4288_p13, %p6592_p10  ;;  %p4295_p4 = scmp.lt.s32.totalorder %s4293_s0, %s4287_s7 }
 0x5d2   : > { %p4290_p6 = pneg %p4289_p0  ;;  %p4296_p5 = por %p4295_p4, %p4294_p2 }
 0x5d4   : > { %p4297_p7 = pnand %p4296_p5, %p4290_p6 }
 0x5d6   : > { %4300 = shalt.err (!%p4297_p7)
}
 0x5d7   : > { %s4301_s12 = scalar_lea.hbm %s6284_s4, 1024  ;;  %s4305_s6 = scalar_lea.hbm %s6641_s2, 2048 }
 0x5d8   : > { %p4302_p9 = scmp.ne.s32.totalorder %s6284_s4, %s4301_s12  ;;  %p4306_p3 = scmp.lt.u32.totalorder %s6284_s4, %s6641_s2 }
 0x5d9   : > { %p4307_p12 = scmp.lt.u32.totalorder %s4305_s6, %s4301_s12  ;;  %p4309_p13 = scmp.lt.u32.totalorder %s4301_s12, %s6284_s4 }
 0x5da   : > { %p4303_p8 = pnand %p4302_p9, %p6592_p10 }
 0x5db   : > { %p4308_p1 = por %p4307_p12, %p4306_p3 }
 0x5dc   : > { %p4304_p11 = pneg %p4303_p8 }
 0x5dd   : > { %p4310_p0 = por %p4309_p13, %p4308_p1 }
 0x5df   : > { %p4311_p6 = pnand %p4310_p0, %p4304_p11 }
 0x5e1   : > { %4314 = shalt.err (!%p4311_p6)
}
 0x5e2   : > { %s4403_s28 = smov 64   ;;  %s4404_s14 = smov 4  }
 0x5e3   : > { %3702 = dma.vmem_to_hbm [thread:$0]  (%p6592_p10), %s6288_s17, 1024, %s6284_s4, %s6292_s5, %s4403_s28, %s4403_s28, %s4404_s14  }
 0x5e4 PF: > { %s2979_s16 = sand.u32 1, %s4369_s24   ;;  %p6644_p2 = scmp.ne.s32.totalorder %s6495_s9, 0 }
 0x5e5   : > { %p6645_p4 = scmp.ge.s32.totalorder %s4381_s27, 2  ;;  %s2980_s22 = scalar_lea.sflag [#allocation4], %s2979_s16 }
 0x5e7   : > { %p3735_p5 = pnand %p6645_p4, %p6644_p2 }
 0x5e9   : > { %4356 = dma.done.wait (!%p3735_p5), %s2980_s22, 2048  }
 0x5ea   : > { %4358 = vsyncadd (!%p3735_p5), %s2980_s22, 4294965248  ;;  %s6646_s7 = sadd.s32 4294967294, %s4381_s27  }
 0x5eb   : > { %s2988_s23 = sand.u32 1, %s6646_s7  }
 0x5ec   : > { %s2989_s13 = scalar_lea.sflag [#allocation18], %s2988_s23 }
 0x5ed   : > { %4360 = dma.done.wait (!%p3735_p5), %s2989_s13, 3072  }
 0x5ee   : > { %4362 = vsyncadd (!%p3735_p5), %s2989_s13, 4294964224  ;;  %s3007_s0 = scalar_lea.sflag [#allocation21], %s2979_s16 }
 0x5ef   : > { %4364 = dma.done.wait (!%p3735_p5), %s3007_s0, 2048  }
 0x5f0   : > { %4366 = vsyncadd (!%p3735_p5), %s3007_s0, 4294965248  ;;  %s6647_s5 = sld [smem:[#allocation31_spill]]  ;;  %s6648_s26 = sld [smem:[#allocation32_spill]] }
 0x5f1   : > { %p43_p10 = scmp.ge.s32.totalorder %s4684_s18, 4   ;;  %s6649_s24 = smov %s4373_s25 }
 0x5f2   : > { %s6651_s27 = smov %s4684_s18 }
 0x5f3   :  { %45 = sbr.rel (!%p43_p10) target bundleno = 32 (0x20), region = 207 }
 0x5f6   : > { %s6650_s25 = smov %s6647_s5 }
 0x5fa   :  { %3012 = vsyncpa [#allocation3], 1 }
 0x5fb   :  { %3014 = vsyncpa [#allocation3 + $0x1], 1 }
 0x5fc   :  { %3015 = vsyncpa [#allocation6], 1 }
 0x5fd   :  { %3017 = vsyncpa [#allocation6 + $0x1], 1 }
 0x5fe   :  { %3018 = vsyncpa [#allocation9], 1 }
 0x5ff   :  { %3019 = vsyncpa [#allocation12], 1 }
 0x600   :  { %3020 = vsyncpa [#allocation15], 1 }
 0x601   :  { %3021 = vsyncpa [#allocation4], 1 }
 0x602   :  { %3023 = vsyncpa [#allocation4 + $0x1], 1 }
 0x603   :  { %3024 = vsyncpa [#allocation18], 1 }
 0x604   :  { %3026 = vsyncpa [#allocation18 + $0x1], 1 }
 0x605   :  { %3027 = vsyncpa [#allocation21], 1 }
 0x606   :  { %3029 = vsyncpa [#allocation21 + $0x1], 1 }

</bundles_post_ra>
